<compile_context>
chip_gen: v7x
topology: tpu7x:2x2x1
jax: 0.10.0
libtpu: 0.0.40
codegen_flags: <defaults>
</compile_context>

<pallas_src>
import functools

import jax
import jax.numpy as jnp
from jax import lax
from jax.experimental import pallas as pl
from jax.experimental.pallas import tpu as pltpu

EPS = 1e-5


# ---------------------------------------------------------------------------
# Fused Pallas kernel (one image per grid step)
# ---------------------------------------------------------------------------
def _bottleneck_kernel(x_ref, w1_ref, w2_ref, w3_ref,
                       s1_ref, b1_ref, s2_ref, b2_ref, s3_ref, b3_ref,
                       o_ref, y1p_ref, *, H, W):
    """x_ref:(1,M,Cin) f32 | w1:(Cin,Cm) bf16 | w2:(9*Cm,Cm) bf16 | w3:(Cm,Cout) bf16
    s*/b*:(1,C) f32 folded BN | o_ref:(1,M,Cout) | y1p_ref: padded conv1-out scratch."""
    M = H * W
    cmid = w1_ref.shape[1]
    base = ((W + 1 + 7) // 8) * 8            # 8-aligned front pad >= W+1 rows

    x = x_ref[0]                             # (M, Cin) f32 (also the residual)

    # ---- conv1 (1x1) + bn1 + relu : one MXU matmul, f32 accumulate ----
    y1 = jnp.dot(x.astype(jnp.bfloat16), w1_ref[...],
                 preferred_element_type=jnp.float32)
    y1 = jnp.maximum(y1 * s1_ref[...] + b1_ref[...], 0.0)        # (M, Cm) f32

    # ---- stash zero-padded, flattened conv1 output in VMEM scratch ----
    y1p_ref[...] = jnp.zeros_like(y1p_ref)
    y1p_ref[base:base + M, :] = y1

    # A flattened shift of +-1 column wraps across image rows at the left/right
    # borders; those taps must read zero instead of the neighbouring row.
    w_idx = lax.broadcasted_iota(jnp.int32, (M, 1), 0) % W
    not_left = w_idx != 0
    not_right = w_idx != (W - 1)

    # ---- build (M, 9*Cm) im2col operand from 9 shifted VMEM slices ----
    taps = []
    for dy in range(3):
        for dx in range(3):
            off = (dy - 1) * W + (dx - 1)
            t = y1p_ref[base + off:base + off + M, :]            # (M, Cm) f32
            if dx == 0:
                t = jnp.where(not_left, t, 0.0)
            elif dx == 2:
                t = jnp.where(not_right, t, 0.0)
            taps.append(t)
    im2col = jnp.concatenate(taps, axis=-1).astype(jnp.bfloat16)  # (M, 9*Cm)

    # ---- conv2 (3x3, stride=1, pad=1) + bn2 + relu : ONE K=9*Cm matmul ----
    y2 = jnp.dot(im2col, w2_ref[...], preferred_element_type=jnp.float32)
    y2 = jnp.maximum(y2 * s2_ref[...] + b2_ref[...], 0.0)        # (M, Cm) f32

    # ---- conv3 (1x1) + bn3 + residual add + relu ----
    y3 = jnp.dot(y2.astype(jnp.bfloat16), w3_ref[...],
                 preferred_element_type=jnp.float32)
    y3 = y3 * s3_ref[...] + b3_ref[...] + x                      # exact f32 residual
    o_ref[0] = jnp.maximum(y3, 0.0).astype(o_ref.dtype)


# ---------------------------------------------------------------------------
# Wrapper
# ---------------------------------------------------------------------------
def fold_bn(gamma, beta, mean, var):
    scale = gamma / jnp.sqrt(var + EPS)
    bias = beta - mean * scale
    return scale.astype(jnp.float32), bias.astype(jnp.float32)


def bottleneck_forward(x_nchw, params):
    """PyTorch-semantics forward (stride=1, downsample=None).  NCHW f32 in/out."""
    N, Cin, H, W = x_nchw.shape
    cmid = params["w1"].shape[1]
    Cout = params["w3"].shape[1]
    assert Cin == Cout, "downsample=None requires inplanes == planes * expansion"
    M = H * W
    assert M % 8 == 0

    # Layout glue: NCHW -> NHWC -> (N, H*W, C); channels map to the 128-lane axis.
    x2d = jnp.transpose(x_nchw, (0, 2, 3, 1)).reshape(N, M, Cin)

    s1, b1 = fold_bn(*params["bn1"])
    s2, b2 = fold_bn(*params["bn2"])
    s3, b3 = fold_bn(*params["bn3"])

    w1 = params["w1"].astype(jnp.bfloat16)                            # (Cin, Cm)
    w2 = params["w2"].reshape(9 * cmid, cmid).astype(jnp.bfloat16)    # tap-major
    w3 = params["w3"].astype(jnp.bfloat16)                            # (Cm, Cout)
    bn2d = lambda v: v.reshape(1, -1)

    base = ((W + 1 + 7) // 8) * 8
    rep = lambda n: (0, 0)                  # replicated weights / BN vectors

    out2d = pl.pallas_call(
        functools.partial(_bottleneck_kernel, H=H, W=W),
        out_shape=jax.ShapeDtypeStruct((N, M, Cout), x_nchw.dtype),
        grid=(N,),
        in_specs=[
            pl.BlockSpec((1, M, Cin), lambda n: (n, 0, 0)),
            pl.BlockSpec((Cin, cmid), rep),
            pl.BlockSpec((9 * cmid, cmid), rep),
            pl.BlockSpec((cmid, Cout), rep),
            pl.BlockSpec((1, cmid), rep),
            pl.BlockSpec((1, cmid), rep),
            pl.BlockSpec((1, cmid), rep),
            pl.BlockSpec((1, cmid), rep),
            pl.BlockSpec((1, Cout), rep),
            pl.BlockSpec((1, Cout), rep),
        ],
        out_specs=pl.BlockSpec((1, M, Cout), lambda n: (n, 0, 0)),
        scratch_shapes=[pltpu.VMEM((base + M + base, cmid), jnp.float32)],
        compiler_params=pltpu.CompilerParams(
            dimension_semantics=("parallel",)),
    )(x2d, w1, w2, w3, bn2d(s1), bn2d(b1), bn2d(s2), bn2d(b2),
      bn2d(s3), bn2d(b3))

    return jnp.transpose(out2d.reshape(N, H, W, Cout), (0, 3, 1, 2))


# ---------------------------------------------------------------------------
# References
# ---------------------------------------------------------------------------
def _bn_apply(y, p):
    g, b, m, v = p
    return (y - m) / jnp.sqrt(v + EPS) * g + b


def ref_forward_f32(x_nchw, params):
    """Pure-f32 JAX reference with exact PyTorch (inference-BN) semantics."""
    x = jnp.transpose(x_nchw, (0, 2, 3, 1)).astype(jnp.float32)
    out = jnp.einsum("nhwc,co->nhwo", x, params["w1"])
    out = jax.nn.relu(_bn_apply(out, params["bn1"]))
    out = lax.conv_general_dilated(
        out, params["w2"], window_strides=(1, 1), padding="SAME",
        dimension_numbers=("NHWC", "HWIO", "NHWC"))
    out = jax.nn.relu(_bn_apply(out, params["bn2"]))
    out = jnp.einsum("nhwc,co->nhwo", out, params["w3"])
    out = jax.nn.relu(_bn_apply(out, params["bn3"]) + x)
    return jnp.transpose(out, (0, 3, 1, 2))


def ref_forward_bf16(x_nchw, params):
    """Reference with the same bf16-matmul / f32-accumulate casts as the kernel."""
    bf = jnp.bfloat16
    x = jnp.transpose(x_nchw, (0, 2, 3, 1)).astype(jnp.float32)

    def bnf(y, p):
        s, b = fold_bn(*p)
        return y * s + b

    y1 = jnp.einsum("nhwc,co->nhwo", x.astype(bf), params["w1"].astype(bf),
                    preferred_element_type=jnp.float32)
    y1 = jax.nn.relu(bnf(y1, params["bn1"]))
    y2 = lax.conv_general_dilated(
        y1.astype(bf), params["w2"].astype(bf), window_strides=(1, 1),
        padding="SAME", dimension_numbers=("NHWC", "HWIO", "NHWC"),
        preferred_element_type=jnp.float32)
    y2 = jax.nn.relu(bnf(y2, params["bn2"]))
    y3 = jnp.einsum("nhwc,co->nhwo", y2.astype(bf), params["w3"].astype(bf),
                    preferred_element_type=jnp.float32)
    y3 = jax.nn.relu(bnf(y3, params["bn3"]) + x)
    return jnp.transpose(y3, (0, 3, 1, 2))


# ---------------------------------------------------------------------------
# Main
# ---------------------------------------------------------------------------
def make_params(key, inplanes, planes):
    ks = jax.random.split(key, 6)

    def bn_params(k, c):
        k1, k2, k3, k4 = jax.random.split(k, 4)
        gamma = 1.0 + 0.1 * jax.random.normal(k1, (c,), jnp.float32)
        beta = 0.1 * jax.random.normal(k2, (c,), jnp.float32)
        mean = 0.1 * jax.random.normal(k3, (c,), jnp.float32)
        var = jax.random.uniform(k4, (c,), jnp.float32, 0.5, 1.5)
        return (gamma, beta, mean, var)

    return {
        "w1": 0.1 * jax.random.normal(ks[0], (inplanes, planes), jnp.float32),
        "w2": 0.1 * jax.random.normal(ks[1], (3, 3, planes, planes), jnp.float32),
        "w3": 0.1 * jax.random.normal(ks[2], (planes, planes * 4), jnp.float32),
        "bn1": bn_params(ks[3], planes),
        "bn2": bn_params(ks[4], planes),
        "bn3": bn_params(ks[5], planes * 4),
    }


if __name__ == "__main__":
    key = jax.random.PRNGKey(0)
    k_x, k_p = jax.random.split(key)

    # Bottleneck with downsample=None requires inplanes == planes * expansion.
    planes = 16
    inplanes = planes * 4          # 64
    N, H, W = 2, 16, 16

    x = jax.random.normal(k_x, (N, inplanes, H, W), jnp.float32)   # NCHW
    params = make_params(k_p, inplanes, planes)

    out = jax.block_until_ready(bottleneck_forward(x, params))
    assert out.shape == (N, inplanes, H, W)

    # Check against a reference using the same bf16-matmul / f32-accumulate casts.
    ref_b = jax.block_until_ready(ref_forward_bf16(x, params))
    assert jnp.allclose(out, ref_b, rtol=2e-2, atol=2e-2), (
        float(jnp.max(jnp.abs(out - ref_b))))

    # Loose sanity check against the exact f32 PyTorch-semantics reference
    # (bf16 MXU matmuls introduce ~1e-2 absolute error at these magnitudes).
    ref_f = jax.block_until_ready(ref_forward_f32(x, params))
    assert jnp.allclose(out, ref_f, rtol=1e-1, atol=1e-1), (
        float(jnp.max(jnp.abs(out - ref_f))))

    print("KERNEL_OK")
</pallas_src>

<mosaic_0001>
module attributes {stable_mosaic.version = 11 : i64} {
  func.func @_bottleneck_kernel(%arg0: i32, %arg1: memref<1x256x64xf32, #tpu.memory_space<vmem>>, %arg2: memref<64x16xbf16, #tpu.memory_space<vmem>>, %arg3: memref<144x16xbf16, #tpu.memory_space<vmem>>, %arg4: memref<16x64xbf16, #tpu.memory_space<vmem>>, %arg5: memref<1x16xf32, #tpu.memory_space<vmem>>, %arg6: memref<1x16xf32, #tpu.memory_space<vmem>>, %arg7: memref<1x16xf32, #tpu.memory_space<vmem>>, %arg8: memref<1x16xf32, #tpu.memory_space<vmem>>, %arg9: memref<1x64xf32, #tpu.memory_space<vmem>>, %arg10: memref<1x64xf32, #tpu.memory_space<vmem>>, %arg11: memref<1x256x64xf32, #tpu.memory_space<vmem>>, %arg12: memref<304x16xf32, #tpu.memory_space<vmem>>) attributes {dimension_semantics = [#tpu.dimension_semantics<parallel>], iteration_bounds = array<i64: 2>, scalar_prefetch = 0 : i64, scratch_operands = 1 : i64, tpu.core_type = #tpu.core_type<tc>, window_params = [{transform_indices = @transform_0, window_bounds = array<i64: 1, 256, 64>}, {pipeline_mode = #tpu.pipeline_mode<synchronous>, transform_indices = @transform_1, window_bounds = array<i64: 64, 16>}, {pipeline_mode = #tpu.pipeline_mode<synchronous>, transform_indices = @transform_2, window_bounds = array<i64: 144, 16>}, {pipeline_mode = #tpu.pipeline_mode<synchronous>, transform_indices = @transform_3, window_bounds = array<i64: 16, 64>}, {pipeline_mode = #tpu.pipeline_mode<synchronous>, transform_indices = @transform_4, window_bounds = array<i64: 1, 16>}, {pipeline_mode = #tpu.pipeline_mode<synchronous>, transform_indices = @transform_5, window_bounds = array<i64: 1, 16>}, {pipeline_mode = #tpu.pipeline_mode<synchronous>, transform_indices = @transform_6, window_bounds = array<i64: 1, 16>}, {pipeline_mode = #tpu.pipeline_mode<synchronous>, transform_indices = @transform_7, window_bounds = array<i64: 1, 16>}, {pipeline_mode = #tpu.pipeline_mode<synchronous>, transform_indices = @transform_8, window_bounds = array<i64: 1, 64>}, {pipeline_mode = #tpu.pipeline_mode<synchronous>, transform_indices = @transform_9, window_bounds = array<i64: 1, 64>}, {transform_indices = @transform_10, window_bounds = array<i64: 1, 256, 64>}]} {
    %c0 = arith.constant 0 : index
    %c0_0 = arith.constant 0 : index
    %c0_1 = arith.constant 0 : index
    %0 = vector.load %arg1[%c0, %c0_0, %c0_1] : memref<1x256x64xf32, #tpu.memory_space<vmem>>, vector<1x256x64xf32>
    %1 = vector.shape_cast %0 : vector<1x256x64xf32> to vector<256x64xf32>
    %2 = arith.truncf %1 : vector<256x64xf32> to vector<256x64xbf16>
    %c0_2 = arith.constant 0 : index
    %c0_3 = arith.constant 0 : index
    %3 = vector.load %arg2[%c0_2, %c0_3] : memref<64x16xbf16, #tpu.memory_space<vmem>>, vector<64x16xbf16>
    %cst = arith.constant dense<0.000000e+00> : vector<256x16xf32>
    %4 = tpu.matmul %2, %3, %cst {dimension_numbers = #tpu.dot_dimension_numbers<[1], [0], [0], [1], [0, 0, 1, 1], [], []>} : vector<256x64xbf16>, vector<64x16xbf16>, vector<256x16xf32> -> vector<256x16xf32>
    %c0_4 = arith.constant 0 : index
    %c0_5 = arith.constant 0 : index
    %5 = vector.load %arg5[%c0_4, %c0_5] : memref<1x16xf32, #tpu.memory_space<vmem>>, vector<1x16xf32>
    %6 = vector.broadcast %5 : vector<1x16xf32> to vector<256x16xf32>
    %7 = arith.mulf %4, %6 : vector<256x16xf32>
    %c0_6 = arith.constant 0 : index
    %c0_7 = arith.constant 0 : index
    %8 = vector.load %arg6[%c0_6, %c0_7] : memref<1x16xf32, #tpu.memory_space<vmem>>, vector<1x16xf32>
    %9 = vector.broadcast %8 : vector<1x16xf32> to vector<256x16xf32>
    %10 = arith.addf %7, %9 : vector<256x16xf32>
    %cst_8 = arith.constant 0.000000e+00 : f32
    %11 = vector.broadcast %cst_8 : f32 to vector<256x16xf32>
    %12 = arith.maximumf %10, %11 : vector<256x16xf32>
    %cst_9 = arith.constant 0.000000e+00 : f32
    %13 = vector.broadcast %cst_9 : f32 to vector<304x16xf32>
    %c0_10 = arith.constant 0 : index
    %c0_11 = arith.constant 0 : index
    %14 = vector.load %arg12[%c0_10, %c0_11] : memref<304x16xf32, #tpu.memory_space<vmem>>, vector<304x16xf32>
    tpu.vector_store %arg12[%c0_10, %c0_11], %13 {strides = array<i32>} : memref<304x16xf32, #tpu.memory_space<vmem>>, vector<304x16xf32>,
    %c24 = arith.constant 24 : index
    %c0_12 = arith.constant 0 : index
    %15 = vector.load %arg12[%c24, %c0_12] : memref<304x16xf32, #tpu.memory_space<vmem>>, vector<256x16xf32>
    tpu.vector_store %arg12[%c24, %c0_12], %12 {strides = array<i32>} : memref<304x16xf32, #tpu.memory_space<vmem>>, vector<256x16xf32>,
    %16 = tpu.iota {dimensions = array<i32: 0>} : vector<256x1xi32>
    %c16_i32 = arith.constant 16 : i32
    %c0_i32 = arith.constant 0 : i32
    %17 = arith.cmpi eq, %c16_i32, %c0_i32 : i32
    %c1_i32 = arith.constant 1 : i32
    %18 = arith.select %17, %c1_i32, %c16_i32 : i32
    %19 = vector.broadcast %18 : i32 to vector<256x1xi32>
    %20 = arith.remsi %16, %19 : vector<256x1xi32>
    %c0_i32_13 = arith.constant 0 : i32
    %21 = vector.broadcast %c0_i32_13 : i32 to vector<256x1xi32>
    %22 = arith.cmpi ne, %20, %21 : vector<256x1xi32>
    %c0_i32_14 = arith.constant 0 : i32
    %23 = vector.broadcast %c0_i32_14 : i32 to vector<256x1xi32>
    %24 = arith.cmpi slt, %20, %23 : vector<256x1xi32>
    %c0_i32_15 = arith.constant 0 : i32
    %25 = arith.cmpi slt, %18, %c0_i32_15 : i32
    %26 = vector.broadcast %25 : i1 to vector<256x1xi1>
    %27 = vector.broadcast %26 : vector<256x1xi1> to vector<256x1xi1>
    %28 = arith.xori %24, %27 : vector<256x1xi1>
    %29 = arith.andi %28, %22 : vector<256x1xi1>
    %30 = vector.broadcast %18 : i32 to vector<256x1xi32>
    %31 = arith.addi %20, %30 : vector<256x1xi32>
    %32 = arith.select %29, %31, %20 : vector<256x1xi1>, vector<256x1xi32>
    %c0_i32_16 = arith.constant 0 : i32
    %33 = vector.broadcast %c0_i32_16 : i32 to vector<256x1xi32>
    %34 = arith.cmpi ne, %32, %33 : vector<256x1xi32>
    %c15_i32 = arith.constant 15 : i32
    %35 = vector.broadcast %c15_i32 : i32 to vector<256x1xi32>
    %36 = arith.cmpi ne, %32, %35 : vector<256x1xi32>
    %c7 = arith.constant 7 : index
    %c0_17 = arith.constant 0 : index
    %37 = vector.load %arg12[%c7, %c0_17] : memref<304x16xf32, #tpu.memory_space<vmem>>, vector<256x16xf32>
    %cst_18 = arith.constant 0.000000e+00 : f32
    %38 = vector.shape_cast %34 : vector<256x1xi1> to vector<256x1xi1>
    %39 = vector.broadcast %38 : vector<256x1xi1> to vector<256x16xi1>
    %40 = vector.broadcast %cst_18 : f32 to vector<256x16xf32>
    %41 = arith.select %39, %37, %40 : vector<256x16xi1>, vector<256x16xf32>
    %c8 = arith.constant 8 : index
    %c0_19 = arith.constant 0 : index
    %42 = vector.load %arg12[%c8, %c0_19] : memref<304x16xf32, #tpu.memory_space<vmem>>, vector<256x16xf32>
    %c9 = arith.constant 9 : index
    %c0_20 = arith.constant 0 : index
    %43 = vector.load %arg12[%c9, %c0_20] : memref<304x16xf32, #tpu.memory_space<vmem>>, vector<256x16xf32>
    %cst_21 = arith.constant 0.000000e+00 : f32
    %44 = vector.shape_cast %36 : vector<256x1xi1> to vector<256x1xi1>
    %45 = vector.broadcast %44 : vector<256x1xi1> to vector<256x16xi1>
    %46 = vector.broadcast %cst_21 : f32 to vector<256x16xf32>
    %47 = arith.select %45, %43, %46 : vector<256x16xi1>, vector<256x16xf32>
    %c23 = arith.constant 23 : index
    %c0_22 = arith.constant 0 : index
    %48 = vector.load %arg12[%c23, %c0_22] : memref<304x16xf32, #tpu.memory_space<vmem>>, vector<256x16xf32>
    %cst_23 = arith.constant 0.000000e+00 : f32
    %49 = vector.shape_cast %34 : vector<256x1xi1> to vector<256x1xi1>
    %50 = vector.broadcast %49 : vector<256x1xi1> to vector<256x16xi1>
    %51 = vector.broadcast %cst_23 : f32 to vector<256x16xf32>
    %52 = arith.select %50, %48, %51 : vector<256x16xi1>, vector<256x16xf32>
    %c24_24 = arith.constant 24 : index
    %c0_25 = arith.constant 0 : index
    %53 = vector.load %arg12[%c24_24, %c0_25] : memref<304x16xf32, #tpu.memory_space<vmem>>, vector<256x16xf32>
    %c25 = arith.constant 25 : index
    %c0_26 = arith.constant 0 : index
    %54 = vector.load %arg12[%c25, %c0_26] : memref<304x16xf32, #tpu.memory_space<vmem>>, vector<256x16xf32>
    %cst_27 = arith.constant 0.000000e+00 : f32
    %55 = vector.shape_cast %36 : vector<256x1xi1> to vector<256x1xi1>
    %56 = vector.broadcast %55 : vector<256x1xi1> to vector<256x16xi1>
    %57 = vector.broadcast %cst_27 : f32 to vector<256x16xf32>
    %58 = arith.select %56, %54, %57 : vector<256x16xi1>, vector<256x16xf32>
    %c39 = arith.constant 39 : index
    %c0_28 = arith.constant 0 : index
    %59 = vector.load %arg12[%c39, %c0_28] : memref<304x16xf32, #tpu.memory_space<vmem>>, vector<256x16xf32>
    %cst_29 = arith.constant 0.000000e+00 : f32
    %60 = vector.shape_cast %34 : vector<256x1xi1> to vector<256x1xi1>
    %61 = vector.broadcast %60 : vector<256x1xi1> to vector<256x16xi1>
    %62 = vector.broadcast %cst_29 : f32 to vector<256x16xf32>
    %63 = arith.select %61, %59, %62 : vector<256x16xi1>, vector<256x16xf32>
    %c40 = arith.constant 40 : index
    %c0_30 = arith.constant 0 : index
    %64 = vector.load %arg12[%c40, %c0_30] : memref<304x16xf32, #tpu.memory_space<vmem>>, vector<256x16xf32>
    %c41 = arith.constant 41 : index
    %c0_31 = arith.constant 0 : index
    %65 = vector.load %arg12[%c41, %c0_31] : memref<304x16xf32, #tpu.memory_space<vmem>>, vector<256x16xf32>
    %cst_32 = arith.constant 0.000000e+00 : f32
    %66 = vector.shape_cast %36 : vector<256x1xi1> to vector<256x1xi1>
    %67 = vector.broadcast %66 : vector<256x1xi1> to vector<256x16xi1>
    %68 = vector.broadcast %cst_32 : f32 to vector<256x16xf32>
    %69 = arith.select %67, %65, %68 : vector<256x16xi1>, vector<256x16xf32>
    %70 = tpu.concatenate %41, %42, %47, %52, %53, %58, %63, %64, %69 in 1 : vector<256x16xf32>, vector<256x16xf32>, vector<256x16xf32>, vector<256x16xf32>, vector<256x16xf32>, vector<256x16xf32>, vector<256x16xf32>, vector<256x16xf32>, vector<256x16xf32> -> vector<256x144xf32>
    %71 = arith.truncf %70 : vector<256x144xf32> to vector<256x144xbf16>
    %c0_33 = arith.constant 0 : index
    %c0_34 = arith.constant 0 : index
    %72 = vector.load %arg3[%c0_33, %c0_34] : memref<144x16xbf16, #tpu.memory_space<vmem>>, vector<144x16xbf16>
    %cst_35 = arith.constant dense<0.000000e+00> : vector<256x16xf32>
    %73 = tpu.matmul %71, %72, %cst_35 {dimension_numbers = #tpu.dot_dimension_numbers<[1], [0], [0], [1], [0, 0, 1, 1], [], []>} : vector<256x144xbf16>, vector<144x16xbf16>, vector<256x16xf32> -> vector<256x16xf32>
    %c0_36 = arith.constant 0 : index
    %c0_37 = arith.constant 0 : index
    %74 = vector.load %arg7[%c0_36, %c0_37] : memref<1x16xf32, #tpu.memory_space<vmem>>, vector<1x16xf32>
    %75 = vector.broadcast %74 : vector<1x16xf32> to vector<256x16xf32>
    %76 = arith.mulf %73, %75 : vector<256x16xf32>
    %c0_38 = arith.constant 0 : index
    %c0_39 = arith.constant 0 : index
    %77 = vector.load %arg8[%c0_38, %c0_39] : memref<1x16xf32, #tpu.memory_space<vmem>>, vector<1x16xf32>
    %78 = vector.broadcast %77 : vector<1x16xf32> to vector<256x16xf32>
    %79 = arith.addf %76, %78 : vector<256x16xf32>
    %cst_40 = arith.constant 0.000000e+00 : f32
    %80 = vector.broadcast %cst_40 : f32 to vector<256x16xf32>
    %81 = arith.maximumf %79, %80 : vector<256x16xf32>
    %82 = arith.truncf %81 : vector<256x16xf32> to vector<256x16xbf16>
    %c0_41 = arith.constant 0 : index
    %c0_42 = arith.constant 0 : index
    %83 = vector.load %arg4[%c0_41, %c0_42] : memref<16x64xbf16, #tpu.memory_space<vmem>>, vector<16x64xbf16>
    %cst_43 = arith.constant dense<0.000000e+00> : vector<256x64xf32>
    %84 = tpu.matmul %82, %83, %cst_43 {dimension_numbers = #tpu.dot_dimension_numbers<[1], [0], [0], [1], [0, 0, 1, 1], [], []>} : vector<256x16xbf16>, vector<16x64xbf16>, vector<256x64xf32> -> vector<256x64xf32>
    %c0_44 = arith.constant 0 : index
    %c0_45 = arith.constant 0 : index
    %85 = vector.load %arg9[%c0_44, %c0_45] : memref<1x64xf32, #tpu.memory_space<vmem>>, vector<1x64xf32>
    %86 = vector.broadcast %85 : vector<1x64xf32> to vector<256x64xf32>
    %87 = arith.mulf %84, %86 : vector<256x64xf32>
    %c0_46 = arith.constant 0 : index
    %c0_47 = arith.constant 0 : index
    %88 = vector.load %arg10[%c0_46, %c0_47] : memref<1x64xf32, #tpu.memory_space<vmem>>, vector<1x64xf32>
    %89 = vector.broadcast %88 : vector<1x64xf32> to vector<256x64xf32>
    %90 = arith.addf %87, %89 : vector<256x64xf32>
    %91 = arith.addf %90, %1 : vector<256x64xf32>
    %cst_48 = arith.constant 0.000000e+00 : f32
    %92 = vector.broadcast %cst_48 : f32 to vector<256x64xf32>
    %93 = arith.maximumf %91, %92 : vector<256x64xf32>
    %c0_49 = arith.constant 0 : index
    %c0_50 = arith.constant 0 : index
    %c0_51 = arith.constant 0 : index
    %94 = vector.load %arg11[%c0_49, %c0_50, %c0_51] : memref<1x256x64xf32, #tpu.memory_space<vmem>>, vector<1x256x64xf32>
    %95 = vector.shape_cast %94 : vector<1x256x64xf32> to vector<256x64xf32>
    %96 = vector.shape_cast %93 : vector<256x64xf32> to vector<1x256x64xf32>
    tpu.vector_store %arg11[%c0_49, %c0_50, %c0_51], %96 {strides = array<i32>} : memref<1x256x64xf32, #tpu.memory_space<vmem>>, vector<1x256x64xf32>,
    return
  }
  func.func @transform_0(%arg0: i32) -> (i32, i32, i32) {
    %c0_i32 = arith.constant 0 : i32
    %c0_i32_0 = arith.constant 0 : i32
    %c0_i32_1 = arith.constant 0 : i32
    return %arg0, %c0_i32, %c0_i32_0 : i32, i32, i32
  }
  func.func @transform_1(%arg0: i32) -> (i32, i32) {
    %c0_i32 = arith.constant 0 : i32
    %c0_i32_0 = arith.constant 0 : i32
    %c0_i32_1 = arith.constant 0 : i32
    return %c0_i32, %c0_i32_0 : i32, i32
  }
  func.func @transform_2(%arg0: i32) -> (i32, i32) {
    %c0_i32 = arith.constant 0 : i32
    %c0_i32_0 = arith.constant 0 : i32
    %c0_i32_1 = arith.constant 0 : i32
    return %c0_i32, %c0_i32_0 : i32, i32
  }
  func.func @transform_3(%arg0: i32) -> (i32, i32) {
    %c0_i32 = arith.constant 0 : i32
    %c0_i32_0 = arith.constant 0 : i32
    %c0_i32_1 = arith.constant 0 : i32
    return %c0_i32, %c0_i32_0 : i32, i32
  }
  func.func @transform_4(%arg0: i32) -> (i32, i32) {
    %c0_i32 = arith.constant 0 : i32
    %c0_i32_0 = arith.constant 0 : i32
    %c0_i32_1 = arith.constant 0 : i32
    return %c0_i32, %c0_i32_0 : i32, i32
  }
  func.func @transform_5(%arg0: i32) -> (i32, i32) {
    %c0_i32 = arith.constant 0 : i32
    %c0_i32_0 = arith.constant 0 : i32
    %c0_i32_1 = arith.constant 0 : i32
    return %c0_i32, %c0_i32_0 : i32, i32
  }
  func.func @transform_6(%arg0: i32) -> (i32, i32) {
    %c0_i32 = arith.constant 0 : i32
    %c0_i32_0 = arith.constant 0 : i32
    %c0_i32_1 = arith.constant 0 : i32
    return %c0_i32, %c0_i32_0 : i32, i32
  }
  func.func @transform_7(%arg0: i32) -> (i32, i32) {
    %c0_i32 = arith.constant 0 : i32
    %c0_i32_0 = arith.constant 0 : i32
    %c0_i32_1 = arith.constant 0 : i32
    return %c0_i32, %c0_i32_0 : i32, i32
  }
  func.func @transform_8(%arg0: i32) -> (i32, i32) {
    %c0_i32 = arith.constant 0 : i32
    %c0_i32_0 = arith.constant 0 : i32
    %c0_i32_1 = arith.constant 0 : i32
    return %c0_i32, %c0_i32_0 : i32, i32
  }
  func.func @transform_9(%arg0: i32) -> (i32, i32) {
    %c0_i32 = arith.constant 0 : i32
    %c0_i32_0 = arith.constant 0 : i32
    %c0_i32_1 = arith.constant 0 : i32
    return %c0_i32, %c0_i32_0 : i32, i32
  }
  func.func @transform_10(%arg0: i32) -> (i32, i32, i32) {
    %c0_i32 = arith.constant 0 : i32
    %c0_i32_0 = arith.constant 0 : i32
    %c0_i32_1 = arith.constant 0 : i32
    return %arg0, %c0_i32, %c0_i32_0 : i32, i32, i32
  }
}

</mosaic_0001>

<bundles_post_ra>
// kernel: tpu_custom_call.1
= control target key start
LH: loop header
LB: loop body
LE: loop exit
PB: predicated region body
PF: predicated region fallthrough
CT: control target
= control target key end

     0   :  { %s4605_s13 = smov 0   ;;  %s6479_s0 = inlined_call_operand.vmem [shape: f32[2,256,64], index: 0, kind: input, shape index: {}]   ;;  %s6480_s1 = inlined_call_operand.vmem [shape: bf16[64,16], index: 1, kind: input, shape index: {}]   ;;  %s6481_s2 = inlined_call_operand.vmem [shape: bf16[144,16], index: 2, kind: input, shape index: {}]   ;;  %s6482_s3 = inlined_call_operand.vmem [shape: bf16[16,64], index: 3, kind: input, shape index: {}]   ;;  %s6483_s4 = inlined_call_operand.vmem [shape: f32[1,16], index: 4, kind: input, shape index: {}]   ;;  %s6484_s5 = inlined_call_operand.vmem [shape: f32[1,16], index: 5, kind: input, shape index: {}]   ;;  %s6485_s6 = inlined_call_operand.vmem [shape: f32[1,16], index: 6, kind: input, shape index: {}]   ;;  %s6486_s7 = inlined_call_operand.vmem [shape: f32[1,16], index: 7, kind: input, shape index: {}]   ;;  %s6487_s8 = inlined_call_operand.vmem [shape: f32[1,64], index: 8, kind: input, shape index: {}]   ;;  %s6488_s9 = inlined_call_operand.vmem [shape: f32[1,64], index: 9, kind: input, shape index: {}]   ;;  %s6489_s10 = inlined_call_operand.vmem [shape: f32[2,256,64], index: 10, kind: output, shape index: {}]  }
   0x1 LB: > { %s3691_s14 = sadd.s32 4294967295, %s4539_s13   ;;  %p3695_p0 = scmp.ge.s32.totalorder %s4539_s13, 1  ;;  %s4539_s13 = sphi %s4605_s13, %s20_s13  }
   0x2   : > { %p312_p1 = scmp.lt.s32.totalorder %s4539_s13, 3 }
   0x4   : > { %p313_p2 = pnand %p3695_p0, %p312_p1 }
   0x6   : > { %316 = sbr.rel (%p313_p2) target bundleno = 1048 (0x418), region = 60 }
   0xd   : > { %v4478_v0 = vld [vmem:[%s6480_s1] sm:$0xff]   ;;  %p350_p3 = scmp.lt.s32.totalorder %s3691_s14, 1  ;;  %v4479_v1 = vld [vmem:[%s6480_s1 + $0x8] sm:$0xff]   ;;  %v4480_v2 = vld [vmem:[%s6480_s1 + $0x10] sm:$0xff]   ;;  %vm6490_vm0 = vcmask 523264   ;;  %vm6491_vm1 = vcmask 130048   ;;  %v832_v56 = vlaneseq }
   0xe   : > { %3809 = vmatprep.subr.bf16.mxu0 %v4478_v0  ;;  %v4481_v6 = vld [vmem:[%s6480_s1 + $0x18] sm:$0xff]   ;;  %v4541_v52 = vmov 0.0   ;;  %s4542_s27 = smov 16   ;;  %v4725_v57 = vld [vmem:[%s6483_s4] ss:$0 sm:$0xff]  ;;  %s4544_s18 = smov 64  }
   0xf   : > { %s6974_s14 = smov (!%p350_p3, %s3691_s14), 1  ;;  %3810 = vmatpush3.bf16.msra.mxu0 %v4478_v0  ;;  %767 = vst.msk [vmem:[#allocation2 + $0x28] sm:$0xff] %vm6491_vm1, %v4541_v52  ;;  %762 = vst.msk [vmem:[#allocation2] sm:$0xff] %vm6491_vm1, %v4541_v52  ;;  %v4730_v59 = vld [vmem:[%s6484_s5] ss:$0 sm:$0xff]  ;;  %v4733_v62 = vshrl.u32 %v832_v56, 7 }
  0x10   : > { %3811 = vmatprep.subr.bf16.mxu0 %v4479_v1  ;;  %s3770_s21 = sshll.u32 %s6974_s14, 8  ;;  %763 = vst.msk [vmem:[#allocation2 + $0x8] sm:$0xff] %vm6491_vm1, %v4541_v52  ;;  %764 = vst.msk [vmem:[#allocation2 + $0x10] sm:$0xff] %vm6491_vm1, %v4541_v52  ;;  %s4545_s25 = smov 32  }
  0x11   : > { %s4630_s24 = scalar_lea.vmem %s6479_s0, %s3770_s21  ;;  %765 = vst.msk [vmem:[#allocation2 + $0x18] sm:$0xff] %vm6491_vm1, %v4541_v52  ;;  %766 = vst.msk [vmem:[#allocation2 + $0x20] sm:$0xff] %vm6491_vm1, %v4541_v52  ;;  %s4546_s29 = smov 80  }
  0x12   : > { %v361_v3 = vld [vmem:[%s4630_s24] sm:$0xff]  ;;  %v362_v4 = vld [vmem:[%s4630_s24 + $0x8] sm:$0xff]  ;;  %v363_v7 = vld [vmem:[%s4630_s24 + $0x10] sm:$0xff]  ;;  %768 = vst.msk [vmem:[#allocation2 + $0x30] sm:$0xff] %vm6491_vm1, %v4541_v52  ;;  %s4547_s12 = smov 112   ;;  %s4548_s15 = smov 48  }
  0x13   : > { %3812 = vmatpush3.bf16.msra.mxu0 %v4479_v1  ;;  %v393_v5 = vpack.c.bf16 %v362_v4, %v361_v3  ;;  %v364_v8 = vld [vmem:[%s4630_s24 + $0x18] sm:$0xff]  ;;  %v365_v9 = vld [vmem:[%s4630_s24 + $0x20] sm:$0xff]  ;;  %v366_v10 = vld [vmem:[%s4630_s24 + $0x28] sm:$0xff]  ;;  %769 = vst.msk [vmem:[#allocation2 + $0x38] sm:$0xff] %vm6491_vm1, %v4541_v52  ;;  %s4549_s26 = smov 96   ;;  %s6322_s20 = scalar_lea.vmem %s6489_s10, %s3770_s21 }
  0x14   : > { %3813 = vmatprep.subr.bf16.mxu0 %v4480_v2  ;;  %v394_v11 = vpack.c.bf16 %v364_v8, %v363_v7  ;;  %v395_v12 = vpack.c.bf16 %v366_v10, %v365_v9  ;;  %v367_v13 = vld [vmem:[%s4630_s24 + $0x30] sm:$0xff]  ;;  %v368_v14 = vld [vmem:[%s4630_s24 + $0x38] sm:$0xff]  ;;  %v369_v15 = vld [vmem:[%s4630_s24 + $0x40] sm:$0xff]  ;;  %770 = vst.msk [vmem:[#allocation2 + $0x40] sm:$0xff] %vm6491_vm1, %v4541_v52  ;;  %v835_v8 = vadd.s32 16, %v4733_v62 }
  0x15   : > { %3817 = vmatprep.mubr.msk.bf16.mxu0 %vm6490_vm0, %v393_v5  ;;  %v370_v16 = vld [vmem:[%s4630_s24 + $0x48] sm:$0xff]  ;;  %v396_v17 = vpack.c.bf16 %v368_v14, %v367_v13  ;;  %v371_v19 = vld [vmem:[%s4630_s24 + $0x50] sm:$0xff]  ;;  %v372_v20 = vld [vmem:[%s4630_s24 + $0x58] sm:$0xff]  ;;  %771 = vst.msk [vmem:[#allocation2 + $0x48] sm:$0xff] %vm6491_vm1, %v4541_v52 }
  0x16   : > { %v397_v18 = vpack.c.bf16 %v370_v16, %v369_v15  ;;  %v373_v21 = vld [vmem:[%s4630_s24 + $0x60] sm:$0xff]  ;;  %v374_v22 = vld [vmem:[%s4630_s24 + $0x68] sm:$0xff]  ;;  %v398_v23 = vpack.c.bf16 %v372_v20, %v371_v19  ;;  %v375_v25 = vld [vmem:[%s4630_s24 + $0x70] sm:$0xff]  ;;  %772 = vst.msk [vmem:[#allocation2 + $0x50] sm:$0xff] %vm6491_vm1, %v4541_v52 }
  0x17   : > { %3814 = vmatpush3.bf16.msra.mxu0 %v4480_v2  ;;  %v399_v24 = vpack.c.bf16 %v374_v22, %v373_v21  ;;  %v376_v26 = vld [vmem:[%s4630_s24 + $0x78] sm:$0xff]  ;;  %v377_v27 = vld [vmem:[%s4630_s24 + $0x80] sm:$0xff]  ;;  %v378_v28 = vld [vmem:[%s4630_s24 + $0x88] sm:$0xff]  ;;  %773 = vst.msk [vmem:[#allocation2 + $0x58] sm:$0xff] %vm6491_vm1, %v4541_v52  ;;  %v834_v21 = vadd.s32 8, %v4733_v62  ;;  %v837_v22 = vadd.s32 32, %v4733_v62 }
  0x18   : > { %3815 = vmatprep.subr.bf16.mxu0 %v4481_v6  ;;  %v400_v29 = vpack.c.bf16 %v376_v26, %v375_v25  ;;  %v401_v30 = vpack.c.bf16 %v378_v28, %v377_v27  ;;  %v379_v31 = vld [vmem:[%s4630_s24 + $0x90] sm:$0xff]  ;;  %v380_v32 = vld [vmem:[%s4630_s24 + $0x98] sm:$0xff]  ;;  %v381_v33 = vld [vmem:[%s4630_s24 + $0xa0] sm:$0xff]  ;;  %774 = vst.msk [vmem:[#allocation2 + $0x60] sm:$0xff] %vm6491_vm1, %v4541_v52 }
  0x19   : > { %v382_v34 = vld [vmem:[%s4630_s24 + $0xa8] sm:$0xff]  ;;  %v402_v35 = vpack.c.bf16 %v380_v32, %v379_v31  ;;  %v383_v37 = vld [vmem:[%s4630_s24 + $0xb0] sm:$0xff]  ;;  %v384_v38 = vld [vmem:[%s4630_s24 + $0xb8] sm:$0xff]  ;;  %775 = vst.msk [vmem:[#allocation2 + $0x68] sm:$0xff] %vm6491_vm1, %v4541_v52  ;;  %v6542_v32 = vmov 0 }
  0x1a   : > { %v403_v36 = vpack.c.bf16 %v382_v34, %v381_v33  ;;  %v385_v39 = vld [vmem:[%s4630_s24 + $0xc0] sm:$0xff]  ;;  %v386_v40 = vld [vmem:[%s4630_s24 + $0xc8] sm:$0xff]  ;;  %v404_v41 = vpack.c.bf16 %v384_v38, %v383_v37  ;;  %v387_v43 = vld [vmem:[%s4630_s24 + $0xd0] sm:$0xff]  ;;  %776 = vst.msk [vmem:[#allocation2 + $0x70] sm:$0xff] %vm6491_vm1, %v4541_v52  ;;  %v897_v37 = vand.u32 15, %v837_v22 }
  0x1b   : > { %3816 = vmatpush3.bf16.msra.mxu0 %v4481_v6  ;;  %v405_v42 = vpack.c.bf16 %v386_v40, %v385_v39  ;;  %v388_v44 = vld [vmem:[%s4630_s24 + $0xd8] sm:$0xff]  ;;  %v389_v45 = vld [vmem:[%s4630_s24 + $0xe0] sm:$0xff]  ;;  %v390_v46 = vld [vmem:[%s4630_s24 + $0xe8] sm:$0xff]  ;;  %777 = vst.msk [vmem:[#allocation2 + $0x78] sm:$0xff] %vm6491_vm1, %v4541_v52  ;;  %v838_v40 = vadd.s32 40, %v4733_v62 }
  0x1c   : > { %v406_v47 = vpack.c.bf16 %v388_v44, %v387_v43  ;;  %v407_v48 = vpack.c.bf16 %v390_v46, %v389_v45  ;;  %v391_v49 = vld [vmem:[%s4630_s24 + $0xf0] sm:$0xff]  ;;  %v392_v50 = vld [vmem:[%s4630_s24 + $0xf8] sm:$0xff]  ;;  %778 = vst.msk [vmem:[#allocation2 + $0x80] sm:$0xff] %vm6491_vm1, %v4541_v52  ;;  %779 = vst.msk [vmem:[#allocation2 + $0x88] sm:$0xff] %vm6491_vm1, %v4541_v52  ;;  %vm4800_vm5 = vcmp.ne.s32.totalorder %v897_v37, 0 }
  0x1d   : > { %v408_v51 = vpack.c.bf16 %v392_v50, %v391_v49  ;;  %780 = vst.msk [vmem:[#allocation2 + $0x90] sm:$0xff] %vm6491_vm1, %v4541_v52  ;;  %781 = vst.msk [vmem:[#allocation2 + $0x98] sm:$0xff] %vm6491_vm1, %v4541_v52  ;;  %v1441_v53 = vld [vmem:[#allocation2 + $0x8] sm:$0xff]  ;;  %v1442_v54 = vld [vmem:[#allocation2 + $0x10] sm:$0xff] }
  0x1e   : > { %3818 = vmatmul.mubr.msk.bf16.vlgmr.msra.gmra.mrb[0].mxu0 %vm6490_vm0, %v394_v11  ;;  %782 = vst.msk [vmem:[#allocation2 + $0xa0] sm:$0xff] %vm6491_vm1, %v4541_v52  ;;  %783 = vst.msk [vmem:[#allocation2 + $0xa8] sm:$0xff] %vm6491_vm1, %v4541_v52  ;;  %v3918_v55 = vpack.i.bf16 %v1442_v54, %v1441_v53  ;;  %v4483_v33 = vld [vmem:[%s6481_s2 + $0x8] sm:$0xff]  }
  0x1f   : > { %3821 = vmatprep.mubr.msk.bf16.mxu0 %vm6490_vm0, %v395_v12  ;;  %784 = vst.msk [vmem:[#allocation2 + $0xb0] sm:$0xff] %vm6491_vm1, %v4541_v52  ;;  %785 = vst.msk [vmem:[#allocation2 + $0xb8] sm:$0xff] %vm6491_vm1, %v4541_v52  ;;  %v836_v12 = vadd.s32 24, %v4733_v62 }
  0x20   : > { %786 = vst.msk [vmem:[#allocation2 + $0xc0] sm:$0xff] %vm6491_vm1, %v4541_v52  ;;  %787 = vst.msk [vmem:[#allocation2 + $0xc8] sm:$0xff] %vm6491_vm1, %v4541_v52  ;;  %3919 = vrot.lane.b32.xlu1 %v3918_v55, %s4542_s27 }
  0x21   : > { %788 = vst.msk [vmem:[#allocation2 + $0xd0] sm:$0xff] %vm6491_vm1, %v4541_v52  ;;  %789 = vst.msk [vmem:[#allocation2 + $0xd8] sm:$0xff] %vm6491_vm1, %v4541_v52  ;;  %v890_v27 = vand.u32 15, %v836_v12 }
  0x22   : > { %790 = vst.msk [vmem:[#allocation2 + $0xe0] sm:$0xff] %vm6491_vm1, %v4541_v52  ;;  %791 = vst.msk [vmem:[#allocation2 + $0xe8] sm:$0xff] %vm6491_vm1, %v4541_v52 }
  0x23   : > { %792 = vst.msk [vmem:[#allocation2 + $0xf0] sm:$0xff] %vm6491_vm1, %v4541_v52  ;;  %793 = vst.msk [vmem:[#allocation2 + $0xf8] sm:$0xff] %vm6491_vm1, %v4541_v52  ;;  %vm4773_vm3 = vcmp.ne.s32.totalorder %v890_v27, 15 }
  0x24   : > { %794 = vst.msk [vmem:[#allocation2 + $0x100] sm:$0xff] %vm6491_vm1, %v4541_v52  ;;  %795 = vst.msk [vmem:[#allocation2 + $0x108] sm:$0xff] %vm6491_vm1, %v4541_v52 }
  0x25   : > { %796 = vst.msk [vmem:[#allocation2 + $0x110] sm:$0xff] %vm6491_vm1, %v4541_v52  ;;  %797 = vst.msk [vmem:[#allocation2 + $0x118] sm:$0xff] %vm6491_vm1, %v4541_v52 }
  0x26   : > { %3822 = vmatmul.mubr.msk.bf16.gmra.mrb[4].mxu0 %vm6490_vm0, %v396_v17  ;;  %798 = vst.msk [vmem:[#allocation2 + $0x120] sm:$0xff] %vm6491_vm1, %v4541_v52  ;;  %799 = vst.msk [vmem:[#allocation2 + $0x128] sm:$0xff] %vm6491_vm1, %v4541_v52  ;;  %v883_v17 = vand.u32 15, %v835_v8  ;;  %v869_v8 = vand.u32 15, %v4733_v62 }
  0x27   : > { %3825 = vmatprep.mubr.msk.bf16.mxu0 %vm6490_vm0, %v397_v18  ;;  %v4482_v18 = vld [vmem:[%s6481_s2] sm:$0xff]  }
  0x28   : > { %vm4764_vm2 = vcmp.ne.s32.totalorder %v883_v17, 0  ;;  %v1473_v17 = vld [vmem:[#allocation2 + $0x9] sm:$0xff]  ;;  %vm4860_vm7 = vcmp.ne.s32.totalorder %v869_v8, 0 }
  0x29   : > { %v6543_v32 = vsel %vm4764_vm2, 4294967295, %v6542_v32 }
  0x2e   : > { %3826 = vmatmul.mubr.msk.bf16.gmra.mrb[8].mxu0 %vm6490_vm0, %v398_v23  ;;  %v4543_v23 = vmov 0  }
  0x2f   : > { %3829 = vmatprep.mubr.msk.bf16.mxu0 %vm6490_vm0, %v399_v24  ;;  %2958 = vmatprep.subr.bf16.mxu0 %v4543_v23 }
  0x30   : > { %3883 = vmatprep.subr.bf16.mxu1 %v4543_v23  ;;  %2959 = vmatpush1.bf16.msra.mxu0 %v4482_v18 }
  0x31   : > { %3892 = vmatpush1.bf16.msra.mxu1 %v4482_v18  ;;  %2960 = vmatprep.subr.bf16.mxu0 %v4543_v23 }
  0x32   : > { %3884 = vmatprep.subr.bf16.mxu1 %v4543_v23 }
  0x34   : > { %2961 = vmatpush1.bf16.msra.mxu0 %v4483_v33 }
  0x35   : > { %3893 = vmatpush1.bf16.msra.mxu1 %v4483_v33  ;;  %2962 = vmatprep.subr.bf16.mxu0 %v4543_v23 }
  0x36   : > { %3830 = vmatmul.mubr.msk.bf16.gmra.mrb[12].mxu0 %vm6490_vm0, %v400_v29  ;;  %3885 = vmatprep.subr.bf16.mxu1 %v4543_v23 }
  0x37   : > { %3833 = vmatprep.mubr.msk.bf16.mxu0 %vm6490_vm0, %v401_v30 }
  0x3e   : > { %3834 = vmatmul.mubr.msk.bf16.gmra.mrb[16].mxu0 %vm6490_vm0, %v402_v35 }
  0x3f   : > { %3837 = vmatprep.mubr.msk.bf16.mxu0 %vm6490_vm0, %v403_v36  ;;  %v876_v36 = vand.u32 15, %v834_v21 }
  0x41   : > { %vm4796_vm4 = vcmp.ne.s32.totalorder %v876_v36, 15 }
  0x46   : > { %3838 = vmatmul.mubr.msk.bf16.gmra.mrb[20].mxu0 %vm6490_vm0, %v404_v41 }
  0x47   : > { %3841 = vmatprep.mubr.msk.bf16.mxu0 %vm6490_vm0, %v405_v42 }
  0x4e   : > { %3842 = vmatmul.mubr.msk.bf16.gmra.mrb[24].mxu0 %vm6490_vm0, %v406_v47 }
  0x4f   : > { %3845 = vmatprep.mubr.msk.bf16.mxu0 %vm6490_vm0, %v407_v48 }
  0x56   : > { %3846 = vmatmul.mubr.msk.bf16.gmra.mrb[28].mxu0 %vm6490_vm0, %v408_v51 }
  0xf1   : > { %v3819_v58 = vpop.f32.mrb[0].mxu0 }
  0xf2   : > { %v660_v60 = vmul.f32 %v3819_v58, %v4725_v57  ;;  %v524_v61 = vpop.f32.mrb[1].mxu0 }
  0xf3   : > { %v658_v63 = vmul.f32 %v4725_v57, %v524_v61  ;;  %v3820_v0 = vpop.f32.mrb[2].mxu0 }
  0xf4   : > { %v699_v1 = vadd.f32 %v4730_v59, %v660_v60  ;;  %v661_v2 = vmul.f32 %v3820_v0, %v4725_v57  ;;  %v527_v3 = vpop.f32.mrb[3].mxu0  ;;  %v6548_v60 = vmov 0 }
  0xf5   : > { %v697_v4 = vadd.f32 %v4730_v59, %v658_v63  ;;  %v659_v5 = vmul.f32 %v4725_v57, %v527_v3  ;;  %v6549_v60 = vsel %vm4800_vm5, 4294967295, %v6548_v60  ;;  %v904_v3 = vand.u32 15, %v838_v40 }
  0xf6   : > { %v731_v6 = vmax.f32 %v699_v1, 0.0  ;;  %v700_v7 = vadd.f32 %v4730_v59, %v661_v2 }
  0xf7   : > { %v729_v9 = vmax.f32 %v697_v4, 0.0  ;;  %v698_v10 = vadd.f32 %v4730_v59, %v659_v5  ;;  %v4484_v5 = vld [vmem:[%s6481_s2 + $0x10] sm:$0xff]   ;;  %vm4840_vm6 = vcmp.ne.s32.totalorder %v904_v3, 15 }
  0xf8   : > { %802 = vst.msk [vmem:[#allocation2 + $0x28] sm:$0xff] %vm6491_vm1, %v731_v6  ;;  %v732_v11 = vmax.f32 %v700_v7, 0.0  ;;  %2963 = vmatpush1.bf16.msra.mxu0 %v4484_v5  ;;  %3894 = vmatpush1.bf16.msra.mxu1 %v4484_v5 }
  0xf9   : > { %800 = vst.msk [vmem:[#allocation2 + $0x18] sm:$0xff] %vm6491_vm1, %v729_v9  ;;  %v730_v13 = vmax.f32 %v698_v10, 0.0  ;;  %v3823_v14 = vpop.f32.mrb[4].mxu0  ;;  %v839_v9 = vadd.s32 48, %v4733_v62  ;;  %2964 = vmatprep.subr.bf16.mxu0 %v4543_v23  ;;  %3886 = vmatprep.subr.bf16.mxu1 %v4543_v23 }
  0xfa   : > { %803 = vst.msk [vmem:[#allocation2 + $0x30] sm:$0xff] %vm6491_vm1, %v732_v11  ;;  %v664_v15 = vmul.f32 %v3823_v14, %v4725_v57  ;;  %v540_v16 = vpop.f32.mrb[5].mxu0 }
  0xfb   : > { %801 = vst.msk [vmem:[#allocation2 + $0x20] sm:$0xff] %vm6491_vm1, %v730_v13  ;;  %v662_v19 = vmul.f32 %v4725_v57, %v540_v16  ;;  %v3824_v20 = vpop.f32.mrb[6].mxu0  ;;  %v4485_v13 = vld [vmem:[%s6481_s2 + $0x18] sm:$0xff]  }
  0xfc   : > { %v703_v24 = vadd.f32 %v4730_v59, %v664_v15  ;;  %v665_v25 = vmul.f32 %v3824_v20, %v4725_v57  ;;  %v543_v26 = vpop.f32.mrb[7].mxu0  ;;  %2965 = vmatpush1.bf16.msra.mxu0 %v4485_v13  ;;  %3895 = vmatpush1.bf16.msra.mxu1 %v4485_v13 }
  0xfd   : > { %v701_v28 = vadd.f32 %v4730_v59, %v662_v19  ;;  %v663_v29 = vmul.f32 %v4725_v57, %v543_v26  ;;  %2966 = vmatprep.subr.bf16.mxu0 %v4543_v23  ;;  %3887 = vmatprep.subr.bf16.mxu1 %v4543_v23 }
  0xfe   : > { %v735_v30 = vmax.f32 %v703_v24, 0.0  ;;  %v704_v31 = vadd.f32 %v4730_v59, %v665_v25 }
  0xff   : > { %v733_v34 = vmax.f32 %v701_v28, 0.0  ;;  %v702_v35 = vadd.f32 %v4730_v59, %v663_v29  ;;  %v1445_v44 = vld [vmem:[#allocation2 + $0x28] sm:$0xff]  ;;  %v911_v28 = vand.u32 15, %v839_v9 }
 0x100   : > { %806 = vst.msk [vmem:[#allocation2 + $0x48] sm:$0xff] %vm6491_vm1, %v735_v30  ;;  %v736_v38 = vmax.f32 %v704_v31, 0.0  ;;  %v4778_v41 = vld [vmem:[#allocation2 + $0x17] sm:$0xff] }
 0x101   : > { %804 = vst.msk [vmem:[#allocation2 + $0x38] sm:$0xff] %vm6491_vm1, %v733_v34  ;;  %v734_v42 = vmax.f32 %v702_v35, 0.0  ;;  %v3827_v43 = vpop.f32.mrb[8].mxu0  ;;  %v1446_v45 = vld [vmem:[#allocation2 + $0x30] sm:$0xff]  ;;  %v1443_v50 = vld [vmem:[#allocation2 + $0x18] sm:$0xff]  ;;  %vm4879_vm8 = vcmp.ne.s32.totalorder %v911_v28, 0 }
 0x102   : > { %807 = vst.msk [vmem:[#allocation2 + $0x50] sm:$0xff] %vm6491_vm1, %v736_v38  ;;  %v668_v47 = vmul.f32 %v3827_v43, %v4725_v57  ;;  %v556_v48 = vpop.f32.mrb[9].mxu0  ;;  %v4788_v49 = vpack.i.bf16 %v1446_v45, %v1445_v44  ;;  %v1444_v51 = vld [vmem:[#allocation2 + $0x20] sm:$0xff]  ;;  %v1474_v58 = vld [vmem:[#allocation2 + $0x11] sm:$0xff]  ;;  %v1477_v24 = vld [vmem:[#allocation2 + $0x29] sm:$0xff]  ;;  %v6552_v38 = vmov 0 }
 0x103   : > { %v4790_v52 = vld [vmem:[#allocation2 + $0x21] sm:$0xff]  ;;  %805 = vst.msk [vmem:[#allocation2 + $0x40] sm:$0xff] %vm6491_vm1, %v734_v42  ;;  %v666_v53 = vmul.f32 %v4725_v57, %v556_v48  ;;  %v3828_v54 = vpop.f32.mrb[10].mxu0  ;;  %v4794_v55 = vpack.i.bf16 %v1444_v51, %v1443_v50  ;;  %v4808_v1 = vld [vmem:[#allocation2 + $0x19] sm:$0xff]  ;;  %v1570_v12 = vsel %vm4796_vm4, %v1474_v58, 0.0  ;;  %v6553_v38 = vsel %vm4860_vm7, 4294967295, %v6552_v38 }
 0x104   : > { %v707_v61 = vadd.f32 %v4730_v59, %v668_v47  ;;  %v669_v63 = vmul.f32 %v3828_v54, %v4725_v57  ;;  %3924 = vrot.lane.b32.xlu1 %v4788_v49, %s4544_s18  ;;  %v559_v0 = vpop.f32.mrb[11].mxu0  ;;  %v1572_v2 = vsel %vm4773_vm3, %v4790_v52, 0.0  ;;  %v4813_v4 = vld [vmem:[#allocation2 + $0x27] sm:$0xff]  ;;  %v3933_v29 = vpack.i.bf16 %v1570_v12, %v1473_v17 }
 0x105   : > { %v705_v6 = vadd.f32 %v4730_v59, %v666_v53  ;;  %v667_v7 = vmul.f32 %v4725_v57, %v559_v0  ;;  %3944 = vrot.lane.b32.xlu0 %v4794_v55, %s4542_s27  ;;  %v3958_v16 = vpack.i.bf16 %v1572_v2, %v4808_v1  ;;  %v4486_v48 = vld [vmem:[%s6481_s2 + $0x20] sm:$0xff]   ;;  %v1603_v3 = vsel %vm4860_vm7, %v4778_v41, 0.0 }
 0x106   : > { %v739_v10 = vmax.f32 %v707_v61, 0.0  ;;  %v708_v11 = vadd.f32 %v4730_v59, %v669_v63  ;;  %2967 = vmatpush1.bf16.msra.mxu0 %v4486_v48  ;;  %v4487_v63 = vld [vmem:[%s6481_s2 + $0x28] sm:$0xff]   ;;  %v1316_v2 = vld [vmem:[#allocation2 + $0x1f] sm:$0xff]  ;;  %3896 = vmatpush1.bf16.msra.mxu1 %v4486_v48 }
 0x107   : > { %v737_v14 = vmax.f32 %v705_v6, 0.0  ;;  %v706_v15 = vadd.f32 %v4730_v59, %v667_v7  ;;  %2968 = vmatprep.subr.bf16.mxu0 %v4543_v23  ;;  %3888 = vmatprep.subr.bf16.mxu1 %v4543_v23  ;;  %v3948_v12 = vpack.i.bf16 %v1316_v2, %v1603_v3 }
 0x108   : > { %810 = vst.msk [vmem:[#allocation2 + $0x68] sm:$0xff] %vm6491_vm1, %v739_v10  ;;  %v740_v19 = vmax.f32 %v708_v11, 0.0  ;;  %3929 = vrot.lane.b32.xlu1 %v4788_v49, %s4542_s27  ;;  %v1478_v20 = vld [vmem:[#allocation2 + $0x31] sm:$0xff] }
 0x109   : > { %808 = vst.msk [vmem:[#allocation2 + $0x58] sm:$0xff] %vm6491_vm1, %v737_v14  ;;  %v738_v22 = vmax.f32 %v706_v15, 0.0  ;;  %3959 = vrot.lane.b32.xlu0 %v3958_v16, %s4545_s25  ;;  %v1710_v25 = vsel %vm4796_vm4, %v1478_v20, 0.0  ;;  %v1642_v26 = vsel %vm4773_vm3, %v1478_v20, 0.0  ;;  %v3831_v27 = vpop.f32.mrb[12].mxu0  ;;  %v1574_v39 = vsel %vm4840_vm6, %v1478_v20, 0.0 }
 0x10a   : > { %811 = vst.msk [vmem:[#allocation2 + $0x70] sm:$0xff] %vm6491_vm1, %v740_v19  ;;  %v2807_v30 = vpack.c.bf16 %v1710_v25, %v1477_v24  ;;  %v3978_v31 = vpack.i.bf16 %v1642_v26, %v1477_v24  ;;  %v4851_v33 = vld [vmem:[#allocation2 + $0x39] sm:$0xff]  ;;  %v4853_v34 = vld [vmem:[#allocation2 + $0x41] sm:$0xff]  ;;  %v672_v35 = vmul.f32 %v3831_v27, %v4725_v57  ;;  %v572_v36 = vpop.f32.mrb[13].mxu0  ;;  %v3983_v0 = vpack.i.bf16 %v1574_v39, %v1477_v24  ;;  %v4488_v24 = vld [vmem:[%s6481_s2 + $0x30] sm:$0xff]  }
 0x10b   : > { %809 = vst.msk [vmem:[#allocation2 + $0x60] sm:$0xff] %vm6491_vm1, %v738_v22  ;;  %v1712_v37 = vsel %vm4773_vm3, %v4853_v34, 0.0  ;;  %v670_v40 = vmul.f32 %v4725_v57, %v572_v36  ;;  %v3832_v42 = vpop.f32.mrb[14].mxu0  ;;  %v4883_v54 = vld [vmem:[#allocation2 + $0x37] sm:$0xff]  ;;  %v1448_v7 = vld [vmem:[#allocation2 + $0x40] sm:$0xff]  ;;  %2969 = vmatpush1.bf16.msra.mxu0 %v4487_v63  ;;  %3897 = vmatpush1.bf16.msra.mxu1 %v4487_v63 }
 0x10c   : > { %3934 = vrot.lane.b32.xlu1 %v3933_v29, %s4545_s25  ;;  %3731 = vmatprep.mubr.msk.bf16.mxu0 %vm6491_vm1, %v2807_v30  ;;  %v2809_v43 = vpack.c.bf16 %v1712_v37, %v4851_v33  ;;  %v711_v44 = vadd.f32 %v4730_v59, %v672_v35  ;;  %v673_v45 = vmul.f32 %v3832_v42, %v4725_v57  ;;  %v575_v47 = vpop.f32.mrb[15].mxu0  ;;  %v1447_v13 = vld [vmem:[#allocation2 + $0x38] sm:$0xff]  ;;  %v1605_v30 = vsel %vm4764_vm2, %v4813_v4, 0.0  ;;  %v1318_v37 = vld [vmem:[#allocation2 + $0x2f] sm:$0xff] }
 0x10d   : > { %3979 = vrot.lane.b32.xlu0 %v3978_v31, %s4546_s29  ;;  %v709_v50 = vadd.f32 %v4730_v59, %v670_v40  ;;  %v671_v51 = vmul.f32 %v4725_v57, %v575_v47  ;;  %6556 = vst [vmem:[#allocation3_spill] sm:$0xff] %v4883_v54  ;;  %v4008_v15 = vpack.i.bf16 %v1448_v7, %v1447_v13  ;;  %v4489_v29 = vld [vmem:[%s6481_s2 + $0x38] sm:$0xff]   ;;  %v4933_v40 = vld [vmem:[#allocation2 + $0x47] sm:$0xff] }
 0x10e   : > { %3732 = vmatprep.mubr.msk.bf16.mxu1 %vm6491_vm1, %v2809_v43  ;;  %v743_v58 = vmax.f32 %v711_v44, 0.0  ;;  %v712_v61 = vadd.f32 %v4730_v59, %v673_v45  ;;  %2970 = vmatprep.subr.bf16.mxu0 %v4543_v23  ;;  %6557 = vst [vmem:[#allocation4_spill] sm:$0xff] %v4933_v40  ;;  %v3963_v39 = vpack.i.bf16 %v1318_v37, %v1605_v30  ;;  %v840_v44 = vadd.s32 56, %v4733_v62 }
 0x10f   : > { %v741_v5 = vmax.f32 %v709_v50, 0.0  ;;  %v710_v6 = vadd.f32 %v4730_v59, %v671_v51  ;;  %2971 = vmatpush1.bf16.msra.mxu0 %v4488_v24  ;;  %3889 = vmatprep.subr.bf16.mxu1 %v4543_v23  ;;  %v1677_v51 = vsel %vm4800_vm5, %v4933_v40, 0.0  ;;  %v841_v30 = vadd.s32 64, %v4733_v62 }
 0x110   : > { %3939 = vrot.lane.b32.xlu1 %v4788_v49, %s4547_s12  ;;  %814 = vst.msk [vmem:[#allocation2 + $0x88] sm:$0xff] %vm6491_vm1, %v743_v58  ;;  %v744_v8 = vmax.f32 %v712_v61, 0.0  ;;  %2972 = vmatprep.subr.bf16.mxu0 %v4543_v23  ;;  %v4490_v58 = vld [vmem:[%s6481_s2 + $0x40] sm:$0xff]   ;;  %v842_v61 = vadd.s32 72, %v4733_v62  ;;  %v918_v7 = vand.u32 15, %v840_v44 }
 0x111   : > { %3984 = vrot.lane.b32.xlu0 %v3983_v0, %s4545_s25  ;;  %812 = vst.msk [vmem:[#allocation2 + $0x78] sm:$0xff] %vm6491_vm1, %v741_v5  ;;  %v742_v10 = vmax.f32 %v710_v6, 0.0  ;;  %v3835_v11 = vpop.f32.mrb[16].mxu0  ;;  %3898 = vmatpush1.bf16.msra.mxu1 %v4488_v24  ;;  %v1322_v5 = vld [vmem:[#allocation2 + $0x4f] sm:$0xff]  ;;  %v1673_v6 = vsel %vm4860_vm7, %v4813_v4, 0.0 }
 0x112   : > { %815 = vst.msk [vmem:[#allocation2 + $0x90] sm:$0xff] %vm6491_vm1, %v744_v8  ;;  %v676_v49 = vmul.f32 %v3835_v11, %v4725_v57  ;;  %v588_v14 = vpop.f32.mrb[17].mxu0  ;;  %3890 = vmatprep.subr.bf16.mxu1 %v4543_v23  ;;  %v1450_v24 = vld [vmem:[#allocation2 + $0x50] sm:$0xff]  ;;  %vm4976_vm9 = vcmp.ne.s32.totalorder %v918_v7, 15  ;;  %v1451_v7 = vld [vmem:[#allocation2 + $0x58] sm:$0xff] }
 0x113   : > { %813 = vst.msk [vmem:[#allocation2 + $0x80] sm:$0xff] %vm6491_vm1, %v742_v10  ;;  %v674_v16 = vmul.f32 %v4725_v57, %v588_v14  ;;  %v3836_v17 = vpop.f32.mrb[18].mxu0  ;;  %2973 = vmatpush1.bf16.msra.mxu0 %v4489_v29  ;;  %v4033_v10 = vpack.i.bf16 %v1322_v5, %v1677_v51  ;;  %v4971_v14 = vld [vmem:[#allocation2 + $0x51] sm:$0xff]  ;;  %v5097_v21 = vld [vmem:[#allocation2 + $0x59] sm:$0xff] }
 0x114   : > { %3949 = vrot.lane.b32.xlu1 %v3948_v12, %s4548_s15  ;;  %v715_v19 = vadd.f32 %v4730_v59, %v676_v49  ;;  %v677_v20 = vmul.f32 %v3836_v17, %v4725_v57  ;;  %v591_v22 = vpop.f32.mrb[19].mxu0  ;;  %2974 = vmatprep.subr.bf16.mxu0 %v4543_v23 }
 0x115   : > { %4009 = vrot.lane.b32.xlu0 %v4008_v15, %s4547_s12  ;;  %v713_v25 = vadd.f32 %v4730_v59, %v674_v16  ;;  %v675_v26 = vmul.f32 %v4725_v57, %v591_v22  ;;  %3899 = vmatpush1.bf16.msra.mxu1 %v4489_v29  ;;  %v1449_v22 = vld [vmem:[#allocation2 + $0x48] sm:$0xff] }
 0x116   : > { %v747_v27 = vmax.f32 %v715_v19, 0.0  ;;  %v716_v28 = vadd.f32 %v4730_v59, %v677_v20  ;;  %3891 = vmatprep.subr.bf16.mxu1 %v4543_v23  ;;  %v3973_v23 = vpack.i.bf16 %v1318_v37, %v1673_v6  ;;  %v4993_v37 = vld [vmem:[#allocation2 + $0x49] sm:$0xff] }
 0x117   : > { %v745_v31 = vmax.f32 %v713_v25, 0.0  ;;  %v714_v35 = vadd.f32 %v4730_v59, %v675_v26  ;;  %2975 = vmatpush1.bf16.msra.mxu0 %v4490_v58  ;;  %v1453_v25 = vld [vmem:[#allocation2 + $0x68] sm:$0xff] }
 0x118   : > { %3954 = vrot.lane.b32.xlu1 %v4794_v55, %s4544_s18  ;;  %818 = vst.msk [vmem:[#allocation2 + $0xa8] sm:$0xff] %vm6491_vm1, %v747_v27  ;;  %v748_v36 = vmax.f32 %v716_v28, 0.0  ;;  %v1640_v55 = vsel %vm4796_vm4, %v4790_v52, 0.0  ;;  %v1646_v27 = vsel %vm4976_vm9, %v4971_v14, 0.0 }
 0x119   : > { %4019 = vrot.lane.b32.xlu0 %v4008_v15, %s4544_s18  ;;  %816 = vst.msk [vmem:[#allocation2 + $0x98] sm:$0xff] %vm6491_vm1, %v745_v31  ;;  %v746_v42 = vmax.f32 %v714_v35, 0.0  ;;  %v3839_v43 = vpop.f32.mrb[20].mxu0  ;;  %v3968_v3 = vpack.i.bf16 %v1640_v55, %v4808_v1  ;;  %v1609_v1 = vsel %vm4879_vm8, %v4933_v40, 0.0  ;;  %3900 = vmatpush1.bf16.msra.mxu1 %v4490_v58  ;;  %v843_v31 = vadd.s32 80, %v4733_v62 }
 0x11a   : > { %819 = vst.msk [vmem:[#allocation2 + $0xb0] sm:$0xff] %vm6491_vm1, %v748_v36  ;;  %v604_v45 = vpop.f32.mrb[21].mxu0  ;;  %v680_v47 = vmul.f32 %v3839_v43, %v4725_v57  ;;  %v4043_v20 = vpack.i.bf16 %v1322_v5, %v1609_v1  ;;  %v3988_v36 = vpack.i.bf16 %v1450_v24, %v1449_v22  ;;  %v845_v1 = vadd.s32 96, %v4733_v62 }
 0x11b   : > { %817 = vst.msk [vmem:[#allocation2 + $0xa0] sm:$0xff] %vm6491_vm1, %v746_v42  ;;  %v678_v48 = vmul.f32 %v4725_v57, %v604_v45  ;;  %v3840_v50 = vpop.f32.mrb[22].mxu0  ;;  %v939_v51 = vand.u32 15, %v843_v31  ;;  %v849_v31 = vadd.s32 128, %v4733_v62 }
 0x11c   : > { %3964 = vrot.lane.b32.xlu1 %v3963_v39, %s4548_s15  ;;  %v681_v56 = vmul.f32 %v3840_v50, %v4725_v57  ;;  %v607_v52 = vpop.f32.mrb[23].mxu0  ;;  %v719_v63 = vadd.f32 %v4730_v59, %v680_v47  ;;  %v4048_v39 = vpack.i.bf16 %v1646_v27, %v4993_v37  ;;  %v925_v50 = vand.u32 15, %v841_v30 }
 0x11d   : > { %4024 = vrot.lane.b32.xlu0 %v4008_v15, %s4542_s27  ;;  %v717_v0 = vadd.f32 %v4730_v59, %v678_v48  ;;  %v679_v2 = vmul.f32 %v4725_v57, %v607_v52  ;;  %v932_v15 = vand.u32 15, %v842_v61  ;;  %v844_v61 = vadd.s32 88, %v4733_v62 }
 0x11e   : > { %v720_v8 = vadd.f32 %v4730_v59, %v681_v56  ;;  %v751_v11 = vmax.f32 %v719_v63, 0.0  ;;  %vm5016_vm11 = vcmp.ne.s32.totalorder %v925_v50, 0  ;;  %vm5020_vm12 = vcmp.ne.s32.totalorder %v939_v51, 0 }
 0x11f   : > { %v749_v12 = vmax.f32 %v717_v0, 0.0  ;;  %v718_v13 = vadd.f32 %v4730_v59, %v679_v2  ;;  %vm4986_vm10 = vcmp.ne.s32.totalorder %v932_v15, 15  ;;  %v1675_v15 = vsel %vm4764_vm2, %v4883_v54, 0.0 }
 0x120   : > { %3969 = vrot.lane.b32.xlu1 %v3968_v3, %s4546_s29  ;;  %v752_v49 = vmax.f32 %v720_v8, 0.0  ;;  %822 = vst.msk [vmem:[#allocation2 + $0xc8] sm:$0xff] %vm6491_vm1, %v751_v11  ;;  %v1578_v55 = vsel %vm4986_vm10, %v4971_v14, 0.0  ;;  %v1452_v8 = vld [vmem:[#allocation2 + $0x60] sm:$0xff]  ;;  %v848_v27 = vadd.s32 120, %v4733_v62  ;;  %v860_v50 = vadd.s32 216, %v4733_v62 }
 0x121   : > { %4034 = vrot.lane.b32.xlu0 %v4033_v10, %s4549_s26  ;;  %820 = vst.msk [vmem:[#allocation2 + $0xb8] sm:$0xff] %vm6491_vm1, %v749_v12  ;;  %v750_v16 = vmax.f32 %v718_v13, 0.0  ;;  %v3843_v17 = vpop.f32.mrb[24].mxu0  ;;  %v4053_v3 = vpack.i.bf16 %v1578_v55, %v4993_v37  ;;  %v846_v10 = vadd.s32 104, %v4733_v62  ;;  %v6564_v13 = vmov 0 }
 0x122   : > { %823 = vst.msk [vmem:[#allocation2 + $0xd0] sm:$0xff] %vm6491_vm1, %v752_v49  ;;  %v620_v19 = vpop.f32.mrb[25].mxu0  ;;  %v684_v35 = vmul.f32 %v3843_v17, %v4725_v57  ;;  %v6565_v13 = vsel %vm5020_vm12, 4294967295, %v6564_v13  ;;  %v847_v49 = vadd.s32 112, %v4733_v62 }
 0x123   : > { %821 = vst.msk [vmem:[#allocation2 + $0xc0] sm:$0xff] %vm6491_vm1, %v750_v16  ;;  %v3844_v26 = vpop.f32.mrb[26].mxu0  ;;  %v682_v42 = vmul.f32 %v4725_v57, %v620_v19  ;;  %v946_v16 = vand.u32 15, %v844_v61  ;;  %v5031_v19 = vld [vmem:[#allocation2 + $0x3f] sm:$0xff] }
 0x124   : > { %3974 = vrot.lane.b32.xlu1 %v3973_v23, %s4549_s26  ;;  %v623_v28 = vpop.f32.mrb[27].mxu0  ;;  %v685_v43 = vmul.f32 %v3844_v26, %v4725_v57  ;;  %v723_v44 = vadd.f32 %v4730_v59, %v684_v35  ;;  %v4078_v23 = vpack.i.bf16 %v1452_v8, %v1451_v7  ;;  %6566 = vst [vmem:[#allocation5_spill] sm:$0xff] %v5031_v19  ;;  %v960_v26 = vand.u32 15, %v846_v10 }
 0x125   : > { %4044 = vrot.lane.b32.xlu0 %v4043_v20, %s4548_s15  ;;  %v683_v45 = vmul.f32 %v4725_v57, %v623_v28  ;;  %v721_v47 = vadd.f32 %v4730_v59, %v682_v42  ;;  %v850_v28 = vadd.s32 136, %v4733_v62  ;;  %vm5053_vm13 = vcmp.ne.s32.totalorder %v946_v16, 15 }
 0x126   : > { %v724_v48 = vadd.f32 %v4730_v59, %v685_v43  ;;  %v755_v56 = vmax.f32 %v723_v44, 0.0  ;;  %v1607_v44 = vsel %vm4800_vm5, %v4883_v54, 0.0  ;;  %v967_v51 = vand.u32 15, %v847_v49  ;;  %v1332_v49 = vld [vmem:[#allocation2 + $0x9f] sm:$0xff] }
 0x127   : > { %v722_v52 = vadd.f32 %v4730_v59, %v683_v45  ;;  %v753_v63 = vmax.f32 %v721_v47, 0.0  ;;  %v5050_v45 = vld [vmem:[#allocation2 + $0x57] sm:$0xff]  ;;  %v988_v61 = vand.u32 15, %v850_v28  ;;  %v1644_v7 = vsel %vm4840_vm6, %v4853_v34, 0.0 }
 0x128   : > { %3989 = vrot.lane.b32.xlu1 %v3988_v36, %s4547_s12  ;;  %v756_v0 = vmax.f32 %v724_v48, 0.0  ;;  %826 = vst.msk [vmem:[#allocation2 + $0xe8] sm:$0xff] %vm6491_vm1, %v755_v56  ;;  %v855_v8 = vadd.s32 176, %v4733_v62  ;;  %v1714_v10 = vsel %vm4840_vm6, %v4971_v14, 0.0  ;;  %vm5084_vm14 = vcmp.ne.s32.totalorder %v960_v26, 15  ;;  %v5112_v26 = vld [vmem:[#allocation2 + $0x87] sm:$0xff] }
 0x129   : > { %4049 = vrot.lane.b32.xlu0 %v4048_v39, %s4546_s29  ;;  %v3847_v58 = vpop.f32.mrb[28].mxu0  ;;  %v754_v5 = vmax.f32 %v722_v52, 0.0  ;;  %824 = vst.msk [vmem:[#allocation2 + $0xd8] sm:$0xff] %vm6491_vm1, %v753_v63  ;;  %v5062_v52 = vld [vmem:[#allocation2 + $0x67] sm:$0xff]  ;;  %v981_v63 = vand.u32 15, %v849_v31  ;;  %v5091_v16 = vadd.s32 168, %v4733_v62 }
 0x12a   : > { %v636_v2 = vpop.f32.mrb[29].mxu0  ;;  %827 = vst.msk [vmem:[#allocation2 + $0xf0] sm:$0xff] %vm6491_vm1, %v756_v0  ;;  %v688_v17 = vmul.f32 %v3847_v58, %v4725_v57  ;;  %6569 = vst [vmem:[#allocation6_spill] sm:$0xff] %v5062_v52  ;;  %v974_v58 = vand.u32 15, %v848_v27  ;;  %v852_v0 = vadd.s32 152, %v4733_v62  ;;  %v6573_v14 = vmov 0 }
 0x12b   : > { %v3848_v6 = vpop.f32.mrb[30].mxu0  ;;  %825 = vst.msk [vmem:[#allocation2 + $0xe0] sm:$0xff] %vm6491_vm1, %v754_v5  ;;  %v686_v20 = vmul.f32 %v4725_v57, %v636_v2  ;;  %v4013_v2 = vpack.i.bf16 %v5031_v19, %v1607_v44  ;;  %v853_v5 = vadd.s32 160, %v4733_v62  ;;  %vm5103_vm3 = vcmp.ne.s32.totalorder %v967_v51, 0  ;;  %6582 = vst [vmem:[#allocation11_spill] sm:$0xff] %v5112_v26  ;;  %v5139_v44 = vld [vmem:[#allocation2 + $0x69] sm:$0xff] }
 0x12c   : > { %3994 = vrot.lane.b32.xlu1 %v3988_v36, %s4544_s18  ;;  %v639_v11 = vpop.f32.mrb[31].mxu0  ;;  %v689_v22 = vmul.f32 %v3848_v6, %v4725_v57  ;;  %v727_v30 = vadd.f32 %v4730_v59, %v688_v17  ;;  %v5094_v17 = vpack.c.bf16 %v1714_v10, %v4993_v37  ;;  %vm5107_vm4 = vcmp.ne.s32.totalorder %v981_v63, 0  ;;  %v5216_v9 = vld [vmem:[#allocation2 + $0xc7] sm:$0xff] }
 0x12d   : > { %4054 = vrot.lane.b32.xlu0 %v4053_v3, %s4545_s25  ;;  %v687_v24 = vmul.f32 %v4725_v57, %v639_v11  ;;  %v725_v35 = vadd.f32 %v4730_v59, %v686_v20  ;;  %v4003_v57 = vpack.i.bf16 %v5031_v19, %v1675_v15  ;;  %v1326_v11 = vld [vmem:[#allocation2 + $0x6f] sm:$0xff]  ;;  %v5088_v15 = vld [vmem:[#allocation2 + $0x61] sm:$0xff]  ;;  %v6576_v20 = vmov 0  ;;  %6601 = vst [vmem:[#allocation18_spill] sm:$0xff] %v5216_v9 }
 0x12e   : > { %v728_v42 = vadd.f32 %v4730_v59, %v689_v22  ;;  %v759_v39 = vmax.f32 %v727_v30, 0.0  ;;  %6572 = vst [vmem:[#allocation7_spill] sm:$0xff] %v5094_v17  ;;  %v6577_v20 = vsel %vm5103_vm3, 4294967295, %v6576_v20  ;;  %v6579_v22 = vmov 0  ;;  %v1456_v17 = vld [vmem:[#allocation2 + $0x80] sm:$0xff] }
 0x12f   : > { %v726_v43 = vadd.f32 %v4730_v59, %v687_v24  ;;  %v757_v55 = vmax.f32 %v725_v35, 0.0  ;;  %v953_v59 = vand.u32 15, %v845_v1  ;;  %v1681_v1 = vsel %vm5016_vm11, %v5062_v52, 0.0  ;;  %6578 = vst [vmem:[#allocation9_spill] sm:$0xff] %v6577_v20  ;;  %v1338_v20 = vld [vmem:[#allocation2 + $0xcf] sm:$0xff] }
 0x130   : > { %3999 = vrot.lane.b32.xlu1 %v3988_v36, %s4542_s27  ;;  %v851_v36 = vadd.s32 144, %v4733_v62  ;;  %v760_v47 = vmax.f32 %v728_v42, 0.0  ;;  %830 = vst.msk [vmem:[#allocation2 + $0x108] sm:$0xff] %vm6491_vm1, %v759_v39  ;;  %v6580_v22 = vsel %vm5107_vm4, 4294967295, %v6579_v22  ;;  %v1002_v24 = vand.u32 15, %v852_v0  ;;  %v1454_v0 = vld [vmem:[#allocation2 + $0x70] sm:$0xff] }
 0x131   : > { %4079 = vrot.lane.b32.xlu0 %v4078_v23, %s4547_s12  ;;  %v758_v48 = vmax.f32 %v726_v43, 0.0  ;;  %828 = vst.msk [vmem:[#allocation2 + $0xf8] sm:$0xff] %vm6491_vm1, %v757_v55  ;;  %vm5099_vm15 = vcmp.ne.s32.totalorder %v953_v59, 0  ;;  %6581 = vst [vmem:[#allocation10_spill] sm:$0xff] %v6580_v22  ;;  %v4028_v37 = vpack.i.bf16 %v1644_v7, %v4851_v33  ;;  %vm5114_vm6 = vcmp.ne.s32.totalorder %v974_v58, 15  ;;  %v5130_v43 = vld [vmem:[#allocation2 + $0x71] sm:$0xff] }
 0x132   : > { %831 = vst.msk [vmem:[#allocation2 + $0x110] sm:$0xff] %vm6491_vm1, %v760_v47  ;;  %v995_v3 = vand.u32 15, %v851_v36  ;;  %v6574_v14 = vsel %vm5099_vm15, 4294967295, %v6573_v14  ;;  %vm5118_vm0 = vcmp.ne.s32.totalorder %v988_v61, 15  ;;  %v6587_v28 = vmov 0  ;;  %v5151_v59 = vld [vmem:[#allocation2 + $0x81] sm:$0xff] }
 0x133   : > { %829 = vst.msk [vmem:[#allocation2 + $0x100] sm:$0xff] %vm6491_vm1, %v758_v48  ;;  %6575 = vst [vmem:[#allocation8_spill] sm:$0xff] %v6574_v14  ;;  %v1009_v30 = vand.u32 15, %v853_v5  ;;  %v857_v31 = vadd.s32 192, %v4733_v62  ;;  %v4103_v35 = vpack.i.bf16 %v1326_v11, %v1681_v1  ;;  %v1576_v42 = vsel %vm4976_vm9, %v4853_v34, 0.0  ;;  %v5149_v48 = vld [vmem:[#allocation2 + $0x77] sm:$0xff] }
 0x134   : > { %4004 = vrot.lane.b32.xlu1 %v4003_v57, %s4549_s26  ;;  %vm5122_vm1 = vcmp.ne.s32.totalorder %v995_v3, 0  ;;  %v1023_v57 = vand.u32 15, %v855_v8  ;;  %v1716_v36 = vsel %vm4976_vm9, %v5088_v15, 0.0  ;;  %v1613_v39 = vsel %vm5020_vm12, %v5062_v52, 0.0  ;;  %6590 = vst [vmem:[#allocation13_spill] sm:$0xff] %v5149_v48  ;;  %v5164_v3 = vld [vmem:[#allocation2 + $0x79] sm:$0xff] }
 0x135   : > { %4089 = vrot.lane.b32.xlu0 %v4078_v23, %s4544_s18  ;;  %v6588_v28 = vsel %vm5122_vm1, 4294967295, %v6587_v28  ;;  %v5143_v47 = vpack.c.bf16 %v1716_v36, %v5097_v21  ;;  %vm5153_vm9 = vcmp.ne.s32.totalorder %v1002_v24, 15  ;;  %v859_v58 = vadd.s32 208, %v4733_v62  ;;  %v5178_v24 = vld [vmem:[#allocation2 + $0x97] sm:$0xff]  ;;  %v5281_v40 = vld [vmem:[#allocation2 + $0xe1] sm:$0xff] }
 0x136   : > { %v4038_v63 = vpack.i.bf16 %v1576_v42, %v4851_v33  ;;  %vm5166_vm5 = vcmp.ne.s32.totalorder %v1009_v30, 0  ;;  %v6593_v5 = vmov 0  ;;  %v1037_v7 = vand.u32 15, %v857_v31  ;;  %v5176_v33 = vld [vmem:[#allocation2 + $0x89] sm:$0xff]  ;;  %6595 = vst [vmem:[#allocation14_spill] sm:$0xff] %v5178_v24  ;;  %v5205_v61 = vld [vmem:[#allocation2 + $0x99] sm:$0xff] }
 0x137   : > { %6589 = vst [vmem:[#allocation12_spill] sm:$0xff] %v5143_v47  ;;  %v6594_v5 = vsel %vm5166_vm5, 4294967295, %v6593_v5  ;;  %v1718_v8 = vsel %vm4986_vm10, %v5130_v43, 0.0  ;;  %v4113_v10 = vpack.i.bf16 %v1326_v11, %v1613_v39  ;;  %v1650_v1 = vsel %vm5053_vm13, %v5130_v43, 0.0  ;;  %v5190_v11 = vld [vmem:[#allocation2 + $0xb1] sm:$0xff]  ;;  %6615 = vst [vmem:[#allocation25_spill] sm:$0xff] %v5281_v40 }
 0x138   : > { %4014 = vrot.lane.b32.xlu1 %v4013_v2, %s4548_s15  ;;  %v5162_v2 = vld [vmem:[#allocation2 + $0x91] sm:$0xff]  ;;  %vm5182_vm2 = vcmp.ne.s32.totalorder %v1023_v57, 0  ;;  %v6597_v30 = vmov 0  ;;  %v5187_v31 = vpack.c.bf16 %v1718_v8, %v5139_v44  ;;  %v856_v42 = vadd.s32 184, %v4733_v62  ;;  %v5291_v54 = vld [vmem:[#allocation2 + $0xd9] sm:$0xff] }
 0x139   : > { %4094 = vrot.lane.b32.xlu0 %v4078_v23, %s4542_s27  ;;  %v6598_v30 = vsel %vm5182_vm2, 4294967295, %v6597_v30  ;;  %v858_v36 = vadd.s32 200, %v4733_v62  ;;  %v1720_v39 = vsel %vm5053_vm13, %v5151_v59, 0.0  ;;  %v4058_v8 = vpack.i.bf16 %v1454_v0, %v1453_v25  ;;  %v5220_v25 = vld [vmem:[#allocation2 + $0xc1] sm:$0xff]  ;;  %v5243_v55 = vld [vmem:[#allocation2 + $0xd1] sm:$0xff] }
 0x13a   : > { %6599 = vst [vmem:[#allocation16_spill] sm:$0xff] %v5187_v31  ;;  %v1051_v34 = vand.u32 15, %v859_v58  ;;  %v5208_v6 = vpack.c.bf16 %v1720_v39, %v5164_v3  ;;  %v1722_v56 = vsel %vm5084_vm14, %v5162_v2, 0.0  ;;  %v1582_v57 = vsel %vm5084_vm14, %v5130_v43, 0.0  ;;  %v5279_v31 = vld [vmem:[#allocation2 + $0xf1] sm:$0xff]  ;;  %v5324_v47 = vld [vmem:[#allocation2 + $0x5f] sm:$0xff] }
 0x13b   : > { %vm5222_vm7 = vcmp.ne.s32.totalorder %v1037_v7, 0  ;;  %v6602_v0 = vmov 0  ;;  %v5227_v58 = vpack.c.bf16 %v1722_v56, %v5176_v33  ;;  %v4118_v18 = vpack.i.bf16 %v1650_v1, %v5139_v44  ;;  %v5254_v7 = vld [vmem:[#allocation2 + $0xc9] sm:$0xff]  ;;  %6624 = vst [vmem:[#allocation28_spill] sm:$0xff] %v5324_v47 }
 0x13c   : > { %4029 = vrot.lane.b32.xlu1 %v4028_v37, %s4546_s29  ;;  %v5180_v37 = vld [vmem:[#allocation2 + $0xa7] sm:$0xff]  ;;  %6600 = vst [vmem:[#allocation17_spill] sm:$0xff] %v5208_v6  ;;  %v6603_v0 = vsel %vm5222_vm7, 4294967295, %v6602_v0  ;;  %v1726_v46 = vsel %vm5118_vm0, %v5190_v11, 0.0  ;;  %v1030_v56 = vand.u32 15, %v856_v42  ;;  %v1044_v39 = vand.u32 15, %v858_v36 }
 0x13d   : > { %4104 = vrot.lane.b32.xlu0 %v4103_v35, %s4549_s26  ;;  %6596 = vst [vmem:[#allocation15_spill] sm:$0xff] %v5180_v37  ;;  %v5192_v35 = vld [vmem:[#allocation2 + $0xa1] sm:$0xff]  ;;  %6604 = vst [vmem:[#allocation19_spill] sm:$0xff] %v6603_v0  ;;  %vm5256_vm5 = vcmp.ne.s32.totalorder %v1051_v34, 0  ;;  %v6608_v6 = vmov 0  ;;  %v5260_v42 = vld [vmem:[#allocation2 + $0xd7] sm:$0xff] }
 0x13e   : > { %6605 = vst [vmem:[#allocation20_spill] sm:$0xff] %v5227_v58  ;;  %v1724_v43 = vsel %vm5114_vm6, %v5192_v35, 0.0  ;;  %v5245_v58 = vld [vmem:[#allocation2 + $0xb9] sm:$0xff]  ;;  %v6609_v6 = vsel %vm5256_vm5, 4294967295, %v6608_v6  ;;  %6611 = vst [vmem:[#allocation24_spill] sm:$0xff] %v5260_v42  ;;  %v1728_v36 = vsel %vm5153_vm9, %v5220_v25, 0.0 }
 0x13f   : > { %v5248_v1 = vpack.c.bf16 %v1724_v43, %v5205_v61  ;;  %6610 = vst [vmem:[#allocation23_spill] sm:$0xff] %v6609_v6  ;;  %v6613_v34 = vmov 0  ;;  %v863_v43 = vadd.s32 240, %v4733_v62  ;;  %v5285_v19 = vpack.c.bf16 %v1728_v36, %v5245_v58  ;;  %v5308_v0 = vld [vmem:[#allocation2 + $0xe7] sm:$0xff] }
 0x140   : > { %4039 = vrot.lane.b32.xlu1 %v4038_v63, %s4545_s25  ;;  %v5203_v63 = vld [vmem:[#allocation2 + $0xa9] sm:$0xff]  ;;  %vm5300_vm7 = vcmp.ne.s32.totalorder %v1030_v56, 15  ;;  %vm5304_vm2 = vcmp.ne.s32.totalorder %v1044_v39, 15  ;;  %v1689_v27 = vsel %vm5107_vm4, %v5180_v37, 0.0  ;;  %v1708_v6 = vld [vmem:[#allocation2 + $0x121] sm:$0xff] }
 0x141   : > { %4114 = vrot.lane.b32.xlu0 %v4113_v10, %s4548_s15  ;;  %v5218_v10 = vld [vmem:[#allocation2 + $0xb7] sm:$0xff]  ;;  %6606 = vst [vmem:[#allocation21_spill] sm:$0xff] %v5248_v1  ;;  %v5251_v52 = vpack.c.bf16 %v1726_v46, %v5203_v63  ;;  %v4123_v1 = vpack.i.bf16 %v1582_v57, %v5139_v44  ;;  %6616 = vst [vmem:[#allocation26_spill] sm:$0xff] %v5285_v19  ;;  %v1732_v56 = vsel %vm5300_vm7, %v5281_v40, 0.0  ;;  %v1734_v39 = vsel %vm5304_vm2, %v5279_v31, 0.0 }
 0x142   : > { %v1458_v46 = vld [vmem:[#allocation2 + $0x90] sm:$0xff]  ;;  %v5334_v42 = vpack.c.bf16 %v1732_v56, %v5291_v54  ;;  %v1455_v40 = vld [vmem:[#allocation2 + $0x78] sm:$0xff] }
 0x143   : > { %6607 = vst [vmem:[#allocation22_spill] sm:$0xff] %v5251_v52  ;;  %v861_v52 = vadd.s32 224, %v4733_v62 }
 0x144   : > { %4059 = vrot.lane.b32.xlu1 %v4058_v8, %s4547_s12  ;;  %6628 = vst [vmem:[#allocation30_spill] sm:$0xff] %v5334_v42  ;;  %v4148_v42 = vpack.i.bf16 %v1456_v17, %v1455_v40  ;;  %v1580_v17 = vsel %vm5053_vm13, %v5088_v15, 0.0 }
 0x145   : > { %4119 = vrot.lane.b32.xlu0 %v4118_v18, %s4546_s29  ;;  %v6612_v18 = vand.u32 15, %v5091_v16  ;;  %v1065_v44 = vand.u32 15, %v861_v52  ;;  %v5310_v52 = vld [vmem:[#allocation2 + $0xe9] sm:$0xff]  ;;  %v4108_v29 = vpack.i.bf16 %v1580_v17, %v5097_v21 }
 0x147   : > { %vm5273_vm1 = vcmp.ne.s32.totalorder %v6612_v18, 15  ;;  %v1457_v18 = vld [vmem:[#allocation2 + $0x88] sm:$0xff] }
 0x148   : > { %v6614_v34 = vsel %vm5273_vm1, 4294967295, %v6613_v34  ;;  %v1730_v16 = vsel %vm5273_vm1, %v5243_v55, 0.0  ;;  %4064 = vrot.lane.b32.xlu1 %v4058_v8, %s4544_s18  ;;  %vm5314_vm1 = vcmp.ne.s32.totalorder %v1065_v44, 0  ;;  %v6625_v44 = vmov 0 }
 0x149   : > { %v5294_v57 = vpack.c.bf16 %v1730_v16, %v5254_v7  ;;  %4124 = vrot.lane.b32.xlu0 %v4123_v1, %s4545_s25  ;;  %v1079_v16 = vand.u32 15, %v863_v43  ;;  %v4138_v1 = vpack.i.bf16 %v1458_v46, %v1457_v18  ;;  %v1679_v43 = vsel %vm4879_vm8, %v5050_v45, 0.0 }
 0x14a   : > { %v5341_v18 = vpack.c.bf16 %v1734_v39, %v5310_v52  ;;  %v4073_v56 = vpack.i.bf16 %v5324_v47, %v1679_v43  ;;  %v1648_v46 = vsel %vm4986_vm10, %v5088_v15, 0.0  ;;  %v1330_v43 = vld [vmem:[#allocation2 + $0x8f] sm:$0xff]  ;;  %v862_v15 = vadd.s32 232, %v4733_v62 }
 0x14b   : > { %6617 = vst [vmem:[#allocation27_spill] sm:$0xff] %v5294_v57  ;;  %v5312_v57 = vld [vmem:[#allocation2 + $0xf7] sm:$0xff]  ;;  %vm5329_vm5 = vcmp.ne.s32.totalorder %v1079_v16, 0  ;;  %v4098_v40 = vpack.i.bf16 %v1648_v46, %v5097_v21  ;;  %v1617_v46 = vsel %vm5103_vm3, %v5112_v26, 0.0  ;;  %v1654_v21 = vsel %vm5114_vm6, %v5162_v2, 0.0 }
 0x14c   : > { %v6626_v44 = vsel %vm5329_vm5, 4294967295, %v6625_v44  ;;  %4069 = vrot.lane.b32.xlu1 %v4058_v8, %s4542_s27  ;;  %6629 = vst [vmem:[#allocation31_spill] sm:$0xff] %v5341_v18  ;;  %v1611_v8 = vsel %vm5016_vm11, %v5050_v45, 0.0  ;;  %v4188_v17 = vpack.i.bf16 %v1654_v21, %v5176_v33  ;;  %vm6645_vm5 = vcmask 392192  }
 0x14d   : > { %6627 = vst [vmem:[#allocation29_spill] sm:$0xff] %v6626_v44  ;;  %4139 = vrot.lane.b32.xlu0 %v4138_v1, %s4542_s27  ;;  %v4083_v39 = vpack.i.bf16 %v5324_v47, %v1611_v8 }
 0x150   : > { %4074 = vrot.lane.b32.xlu1 %v4073_v56, %s4549_s26  ;;  %v1685_v56 = vsel %vm5099_vm15, %v5112_v26, 0.0  ;;  %v1462_v26 = vld [vmem:[#allocation2 + $0xb0] sm:$0xff] }
 0x151   : > { %4149 = vrot.lane.b32.xlu0 %v4148_v42, %s4547_s12  ;;  %v4173_v8 = vpack.i.bf16 %v1330_v43, %v1685_v56  ;;  %v5382_v56 = vld [vmem:[#allocation2 + $0x7f] sm:$0xff] }
 0x152   : > { %6630 = vst [vmem:[#allocation32_spill] sm:$0xff] %v5382_v56 }
 0x154   : > { %4084 = vrot.lane.b32.xlu1 %v4083_v39, %s4548_s15  ;;  %v4183_v39 = vpack.i.bf16 %v1330_v43, %v1617_v46  ;;  %v5389_v43 = vld [vmem:[#allocation2 + $0x101] sm:$0xff]  ;;  %v1586_v46 = vsel %vm5118_vm0, %v5162_v2, 0.0 }
 0x155   : > { %4159 = vrot.lane.b32.xlu0 %v4148_v42, %s4544_s18 }
 0x158   : > { %4099 = vrot.lane.b32.xlu1 %v4098_v40, %s4546_s29  ;;  %v1072_v40 = vand.u32 15, %v862_v15  ;;  %v5397_v15 = vld [vmem:[#allocation2 + $0xf9] sm:$0xff] }
 0x159   : > { %4164 = vrot.lane.b32.xlu0 %v4148_v42, %s4542_s27  ;;  %v1058_v42 = vand.u32 15, %v860_v50  ;;  %v5395_v50 = vld [vmem:[#allocation2 + $0x109] sm:$0xff]  ;;  %6632 = vst [vmem:[#allocation34_spill] sm:$0xff] %v5397_v15 }
 0x15a   : > { %6631 = vst [vmem:[#allocation33_spill] sm:$0xff] %v5395_v50  ;;  %vm5404_vm13 = vcmp.ne.s32.totalorder %v1072_v40, 15 }
 0x15b   : > { %vm5400_vm10 = vcmp.ne.s32.totalorder %v1058_v42, 15  ;;  %v1615_v42 = vsel %vm5099_vm15, %v5149_v48, 0.0  ;;  %vm6644_vm15 = vnez %v6594_v5  ;;  %v1598_v53 = vsel %vm5404_vm13, %v5279_v31, 0.0 }
 0x15c   : > { %4109 = vrot.lane.b32.xlu1 %v4108_v29, %s4545_s25  ;;  %v1683_v29 = vsel %vm5020_vm12, %v5149_v48, 0.0  ;;  %v1736_v2 = vsel %vm5400_vm10, %v5389_v43, 0.0  ;;  %v4153_v44 = vpack.i.bf16 %v5382_v56, %v1615_v42  ;;  %vm6646_vm12 = vmmov %vm6645_vm5 }
 0x15d   : > { %4174 = vrot.lane.b32.xlu0 %v4173_v8, %s4549_s26  ;;  %v5387_v8 = vld [vmem:[#allocation2 + $0x111] sm:$0xff]  ;;  %v5420_v40 = vpack.c.bf16 %v1736_v2, %v5397_v15 }
 0x15e   : > { %v1738_v16 = vsel %vm5404_vm13, %v5387_v8, 0.0  ;;  %v1459_v2 = vld [vmem:[#allocation2 + $0x98] sm:$0xff] }
 0x15f   : > { %6637 = vst [vmem:[#allocation35_spill] sm:$0xff] %v5420_v40  ;;  %v5423_v18 = vpack.c.bf16 %v1738_v16, %v5395_v50 }
 0x160   : > { %4129 = vrot.lane.b32.xlu1 %v4138_v1, %s4547_s12 }
 0x161   : > { %4184 = vrot.lane.b32.xlu0 %v4183_v39, %s4548_s15  ;;  %6638 = vst [vmem:[#allocation36_spill] sm:$0xff] %v5423_v18  ;;  %v864_v39 = vadd.s32 248, %v4733_v62 }
 0x164   : > { %4134 = vrot.lane.b32.xlu1 %v4138_v1, %s4544_s18  ;;  %v4143_v1 = vpack.i.bf16 %v5382_v56, %v1683_v29  ;;  %v1461_v29 = vld [vmem:[#allocation2 + $0xa8] sm:$0xff]  ;;  %v1463_v56 = vld [vmem:[#allocation2 + $0xb8] sm:$0xff] }
 0x165   : > { %4189 = vrot.lane.b32.xlu0 %v4188_v17, %s4546_s29  ;;  %v4193_v17 = vpack.i.bf16 %v1586_v46, %v5176_v33  ;;  %v4198_v47 = vpack.i.bf16 %v1462_v26, %v1461_v29  ;;  %v1652_v33 = vsel %vm5084_vm14, %v5151_v59, 0.0  ;;  %v1584_v46 = vsel %vm5114_vm6, %v5151_v59, 0.0 }
 0x166   : > { %v4168_v16 = vpack.i.bf16 %v1652_v33, %v5164_v3  ;;  %v4178_v26 = vpack.i.bf16 %v1584_v46, %v5164_v3  ;;  %v1619_v3 = vsel %vm5107_vm4, %v5178_v24, 0.0  ;;  %vm6639_vm14 = vnez %v6588_v28 }
 0x167   : > { %v4223_v46 = vpack.i.bf16 %v1332_v49, %v1619_v3  ;;  %vm6640_vm6 = vnez %v6614_v34  ;;  %v1592_v34 = vsel %vm5300_vm7, %v5220_v25, 0.0 }
 0x168   : > { %4144 = vrot.lane.b32.xlu1 %v4143_v1, %s4549_s26  ;;  %v5438_v1 = vpop.permute.xlu1 %3919  ;;  %v1590_v40 = vsel %vm6640_vm6, %v5190_v11, 0.0  ;;  %v4318_v36 = vpack.i.bf16 %v1592_v34, %v5245_v58 }
 0x169   : > { %4194 = vrot.lane.b32.xlu0 %v4193_v17, %s4545_s25  ;;  %v1460_v17 = vld [vmem:[#allocation2 + $0xa0] sm:$0xff] }
 0x16a   : > { %v4218_v29 = vpack.i.bf16 %v1460_v17, %v1459_v2 }
 0x16c   : > { %4154 = vrot.lane.b32.xlu1 %v4153_v44, %s4548_s15  ;;  %v1687_v44 = vsel %vm5103_vm3, %v5178_v24, 0.0  ;;  %vm6540_vm3 = vcmask 261120  }
 0x16d   : > { %4199 = vrot.lane.b32.xlu0 %v4198_v47, %s4547_s12  ;;  %v4213_v59 = vpack.i.bf16 %v1332_v49, %v1687_v44  ;;  %v1656_v49 = vsel %vm5118_vm0, %v5192_v35, 0.0  ;;  %vm6641_vm0 = vnez %v6553_v38 }
 0x170   : > { %4169 = vrot.lane.b32.xlu1 %v4168_v16, %s4546_s29 }
 0x171   : > { %4204 = vrot.lane.b32.xlu0 %v4198_v47, %s4544_s18 }
 0x174   : > { %4179 = vrot.lane.b32.xlu1 %v4178_v26, %s4545_s25  ;;  %v1621_v26 = vsel %vm6639_vm14, %v5180_v37, 0.0 }
 0x175   : > { %4209 = vrot.lane.b32.xlu0 %v4198_v47, %s4542_s27  ;;  %v1334_v47 = vld [vmem:[#allocation2 + $0xaf] sm:$0xff] }
 0x176   : > { %v5447_v23 = vpop.permute.xlu1 %3924  ;;  %v4253_v2 = vpack.i.bf16 %v1334_v47, %v1621_v26  ;;  %v4238_v26 = vpack.i.bf16 %v1656_v49, %v5205_v61  ;;  %v4243_v24 = vpack.i.bf16 %v1334_v47, %v1689_v27  ;;  %v1464_v49 = vld [vmem:[#allocation2 + $0xc0] sm:$0xff]  ;;  %v3921_v47 = vunpack.i.l.bf16 %v5438_v1  ;;  %v1465_v27 = vld [vmem:[#allocation2 + $0xc8] sm:$0xff] }
 0x177   : > { %v5449_v42 = vpop.permute.xlu0 %3944  ;;  %v4288_v22 = vpack.i.bf16 %v1464_v49, %v1463_v56 }
 0x178   : > { %4214 = vrot.lane.b32.xlu1 %v4213_v59, %s4549_s26  ;;  %v1658_v59 = vsel %vm5153_vm9, %v5190_v11, 0.0  ;;  %v1588_v11 = vsel %vm5153_vm9, %v5192_v35, 0.0  ;;  %v1314_v35 = vld [vmem:[#allocation2 + $0xf] sm:$0xff]  ;;  %vm6642_vm9 = vcmask 130048  }
 0x179   : > { %4219 = vrot.lane.b32.xlu0 %v4218_v29, %s4547_s12  ;;  %vm6643_vm4 = vmmov %vm6642_vm9 }
 0x17a   : > { %v5456_v33 = vpop.permute.xlu1 %3929 }
 0x17b   : > { %v5458_v16 = vpop.permute.xlu0 %3959 }
 0x17c   : > { %4234 = vrot.lane.b32.xlu1 %v4218_v29, %s4542_s27 }
 0x17d   : > { %4224 = vrot.lane.b32.xlu0 %v4223_v46, %s4548_s15  ;;  %v4258_v46 = vpack.i.bf16 %v1658_v59, %v5203_v63 }
 0x17e   : > { %v5465_v44 = vpop.permute.xlu1 %3934 }
 0x17f   : > { %v5467_v17 = vpop.permute.xlu0 %3979  ;;  %v3936_v38 = vunpack.i.l.bf16 %v5465_v44 }
 0x180   : > { %4254 = vrot.lane.b32.xlu1 %v4253_v2, %s4548_s15  ;;  %v4263_v2 = vpack.i.bf16 %v1590_v40, %v5203_v63  ;;  %v4248_v63 = vpack.i.bf16 %v1588_v11, %v5205_v61  ;;  %v3922_v40 = vunpack.i.h.bf16 %v5438_v1  ;;  %v3937_v1 = vunpack.i.h.bf16 %v5465_v44 }
 0x181   : > { %4229 = vrot.lane.b32.xlu0 %v4218_v29, %s4544_s18 }
 0x182   : > { %v5477_v3 = vpop.permute.xlu1 %3939  ;;  %v2578_v11 = vsel %vm6643_vm4, %v1314_v35, %v3922_v40  ;;  %vm6647_vm4 = vnez %v6598_v30 }
 0x183   : > { %v5480_v18 = vpop.permute.xlu0 %3984  ;;  %v2611_v44 = vsel %vm6540_vm3, %v2578_v11, %v3937_v1 }
 0x184   : > { %4259 = vrot.lane.b32.xlu1 %v4258_v46, %s4546_s29  ;;  %v1313_v46 = vld [vmem:[#allocation2 + $0x7] sm:$0xff] }
 0x185   : > { %4239 = vrot.lane.b32.xlu0 %v4238_v26, %s4546_s29  ;;  %v1409_v51 = vsel %vm6641_vm0, %v1313_v46, 0.0  ;;  %vm6648_vm0 = vcmask 523264  }
 0x186   : > { %v3950_v29 = vpop.permute.xlu1 %3949  ;;  %v2577_v61 = vsel %vm6642_vm9, %v1409_v51, %v3921_v47  ;;  %v1693_v47 = vsel %vm6644_vm15, %v5216_v9, 0.0  ;;  %vm6649_vm9 = vmmov %vm6648_vm0 }
 0x187   : > { %v5492_v59 = vpop.permute.xlu0 %4009  ;;  %v3952_v46 = vunpack.i.h.bf16 %v3950_v29  ;;  %v4313_v14 = vpack.i.bf16 %v1338_v20, %v1693_v47 }
 0x188   : > { %4264 = vrot.lane.b32.xlu1 %v4263_v2, %s4545_s25  ;;  %v1466_v2 = vld [vmem:[#allocation2 + $0xd0] sm:$0xff] }
 0x189   : > { %4244 = vrot.lane.b32.xlu0 %v4243_v24, %s4549_s26  ;;  %v4268_v49 = vpack.i.bf16 %v1466_v2, %v1465_v27  ;;  %v2644_v15 = vsel %vm6645_vm5, %v2611_v44, %v3952_v46  ;;  %v3942_v46 = vunpack.i.h.bf16 %v5477_v3  ;;  %vm6650_vm5 = vcmask 654336  }
 0x18a   : > { %v3955_v37 = vpop.permute.xlu1 %3954 }
 0x18b   : > { %v5499_v26 = vpop.permute.xlu0 %4019  ;;  %v3957_v27 = vunpack.i.h.bf16 %v3955_v37  ;;  %v3956_v40 = vunpack.i.l.bf16 %v3955_v37 }
 0x18c   : > { %4289 = vrot.lane.b32.xlu1 %v4288_v22, %s4547_s12 }
 0x18d   : > { %4249 = vrot.lane.b32.xlu0 %v4248_v63, %s4545_s25  ;;  %v3951_v63 = vunpack.i.l.bf16 %v3950_v29  ;;  %v2610_v29 = vsel %vm6540_vm3, %v2577_v61, %v3936_v38  ;;  %v2676_v61 = vsel %vm6649_vm9, %v2644_v15, %v3957_v27  ;;  %vm6652_vm3 = vcmask 785408  }
 0x18e   : > { %v5508_v24 = vpop.permute.xlu1 %3964  ;;  %vm6654_vm9 = vcmask 916480  }
 0x18f   : > { %v5510_v56 = vpop.permute.xlu0 %4024  ;;  %v2643_v37 = vsel %vm6646_vm12, %v2610_v29, %v3951_v63  ;;  %v3941_v63 = vunpack.i.l.bf16 %v5477_v3  ;;  %vm6651_vm12 = vmmov %vm6650_vm5 }
 0x190   : > { %4299 = vrot.lane.b32.xlu1 %v4288_v22, %s4544_s18  ;;  %v2675_v11 = vsel %vm6648_vm0, %v2643_v37, %v3956_v40  ;;  %vm6653_vm0 = vmmov %vm6652_vm3 }
 0x191   : > { %4269 = vrot.lane.b32.xlu0 %v4268_v49, %s4547_s12 }
 0x192   : > { %v3970_v48 = vpop.permute.xlu1 %3969 }
 0x193   : > { %v5521_v2 = vpop.permute.xlu0 %4034  ;;  %v3972_v51 = vunpack.i.h.bf16 %v3970_v48  ;;  %v3971_v35 = vunpack.i.l.bf16 %v3970_v48  ;;  %v1625_v48 = vsel %vm6647_vm4, %v5216_v9, 0.0  ;;  %v5544_v9 = vld [vmem:[#allocation2 + $0xbf] sm:$0xff] }
 0x194   : > { %4304 = vrot.lane.b32.xlu1 %v4288_v22, %s4542_s27  ;;  %v1691_v22 = vsel %vm6639_vm14, %v5218_v10, 0.0  ;;  %vm6655_vm14 = vmmov %vm6654_vm9  ;;  %v4323_v3 = vpack.i.bf16 %v1338_v20, %v1625_v48  ;;  %v3962_v20 = vunpack.i.h.bf16 %v5458_v16  ;;  %v3961_v48 = vunpack.i.l.bf16 %v5458_v16 }
 0x195   : > { %4274 = vrot.lane.b32.xlu0 %v4268_v49, %s4544_s18  ;;  %v2708_v44 = vsel %vm6650_vm5, %v2675_v11, %v3971_v35  ;;  %v2709_v29 = vsel %vm6651_vm12, %v2676_v61, %v3972_v51  ;;  %v1662_v51 = vsel %vm5300_vm7, %v5243_v55, 0.0  ;;  %v3947_v61 = vunpack.i.h.bf16 %v5449_v42 }
 0x196   : > { %v3975_v50 = vpop.permute.xlu1 %3974  ;;  %vm6660_vm12 = vcmask 261120   ;;  %vm6666_vm7 = vcmask 654336  }
 0x197   : > { %v3977_v1 = vunpack.i.h.bf16 %v3975_v50  ;;  %v3976_v38 = vunpack.i.l.bf16 %v3975_v50  ;;  %v5537_v47 = vpop.permute.xlu0 %4044 }
 0x198   : > { %4314 = vrot.lane.b32.xlu1 %v4313_v14, %s4549_s26  ;;  %v4283_v14 = vpack.i.bf16 %v5544_v9, %v1691_v22  ;;  %v3967_v22 = vunpack.i.h.bf16 %v5508_v24 }
 0x199   : > { %v2741_v40 = vsel %vm6652_vm3, %v2708_v44, %v3976_v38  ;;  %v2742_v15 = vsel %vm6653_vm0, %v2709_v29, %v3977_v1  ;;  %4279 = vrot.lane.b32.xlu0 %v4268_v49, %s4542_s27  ;;  %v3946_v49 = vunpack.i.l.bf16 %v5449_v42  ;;  %v1623_v1 = vsel %vm6644_vm15, %v5218_v10, 0.0  ;;  %vm6661_vm0 = vmmov %vm6660_vm12 }
 0x19a   : > { %v2774_v50 = vsel %vm6654_vm9, %v2741_v40, %v3941_v63  ;;  %v2775_v27 = vsel %vm6655_vm14, %v2742_v15, %v3942_v46  ;;  %v5551_v37 = vpop.permute.xlu1 %3989  ;;  %v3966_v38 = vunpack.i.l.bf16 %v5508_v24  ;;  %v4328_v42 = vpack.i.bf16 %v1662_v51, %v5254_v7  ;;  %v4492_v15 = vld [vmem:[#allocation2 + $0x1f] sm:$0xff] }
 0x19b   : > { %v2806_v35 = vpack.c.bf16 %v2775_v27, %v2774_v50  ;;  %v5553_v11 = vpop.permute.xlu0 %4049  ;;  %v4293_v44 = vpack.i.bf16 %v5544_v9, %v1623_v1  ;;  %v1594_v29 = vsel %vm5304_vm2, %v5243_v55, 0.0  ;;  %vm6656_vm3 = vnez %v6543_v32  ;;  %v1468_v51 = vld [vmem:[#allocation2 + $0xe0] sm:$0xff] }
 0x19c   : > { %4324 = vrot.lane.b32.xlu1 %v4323_v3, %s4548_s15  ;;  %v6657_v16 = vsel %vm6656_vm3, %v4778_v41, 0.0  ;;  %vm6658_vm14 = vcmask 130048   ;;  %v1660_v50 = vsel %vm6640_vm6, %v5220_v25, 0.0  ;;  %vm6662_vm9 = vcmask 392192  }
 0x19d   : > { %2991 = vmatmul.mubr.bf16.vlgmr.msra.gmra.mrb[32].mxu0 %v2806_v35  ;;  %4284 = vrot.lane.b32.xlu0 %v4283_v14, %s4549_s26  ;;  %v2579_v40 = vsel %vm6658_vm14, %v6657_v16, %v3946_v49  ;;  %vm6659_vm5 = vmmov %vm6658_vm14  ;;  %v4333_v35 = vpack.i.bf16 %v1594_v29, %v5254_v7  ;;  %v1467_v14 = vld [vmem:[#allocation2 + $0xd8] sm:$0xff]  ;;  %v3926_v49 = vunpack.i.l.bf16 %v5447_v23  ;;  %vm6664_vm6 = vcmask 523264  }
 0x19e   : > { %v5570_v46 = vpop.permute.xlu1 %3994  ;;  %v2580_v24 = vsel %vm6659_vm5, %v4492_v15, %v3947_v61  ;;  %v2612_v27 = vsel %vm6660_vm12, %v2579_v40, %v3961_v48  ;;  %vm6663_vm3 = vmmov %vm6662_vm9  ;;  %v3927_v61 = vunpack.i.h.bf16 %v5447_v23  ;;  %v3932_v25 = vunpack.i.h.bf16 %v5456_v33 }
 0x19f   : > { %v5573_v63 = vpop.permute.xlu0 %4054  ;;  %v2613_v3 = vsel %vm6661_vm0, %v2580_v24, %v3962_v20  ;;  %v2645_v32 = vsel %vm6662_vm9, %v2612_v27, %v3966_v38  ;;  %v4308_v20 = vpack.i.bf16 %v1660_v50, %v5245_v58  ;;  %vm6665_vm14 = vmmov %vm6664_vm6  ;;  %v3931_v38 = vunpack.i.l.bf16 %v5456_v33  ;;  %v1469_v50 = vld [vmem:[#allocation2 + $0xe8] sm:$0xff]  ;;  %v1470_v27 = vld [vmem:[#allocation2 + $0xf0] sm:$0xff] }
 0x1a0   : > { %4329 = vrot.lane.b32.xlu1 %v4328_v42, %s4546_s29  ;;  %v2646_v41 = vsel %vm6663_vm3, %v2613_v3, %v3967_v22  ;;  %v2677_v48 = vsel %vm6664_vm6, %v2645_v32, %v3926_v49  ;;  %v4358_v22 = vpack.i.bf16 %v1468_v51, %v1467_v14  ;;  %v3982_v23 = vunpack.i.h.bf16 %v5467_v17  ;;  %vm6667_vm5 = vmmov %vm6666_vm7 }
 0x1a1   : > { %4294 = vrot.lane.b32.xlu0 %v4293_v44, %s4548_s15  ;;  %v2678_v7 = vsel %vm6665_vm14, %v2646_v41, %v3927_v61  ;;  %v3981_v42 = vunpack.i.l.bf16 %v5467_v17  ;;  %v3987_v29 = vunpack.i.h.bf16 %v5480_v18  ;;  %v3986_v16 = vunpack.i.l.bf16 %v5480_v18  ;;  %v4493_v61 = vld [vmem:[#allocation2 + $0x2f] sm:$0xff] }
 0x1a2   : > { %v5594_v55 = vpop.permute.xlu1 %3999  ;;  %v4012_v58 = vunpack.i.h.bf16 %v5492_v59  ;;  %v4011_v3 = vunpack.i.l.bf16 %v5492_v59  ;;  %v2711_v32 = vsel %vm6667_vm5, %v2678_v7, %v3982_v23  ;;  %vm6668_vm12 = vcmask 785408  }
 0x1a3   : > { %v5602_v1 = vpop.permute.xlu0 %4079  ;;  %v2710_v33 = vsel %vm6666_vm7, %v2677_v48, %v3981_v42  ;;  %vm6669_vm0 = vmmov %vm6668_vm12  ;;  %vm6670_vm9 = vnez %v6549_v60  ;;  %vm6672_vm3 = vcmask 130048   ;;  %vm6673_vm6 = vcmask 916480  }
 0x1a4   : > { %4334 = vrot.lane.b32.xlu1 %v4333_v35, %s4545_s25  ;;  %v6671_v41 = vsel %vm6670_vm9, %v4813_v4, 0.0  ;;  %vm6674_vm14 = vmmov %vm6673_vm6  ;;  %v4338_v34 = vpack.i.bf16 %v1470_v27, %v1469_v50  ;;  %vm6676_vm5 = vcmask 261120   ;;  %v4021_v42 = vunpack.i.l.bf16 %v5499_v26  ;;  %v1342_v50 = vld [vmem:[#allocation2 + $0xef] sm:$0xff] }
 0x1a5   : > { %4309 = vrot.lane.b32.xlu0 %v4308_v20, %s4546_s29  ;;  %v2581_v35 = vsel %vm6672_vm3, %v6671_v41, %v3931_v38  ;;  %vm6675_vm7 = vmmov %vm6672_vm3  ;;  %v6681_v27 = vld [vmem:[#allocation19_spill] sm:$0xff]  ;;  %v3996_v19 = vunpack.i.l.bf16 %v5570_v46  ;;  %v4051_v62 = vunpack.i.l.bf16 %v5553_v11 }
 0x1a6   : > { %v4005_v44 = vpop.permute.xlu1 %4004  ;;  %v2582_v49 = vsel %vm6675_vm7, %v4493_v61, %v3932_v25  ;;  %v4022_v25 = vunpack.i.h.bf16 %v5499_v26 }
 0x1a7   : > { %v4007_v40 = vunpack.i.h.bf16 %v4005_v44  ;;  %v4006_v15 = vunpack.i.l.bf16 %v4005_v44  ;;  %v5616_v24 = vpop.permute.xlu0 %4089  ;;  %v2615_v60 = vsel %vm6676_vm5, %v2582_v49, %v3987_v29 }
 0x1a8   : > { %4359 = vrot.lane.b32.xlu1 %v4358_v22, %s4547_s12 }
 0x1a9   : > { %v2744_v17 = vsel %vm6668_vm12, %v2711_v32, %v4007_v40  ;;  %v2743_v18 = vsel %vm6669_vm0, %v2710_v33, %v4006_v15  ;;  %4319 = vrot.lane.b32.xlu0 %v4318_v36, %s4545_s25  ;;  %vm6677_vm12 = vmmov %vm6676_vm5  ;;  %vm6678_vm0 = vcmask 392192   ;;  %v6680_v40 = vld [vmem:[#allocation7_spill] sm:$0xff]  ;;  %v4036_v33 = vunpack.i.l.bf16 %v5521_v2 }
 0x1aa   : > { %v4015_v14 = vpop.permute.xlu1 %4014  ;;  %v2776_v59 = vsel %vm6673_vm6, %v2743_v18, %v4011_v3  ;;  %v2777_v51 = vsel %vm6674_vm14, %v2744_v17, %v4012_v58  ;;  %v2614_v4 = vsel %vm6677_vm12, %v2581_v35, %v3986_v16  ;;  %vm6679_vm9 = vmmov %vm6678_vm0  ;;  %vm6682_vm6 = vnez %v6681_v27 }
 0x1ab   : > { %v4017_v20 = vunpack.i.h.bf16 %v4015_v14  ;;  %v4016_v48 = vunpack.i.l.bf16 %v4015_v14  ;;  %v5634_v7 = vpop.permute.xlu0 %4094  ;;  %v2808_v36 = vpack.c.bf16 %v2777_v51, %v2776_v59  ;;  %v1697_v58 = vsel %vm6682_vm6, %v5308_v0, 0.0 }
 0x1ac   : > { %4369 = vrot.lane.b32.xlu1 %v4358_v22, %s4544_s18  ;;  %v4037_v3 = vunpack.i.h.bf16 %v5521_v2  ;;  %vm6683_vm14 = vcmask 523264   ;;  %v3992_v17 = vunpack.i.h.bf16 %v5551_v37  ;;  %v3991_v18 = vunpack.i.l.bf16 %v5551_v37  ;;  %v6691_v37 = vld [vmem:[#allocation23_spill] sm:$0xff] }
 0x1ad   : > { %v2648_v38 = vsel %vm6678_vm0, %v2615_v60, %v4017_v20  ;;  %v2647_v23 = vsel %vm6679_vm9, %v2614_v4, %v4016_v48  ;;  %2999 = vmatmul.mubr.bf16.vlgmr.msra.gmra.mrb[0].mxu1 %v2808_v36  ;;  %4339 = vrot.lane.b32.xlu0 %v4338_v34, %s4547_s12  ;;  %vm6684_vm7 = vmmov %vm6683_vm14  ;;  %vm6685_vm5 = vcmask 654336   ;;  %v4383_v59 = vpack.i.bf16 %v1342_v50, %v1697_v58  ;;  %v5671_v36 = vld [vmem:[#allocation2 + $0xdf] sm:$0xff] }
 0x1ae   : > { %v4030_v44 = vpop.permute.xlu1 %4029  ;;  %3733 = vmatprep.mubr.msk.bf16.mxu1 %vm6672_vm3, %v6680_v40  ;;  %v2679_v32 = vsel %vm6683_vm14, %v2647_v23, %v4021_v42  ;;  %v2680_v26 = vsel %vm6684_vm7, %v2648_v38, %v4022_v25  ;;  %vm6686_vm12 = vmmov %vm6685_vm5  ;;  %vm6687_vm0 = vcmask 785408   ;;  %vm6689_vm3 = vcmask 916480   ;;  %v6693_v60 = vld [vmem:[#allocation24_spill] sm:$0xff] }
 0x1af   : > { %v4032_v29 = vunpack.i.h.bf16 %v4030_v44  ;;  %v4031_v15 = vunpack.i.l.bf16 %v4030_v44  ;;  %v5646_v16 = vpop.permute.xlu0 %4104  ;;  %vm6688_vm9 = vmmov %vm6687_vm0  ;;  %vm6692_vm7 = vnez %v6691_v37  ;;  %v1695_v4 = vsel %vm6647_vm4, %v6693_v60, 0.0 }
 0x1b0   : > { %4374 = vrot.lane.b32.xlu1 %v4358_v22, %s4542_s27  ;;  %vm6690_vm14 = vmmov %vm6689_vm3  ;;  %v1629_v20 = vsel %vm6692_vm7, %v5308_v0, 0.0  ;;  %v4027_v38 = vunpack.i.h.bf16 %v5510_v56  ;;  %v4026_v23 = vunpack.i.l.bf16 %v5510_v56  ;;  %v4353_v58 = vpack.i.bf16 %v5671_v36, %v1695_v4 }
 0x1b1   : > { %v2712_v41 = vsel %vm6685_vm5, %v2679_v32, %v4031_v15  ;;  %v2713_v35 = vsel %vm6686_vm12, %v2680_v26, %v4032_v29  ;;  %4344 = vrot.lane.b32.xlu0 %v4338_v34, %s4544_s18  ;;  %v4393_v42 = vpack.i.bf16 %v1342_v50, %v1629_v20  ;;  %v6694_v29 = vld [vmem:[#allocation12_spill] sm:$0xff]  ;;  %vm6695_vm5 = vcmask 130048   ;;  %v6696_v50 = vld [vmem:[#allocation3_spill] sm:$0xff]  ;;  %v6699_v32 = vld [vmem:[#allocation5_spill] sm:$0xff] }
 0x1b2   : > { %v4040_v14 = vpop.permute.xlu1 %4039  ;;  %v2745_v2 = vsel %vm6687_vm0, %v2712_v41, %v4036_v33  ;;  %v2746_v51 = vsel %vm6688_vm9, %v2713_v35, %v4037_v3  ;;  %v1627_v56 = vsel %vm6682_vm6, %v6693_v60, 0.0  ;;  %v6697_v3 = vsel %vm4879_vm8, %v6696_v50, 0.0  ;;  %vm6698_vm12 = vmmov %vm6695_vm5  ;;  %v1471_v20 = vld [vmem:[#allocation2 + $0xf8] sm:$0xff] }
 0x1b3   : > { %v5663_v61 = vpop.permute.xlu0 %4114  ;;  %v2778_v22 = vsel %vm6689_vm3, %v2745_v2, %v3991_v18  ;;  %v2779_v49 = vsel %vm6690_vm14, %v2746_v51, %v3992_v17  ;;  %v4042_v44 = vunpack.i.h.bf16 %v4040_v14  ;;  %v4041_v40 = vunpack.i.l.bf16 %v4040_v14  ;;  %vm6700_vm0 = vmmov %vm6695_vm5 }
 0x1b4   : > { %4384 = vrot.lane.b32.xlu1 %v4383_v59, %s4549_s26  ;;  %v2810_v48 = vpack.c.bf16 %v2779_v49, %v2778_v22  ;;  %v2583_v33 = vsel %vm6698_vm12, %v6697_v3, %v4026_v23  ;;  %v2584_v26 = vsel %vm6700_vm0, %v6699_v32, %v4027_v38  ;;  %vm6701_vm9 = vcmask 261120   ;;  %v6703_v22 = vld [vmem:[#allocation25_spill] sm:$0xff] }
 0x1b5   : > { %4349 = vrot.lane.b32.xlu0 %v4338_v34, %s4542_s27  ;;  %v1666_v34 = vsel %vm5400_vm10, %v5279_v31, 0.0  ;;  %v2616_v41 = vsel %vm6701_vm9, %v2583_v33, %v4041_v40  ;;  %vm6702_vm3 = vmmov %vm6701_vm9  ;;  %v4363_v59 = vpack.i.bf16 %v5671_v36, %v1627_v56  ;;  %v4047_v2 = vunpack.i.h.bf16 %v5537_v47 }
 0x1b6   : > { %3007 = vmatmul.mubr.bf16.gmra.mrb[4].mxu1 %v2810_v48  ;;  %v5679_v25 = vpop.permute.xlu1 %4059  ;;  %v4398_v18 = vpack.i.bf16 %v1666_v34, %v5310_v52  ;;  %v2617_v35 = vsel %vm6702_vm3, %v2584_v26, %v4042_v44  ;;  %v4046_v51 = vunpack.i.l.bf16 %v5537_v47  ;;  %v1664_v49 = vsel %vm5304_vm2, %v6703_v22, 0.0  ;;  %v1472_v48 = vld [vmem:[#allocation2 + $0x100] sm:$0xff]  ;;  %vm6712_vm9 = vmmov %vm6700_vm0 }
 0x1b7   : > { %3734 = vmatprep.mubr.msk.bf16.mxu1 %vm6695_vm5, %v6694_v29  ;;  %v5683_v15 = vpop.permute.xlu0 %4119  ;;  %v1596_v4 = vsel %vm5400_vm10, %v6703_v22, 0.0  ;;  %vm6704_vm8 = vcmask 392192   ;;  %v4403_v47 = vpack.i.bf16 %v1598_v53, %v5310_v52  ;;  %v4378_v40 = vpack.i.bf16 %v1664_v49, %v5291_v54  ;;  %v1635_v29 = vld [vmem:[#allocation2 + $0x108] sm:$0xff] }
 0x1b8   : > { %4394 = vrot.lane.b32.xlu1 %v4393_v42, %s4548_s15  ;;  %v2649_v31 = vsel %vm6704_vm8, %v2616_v41, %v4046_v51  ;;  %vm6705_vm14 = vmmov %vm6704_vm8  ;;  %v3997_v42 = vunpack.i.h.bf16 %v5570_v46  ;;  %v5734_v34 = vpack.i.bf16 %v1472_v48, %v1471_v20  ;;  %v4388_v56 = vpack.i.bf16 %v1596_v4, %v5291_v54  ;;  %v6710_v51 = vld [vmem:[#allocation4_spill] sm:$0xff]  ;;  %v4494_v20 = vld [vmem:[#allocation2 + $0x4f] sm:$0xff] }
 0x1b9   : > { %4354 = vrot.lane.b32.xlu0 %v4353_v58, %s4549_s26  ;;  %v2650_v38 = vsel %vm6705_vm14, %v2617_v35, %v4047_v2  ;;  %v1636_v58 = vld [vmem:[#allocation2 + $0x110] sm:$0xff]  ;;  %v4002_v52 = vunpack.i.h.bf16 %v5594_v55  ;;  %v4001_v50 = vunpack.i.l.bf16 %v5594_v55  ;;  %vm6706_vm2 = vcmask 523264  }
 0x1ba   : > { %v5701_v17 = vpop.permute.xlu1 %4064  ;;  %v2681_v46 = vsel %vm6706_vm2, %v2649_v31, %v3996_v19  ;;  %vm6707_vm10 = vmmov %vm6706_vm2  ;;  %v4052_v33 = vunpack.i.h.bf16 %v5553_v11  ;;  %v5744_v26 = vpack.i.bf16 %v1636_v58, %v1635_v29  ;;  %v1699_v55 = vsel %vm6692_vm7, %v5312_v57, 0.0  ;;  %v5766_v31 = vld [vmem:[#allocation2 + $0x107] sm:$0xff] }
 0x1bb   : > { %v5706_v14 = vpop.permute.xlu0 %4124  ;;  %v2682_v3 = vsel %vm6707_vm10, %v2650_v38, %v3997_v42  ;;  %v1086_v35 = vand.u32 15, %v864_v39  ;;  %v4081_v53 = vunpack.i.l.bf16 %v5602_v1  ;;  %vm6708_vm5 = vcmask 654336  }
 0x1bc   : > { %4399 = vrot.lane.b32.xlu1 %v4398_v18, %s4546_s29  ;;  %v2714_v2 = vsel %vm6708_vm5, %v2681_v46, %v4051_v62  ;;  %vm6709_vm12 = vmmov %vm6708_vm5  ;;  %v6711_v22 = vsel %vm5016_vm11, %v6710_v51, 0.0  ;;  %v2586_v48 = vsel %vm6712_vm9, %v4494_v20, %v4002_v52  ;;  %vm6713_vm3 = vcmask 785408   ;;  %v1602_v46 = vld [vmem:[#allocation2 + $0x10f] sm:$0xff] }
 0x1bd   : > { %4364 = vrot.lane.b32.xlu0 %v4363_v59, %s4548_s15  ;;  %v4082_v59 = vunpack.i.h.bf16 %v5602_v1  ;;  %v2715_v11 = vsel %vm6709_vm12, %v2682_v3, %v4052_v33  ;;  %v2585_v49 = vsel %vm6700_vm0, %v6711_v22, %v4001_v50  ;;  %vm6714_vm8 = vmmov %vm6713_vm3  ;;  %v4057_v38 = vunpack.i.h.bf16 %v5573_v63 }
 0x1be   : > { %v5724_v23 = vpop.permute.xlu1 %4069  ;;  %vm6715_vm14 = vcmask 916480   ;;  %vm6717_vm2 = vcmask 261120   ;;  %v1701_v3 = vsel %vm5314_vm1, %v5766_v31, 0.0  ;;  %vm5786_vm5 = vcmp.ne.s32.totalorder %v1086_v35, 15 }
 0x1bf   : > { %v5729_v44 = vpop.permute.xlu0 %4139  ;;  %vm6716_vm11 = vmmov %vm6715_vm14  ;;  %vm6721_vm12 = vcmask 392192   ;;  %v1670_v20 = vsel %vm5786_vm5, %v5387_v8, 0.0  ;;  %v4097_v8 = vunpack.i.h.bf16 %v5634_v7 }
 0x1c0   : > { %4404 = vrot.lane.b32.xlu1 %v4403_v47, %s4545_s25  ;;  %v4056_v47 = vunpack.i.l.bf16 %v5573_v63  ;;  %vm6718_vm10 = vmmov %vm6717_vm2 }
 0x1c1   : > { %4379 = vrot.lane.b32.xlu0 %v4378_v40, %s4546_s29  ;;  %v5772_v40 = vld [vmem:[#allocation2 + $0xff] sm:$0xff]  ;;  %v2619_v63 = vsel %vm6718_vm10, %v2586_v48, %v4057_v38  ;;  %vm6722_vm0 = vmmov %vm6721_vm12  ;;  %v4106_v48 = vunpack.i.l.bf16 %v5646_v16  ;;  %v4061_v38 = vunpack.i.l.bf16 %v5679_v25 }
 0x1c2   : > { %v4075_v32 = vpop.permute.xlu1 %4074  ;;  %v2618_v50 = vsel %vm6717_vm2, %v2585_v49, %v4056_v47  ;;  %v4448_v49 = vpack.i.bf16 %v1602_v46, %v1701_v3  ;;  %vm6728_vm2 = vcmask 785408  }
 0x1c3   : > { %v4077_v18 = vunpack.i.h.bf16 %v4075_v32  ;;  %v4076_v41 = vunpack.i.l.bf16 %v4075_v32  ;;  %v5746_v54 = vpop.permute.xlu0 %4149  ;;  %vm6729_vm10 = vmmov %vm6728_vm2 }
 0x1c4   : > { %4419 = vrot.lane.b32.xlu1 %v5734_v34, %s4547_s12 }
 0x1c5   : > { %v2748_v4 = vsel %vm6713_vm3, %v2715_v11, %v4077_v18  ;;  %v2747_v1 = vsel %vm6714_vm8, %v2714_v2, %v4076_v41  ;;  %4389 = vrot.lane.b32.xlu0 %v4388_v56, %s4545_s25  ;;  %v1631_v56 = vsel %vm5314_vm1, %v5312_v57, 0.0  ;;  %v4413_v18 = vpack.i.bf16 %v5772_v40, %v1699_v55  ;;  %v6723_v2 = vld [vmem:[#allocation16_spill] sm:$0xff] }
 0x1c6   : > { %v4085_v12 = vpop.permute.xlu1 %4084  ;;  %v2780_v42 = vsel %vm6715_vm14, %v2747_v1, %v4081_v53  ;;  %v2781_v19 = vsel %vm6716_vm11, %v2748_v4, %v4082_v59  ;;  %v4092_v41 = vunpack.i.h.bf16 %v5616_v24  ;;  %v4091_v59 = vunpack.i.l.bf16 %v5616_v24 }
 0x1c7   : > { %v4087_v29 = vunpack.i.h.bf16 %v4085_v12  ;;  %v4086_v58 = vunpack.i.l.bf16 %v4085_v12  ;;  %v5774_v39 = vpop.permute.xlu0 %4159  ;;  %v2812_v52 = vpack.c.bf16 %v2781_v19, %v2780_v42  ;;  %v4423_v35 = vpack.i.bf16 %v5772_v40, %v1631_v56 }
 0x1c8   : > { %4429 = vrot.lane.b32.xlu1 %v5734_v34, %s4544_s18  ;;  %v4107_v55 = vunpack.i.h.bf16 %v5646_v16  ;;  %vm6724_vm3 = vcmask 523264   ;;  %v4062_v1 = vunpack.i.h.bf16 %v5679_v25  ;;  %vm6726_vm14 = vcmask 654336  }
 0x1c9   : > { %v2652_v62 = vsel %vm6721_vm12, %v2619_v63, %v4087_v29  ;;  %v2651_v32 = vsel %vm6722_vm0, %v2618_v50, %v4086_v58  ;;  %3015 = vmatmul.mubr.bf16.gmra.mrb[8].mxu1 %v2812_v52  ;;  %4409 = vrot.lane.b32.xlu0 %v5744_v26, %s4547_s12  ;;  %vm6725_vm8 = vmmov %vm6724_vm3  ;;  %v4096_v16 = vunpack.i.l.bf16 %v5634_v7  ;;  %vm6730_vm12 = vcmask 916480  }
 0x1ca   : > { %v4100_v53 = vpop.permute.xlu1 %4099  ;;  %3735 = vmatprep.mubr.msk.bf16.mxu1 %vm6712_vm9, %v6723_v2  ;;  %v2683_v24 = vsel %vm6724_vm3, %v2651_v32, %v4091_v59  ;;  %v2684_v4 = vsel %vm6725_vm8, %v2652_v62, %v4092_v41  ;;  %vm6727_vm11 = vmmov %vm6726_vm14  ;;  %v1668_v7 = vsel %vm5404_vm13, %v5389_v43, 0.0  ;;  %vm6732_vm9 = vnez %v6565_v13  ;;  %v6735_v62 = vld [vmem:[#allocation28_spill] sm:$0xff]  ;;  %v6737_v41 = vld [vmem:[#allocation33_spill] sm:$0xff] }
 0x1cb   : > { %v4102_v11 = vunpack.i.h.bf16 %v4100_v53  ;;  %v4101_v51 = vunpack.i.l.bf16 %v4100_v53  ;;  %v5800_v22 = vpop.permute.xlu0 %4164  ;;  %vm6731_vm0 = vmmov %vm6730_vm12  ;;  %v6733_v63 = vsel %vm6732_vm9, %v5050_v45, 0.0  ;;  %vm6734_vm3 = vcmask 130048   ;;  %v6740_v2 = vld [vmem:[#allocation17_spill] sm:$0xff]  ;;  %v6742_v45 = vld [vmem:[#allocation34_spill] sm:$0xff] }
 0x1cc   : > { %4434 = vrot.lane.b32.xlu1 %v5734_v34, %s4542_s27  ;;  %v2587_v3 = vsel %vm6734_vm3, %v6733_v63, %v4096_v16  ;;  %vm6736_vm8 = vmmov %vm6734_vm3  ;;  %v4453_v59 = vpack.i.bf16 %v1670_v20, %v6737_v41  ;;  %v1705_v20 = vld [vmem:[#allocation2 + $0x118] sm:$0xff] }
 0x1cd   : > { %v2716_v47 = vsel %vm6726_vm14, %v2683_v24, %v4101_v51  ;;  %v2717_v12 = vsel %vm6727_vm11, %v2684_v4, %v4102_v11  ;;  %4414 = vrot.lane.b32.xlu0 %v4413_v18, %s4549_s26  ;;  %v2588_v32 = vsel %vm6736_vm8, %v6735_v62, %v4097_v8  ;;  %vm6738_vm14 = vcmask 261120   ;;  %vm6741_vm13 = vmmov %vm6734_vm3  ;;  %v6743_v11 = vld [vmem:[#allocation29_spill] sm:$0xff]  ;;  %v1671_v8 = vld [vmem:[#allocation2 + $0x117] sm:$0xff] }
 0x1ce   : > { %v4110_v42 = vpop.permute.xlu1 %4109  ;;  %v2749_v19 = vsel %vm6728_vm2, %v2716_v47, %v4106_v48  ;;  %v2750_v29 = vsel %vm6729_vm10, %v2717_v12, %v4107_v55  ;;  %vm6739_vm11 = vmmov %vm6738_vm14  ;;  %vm6744_vm2 = vnez %v6743_v11  ;;  %v4116_v55 = vunpack.i.l.bf16 %v5663_v61  ;;  %v1706_v48 = vld [vmem:[#allocation2 + $0x120] sm:$0xff] }
 0x1cf   : > { %v4112_v34 = vunpack.i.h.bf16 %v4110_v42  ;;  %v4111_v58 = vunpack.i.l.bf16 %v4110_v42  ;;  %v5820_v52 = vpop.permute.xlu0 %4174  ;;  %v2782_v25 = vsel %vm6730_vm12, %v2749_v19, %v4061_v38  ;;  %v2783_v56 = vsel %vm6731_vm0, %v2750_v29, %v4062_v1  ;;  %v1672_v62 = vld [vmem:[#allocation2 + $0x11f] sm:$0xff] }
 0x1d0   : > { %4449 = vrot.lane.b32.xlu1 %v4448_v49, %s4549_s26  ;;  %v2814_v50 = vpack.c.bf16 %v2783_v56, %v2782_v25  ;;  %v1633_v51 = vsel %vm6744_vm2, %v5766_v31, 0.0  ;;  %v4117_v49 = vunpack.i.h.bf16 %v5663_v61  ;;  %vm6745_vm10 = vcmask 392192  }
 0x1d1   : > { %4424 = vrot.lane.b32.xlu0 %v4423_v35, %s4548_s15  ;;  %v2620_v53 = vsel %vm6738_vm14, %v2587_v3, %v4111_v58  ;;  %v2621_v21 = vsel %vm6739_vm11, %v2588_v32, %v4112_v34  ;;  %v4438_v35 = vpack.i.bf16 %v1668_v7, %v6742_v45  ;;  %vm6746_vm12 = vmmov %vm6745_vm10  ;;  %v4463_v38 = vpack.i.bf16 %v1602_v46, %v1633_v51  ;;  %v6753_v32 = vld [vmem:[#allocation6_spill] sm:$0xff] }
 0x1d2   : > { %3023 = vmatmul.mubr.bf16.gmra.mrb[12].mxu1 %v2814_v50  ;;  %v5836_v18 = vpop.permute.xlu1 %4129  ;;  %v2653_v24 = vsel %vm6745_vm10, %v2620_v53, %v4116_v55  ;;  %v2654_v4 = vsel %vm6746_vm12, %v2621_v21, %v4117_v49  ;;  %v4067_v47 = vunpack.i.h.bf16 %v5701_v17  ;;  %v4066_v31 = vunpack.i.l.bf16 %v5701_v17  ;;  %vm6755_vm11 = vmmov %vm6741_vm13  ;;  %v4495_v53 = vld [vmem:[#allocation2 + $0x6f] sm:$0xff] }
 0x1d3   : > { %3736 = vmatprep.mubr.msk.bf16.mxu1 %vm6741_vm13, %v6740_v2  ;;  %v5843_v13 = vpop.permute.xlu0 %4184  ;;  %v1600_v61 = vsel %vm5786_vm5, %v5389_v43, 0.0  ;;  %v4473_v16 = vpack.i.bf16 %v1706_v48, %v1705_v20  ;;  %v4072_v42 = vunpack.i.h.bf16 %v5724_v23  ;;  %v4071_v19 = vunpack.i.l.bf16 %v5724_v23  ;;  %vm6756_vm13 = vmmov %vm6755_vm11 }
 0x1d4   : > { %4454 = vrot.lane.b32.xlu1 %v4453_v59, %s4546_s29  ;;  %vm6747_vm0 = vcmask 523264   ;;  %v4122_v29 = vunpack.i.h.bf16 %v5683_v15  ;;  %v4121_v34 = vunpack.i.l.bf16 %v5683_v15  ;;  %v4458_v50 = vpack.i.bf16 %v1600_v61, %v6742_v45  ;;  %v6751_v15 = vld [vmem:[#allocation8_spill] sm:$0xff] }
 0x1d5   : > { %4439 = vrot.lane.b32.xlu0 %v4438_v35, %s4546_s29  ;;  %v2685_v46 = vsel %vm6747_vm0, %v2653_v24, %v4066_v31  ;;  %vm6748_vm9 = vmmov %vm6747_vm0  ;;  %v1703_v23 = vsel %vm6744_vm2, %v1671_v8, 0.0  ;;  %v4151_v7 = vunpack.i.l.bf16 %v5746_v54  ;;  %vm6749_vm3 = vcmask 654336  }
 0x1d6   : > { %v5855_v1 = vpop.permute.xlu1 %4134  ;;  %v2686_v17 = vsel %vm6748_vm9, %v2654_v4, %v4067_v47  ;;  %v2718_v63 = vsel %vm6749_vm3, %v2685_v46, %v4121_v34  ;;  %vm6750_vm8 = vmmov %vm6749_vm3  ;;  %vm6752_vm14 = vnez %v6751_v15  ;;  %v2590_v21 = vsel %vm6756_vm13, %v4495_v53, %v4072_v42  ;;  %v6765_v46 = vld [vmem:[#allocation20_spill] sm:$0xff] }
 0x1d7   : > { %v5859_v12 = vpop.permute.xlu0 %4189  ;;  %v2719_v3 = vsel %vm6750_vm8, %v2686_v17, %v4122_v29  ;;  %v6754_v41 = vsel %vm6752_vm14, %v6753_v32, 0.0  ;;  %vm6757_vm10 = vcmask 785408   ;;  %v4127_v45 = vunpack.i.h.bf16 %v5706_v14 }
 0x1d8   : > { %4464 = vrot.lane.b32.xlu1 %v4463_v38, %s4548_s15  ;;  %v2589_v59 = vsel %vm6755_vm11, %v6754_v41, %v4071_v19  ;;  %vm6758_vm12 = vmmov %vm6757_vm10  ;;  %v4126_v35 = vunpack.i.l.bf16 %v5706_v14  ;;  %vm6759_vm0 = vcmask 916480   ;;  %v4468_v38 = vpack.i.bf16 %v1672_v62, %v1703_v23 }
 0x1d9   : > { %4444 = vrot.lane.b32.xlu0 %v5744_v26, %s4544_s18  ;;  %v4152_v26 = vunpack.i.h.bf16 %v5746_v54  ;;  %vm6760_vm9 = vmmov %vm6759_vm0  ;;  %vm6761_vm3 = vcmask 261120   ;;  %vm6763_vm14 = vcmask 392192   ;;  %v4162_v14 = vunpack.i.h.bf16 %v5774_v39 }
 0x1da   : > { %v4145_v58 = vpop.permute.xlu1 %4144  ;;  %v2622_v47 = vsel %vm6761_vm3, %v2589_v59, %v4126_v35  ;;  %vm6762_vm8 = vmmov %vm6761_vm3  ;;  %v4166_v42 = vunpack.i.l.bf16 %v5800_v22  ;;  %v4167_v17 = vunpack.i.h.bf16 %v5800_v22  ;;  %v4132_v23 = vunpack.i.h.bf16 %v5836_v18 }
 0x1db   : > { %v4147_v25 = vunpack.i.h.bf16 %v4145_v58  ;;  %v4146_v43 = vunpack.i.l.bf16 %v4145_v58  ;;  %v5873_v56 = vpop.permute.xlu0 %4194  ;;  %v2623_v31 = vsel %vm6762_vm8, %v2590_v21, %v4127_v45  ;;  %vm6764_vm11 = vmmov %vm6763_vm14  ;;  %v4187_v35 = vunpack.i.h.bf16 %v5843_v13 }
 0x1dc   : > { %4474 = vrot.lane.b32.xlu1 %v4473_v16, %s4547_s12  ;;  %v4161_v16 = vunpack.i.l.bf16 %v5774_v39  ;;  %vm6774_vm8 = vmmov %vm6756_vm13 }
 0x1dd   : > { %v2752_v2 = vsel %vm6757_vm10, %v2719_v3, %v4147_v25  ;;  %v2751_v54 = vsel %vm6758_vm12, %v2718_v63, %v4146_v43  ;;  %4459 = vrot.lane.b32.xlu0 %v4458_v50, %s4545_s25  ;;  %v4177_v25 = vunpack.i.h.bf16 %v5820_v52  ;;  %v4176_v43 = vunpack.i.l.bf16 %v5820_v52  ;;  %v6770_v63 = vld [vmem:[#allocation9_spill] sm:$0xff] }
 0x1de   : > { %v4155_v51 = vpop.permute.xlu1 %4154  ;;  %v2784_v49 = vsel %vm6759_vm0, %v2751_v54, %v4151_v7  ;;  %v2785_v55 = vsel %vm6760_vm9, %v2752_v2, %v4152_v26  ;;  %vm6766_vm10 = vcmask 523264   ;;  %v4131_v26 = vunpack.i.l.bf16 %v5836_v18  ;;  %v6772_v3 = vld [vmem:[#allocation13_spill] sm:$0xff]  ;;  %v6779_v54 = vld [vmem:[#allocation32_spill] sm:$0xff] }
 0x1df   : > { %v4157_v20 = vunpack.i.h.bf16 %v4155_v51  ;;  %v4156_v48 = vunpack.i.l.bf16 %v4155_v51  ;;  %v5896_v24 = vpop.permute.xlu0 %4199  ;;  %v2816_v4 = vpack.c.bf16 %v2785_v55, %v2784_v49  ;;  %vm6767_vm12 = vmmov %vm6766_vm10  ;;  %vm6768_vm0 = vcmask 654336  }
 0x1e0   : > { %vm6769_vm9 = vmmov %vm6768_vm0  ;;  %vm6771_vm3 = vnez %v6770_v63  ;;  %v4186_v51 = vunpack.i.l.bf16 %v5843_v13  ;;  %v4137_v55 = vunpack.i.h.bf16 %v5855_v1  ;;  %v6795_v63 = vld [vmem:[#allocation22_spill] sm:$0xff] }
 0x1e1   : > { %v2656_v61 = vsel %vm6763_vm14, %v2623_v31, %v4157_v20  ;;  %v2655_v8 = vsel %vm6764_vm11, %v2622_v47, %v4156_v48  ;;  %3031 = vmatmul.mubr.bf16.gmra.mrb[16].mxu1 %v2816_v4  ;;  %4469 = vrot.lane.b32.xlu0 %v4468_v38, %s4549_s26  ;;  %v6773_v62 = vsel %vm6771_vm3, %v6772_v3, 0.0  ;;  %vm6775_vm14 = vcmask 785408  }
 0x1e2   : > { %v4170_v19 = vpop.permute.xlu1 %4169  ;;  %3737 = vmatprep.mubr.msk.bf16.mxu1 %vm6756_vm13, %v6765_v46  ;;  %v2687_v50 = vsel %vm6766_vm10, %v2655_v8, %v4161_v16  ;;  %v2688_v39 = vsel %vm6767_vm12, %v2656_v61, %v4162_v14  ;;  %v2591_v15 = vsel %vm6774_vm8, %v6773_v62, %v4166_v42  ;;  %vm6776_vm11 = vmmov %vm6775_vm14  ;;  %vm6777_vm13 = vcmask 916480   ;;  %v6787_v42 = vld [vmem:[#allocation21_spill] sm:$0xff] }
 0x1e3   : > { %v4172_v29 = vunpack.i.h.bf16 %v4170_v19  ;;  %v4171_v34 = vunpack.i.l.bf16 %v4170_v19  ;;  %v5909_v58 = vpop.permute.xlu0 %4204  ;;  %vm6778_vm10 = vmmov %vm6777_vm13  ;;  %v4136_v20 = vunpack.i.l.bf16 %v5855_v1  ;;  %v4192_v38 = vunpack.i.h.bf16 %v5859_v12 }
 0x1e4   : > { %vm6780_vm12 = vmmov %vm6774_vm8  ;;  %v4191_v47 = vunpack.i.l.bf16 %v5859_v12  ;;  %vm6783_vm3 = vcmask 392192   ;;  %v4142_v3 = vunpack.i.h.bf16 %v5729_v44  ;;  %v4141_v62 = vunpack.i.l.bf16 %v5729_v44 }
 0x1e5   : > { %v2720_v7 = vsel %vm6768_vm0, %v2687_v50, %v4171_v34  ;;  %v2721_v22 = vsel %vm6769_vm9, %v2688_v39, %v4172_v29  ;;  %v2592_v45 = vsel %vm6780_vm12, %v6779_v54, %v4167_v17  ;;  %vm6781_vm0 = vcmask 261120   ;;  %vm6784_vm8 = vmmov %vm6783_vm3  ;;  %v6797_v54 = vld [vmem:[#allocation10_spill] sm:$0xff] }
 0x1e6   : > { %v4180_v32 = vpop.permute.xlu1 %4179  ;;  %v2753_v52 = vsel %vm6775_vm14, %v2720_v7, %v4176_v43  ;;  %v2754_v41 = vsel %vm6776_vm11, %v2721_v22, %v4177_v25  ;;  %vm6782_vm9 = vmmov %vm6781_vm0  ;;  %vm6785_vm14 = vcmask 523264  }
 0x1e7   : > { %v4182_v59 = vunpack.i.h.bf16 %v4180_v32  ;;  %v4181_v53 = vunpack.i.l.bf16 %v4180_v32  ;;  %v5926_v21 = vpop.permute.xlu0 %4209  ;;  %v2786_v18 = vsel %vm6777_vm13, %v2753_v52, %v4131_v26  ;;  %v2787_v2 = vsel %vm6778_vm10, %v2754_v41, %v4132_v23  ;;  %vm6786_vm11 = vmmov %vm6785_vm14 }
 0x1e8   : > { %v2818_v49 = vpack.c.bf16 %v2787_v2, %v2786_v18  ;;  %vm6788_vm13 = vmmov %vm6780_vm12  ;;  %vm6789_vm10 = vcmask 654336   ;;  %v4196_v32 = vunpack.i.l.bf16 %v5873_v56 }
 0x1e9   : > { %v2624_v48 = vsel %vm6781_vm0, %v2591_v15, %v4181_v53  ;;  %v2625_v4 = vsel %vm6782_vm9, %v2592_v45, %v4182_v59  ;;  %vm6790_vm12 = vmmov %vm6789_vm10  ;;  %vm6791_vm0 = vcmask 785408   ;;  %v4197_v15 = vunpack.i.h.bf16 %v5873_v56  ;;  %v6799_v45 = vld [vmem:[#allocation11_spill] sm:$0xff] }
 0x1ea   : > { %v2657_v31 = vsel %vm6783_vm3, %v2624_v48, %v4186_v51  ;;  %v2658_v61 = vsel %vm6784_vm8, %v2625_v4, %v4187_v35  ;;  %3039 = vmatmul.mubr.bf16.gmra.mrb[20].mxu1 %v2818_v49  ;;  %v4215_v8 = vpop.permute.xlu1 %4214  ;;  %vm6792_vm9 = vmmov %vm6791_vm0  ;;  %vm6793_vm3 = vcmask 916480   ;;  %v4496_v49 = vld [vmem:[#allocation2 + $0x8f] sm:$0xff] }
 0x1eb   : > { %v2689_v13 = vsel %vm6785_vm14, %v2657_v31, %v4136_v20  ;;  %v2690_v14 = vsel %vm6786_vm11, %v2658_v61, %v4137_v55  ;;  %v4217_v16 = vunpack.i.h.bf16 %v4215_v8  ;;  %v4216_v1 = vunpack.i.l.bf16 %v4215_v8  ;;  %3738 = vmatprep.mubr.msk.bf16.mxu1 %vm6788_vm13, %v6787_v42  ;;  %v4220_v19 = vpop.permute.xlu0 %4219  ;;  %vm6794_vm8 = vmmov %vm6793_vm3 }
 0x1ec   : > { %v2722_v46 = vsel %vm6789_vm10, %v2689_v13, %v4191_v47  ;;  %v2723_v12 = vsel %vm6790_vm12, %v2690_v14, %v4192_v38  ;;  %v4222_v17 = vunpack.i.h.bf16 %v4220_v19  ;;  %v4221_v29 = vunpack.i.l.bf16 %v4220_v19  ;;  %vm6796_vm14 = vmmov %vm6788_vm13 }
 0x1ed   : > { %v2756_v34 = vsel %vm6791_vm0, %v2723_v12, %v4217_v16  ;;  %v2755_v25 = vsel %vm6792_vm9, %v2722_v46, %v4216_v1  ;;  %vm6798_vm11 = vnez %v6797_v54  ;;  %vm6801_vm10 = vmmov %vm6788_vm13  ;;  %vm6802_vm12 = vcmask 261120  }
 0x1ee   : > { %v4235_v43 = vpop.permute.xlu1 %4234  ;;  %v2788_v50 = vsel %vm6793_vm3, %v2755_v25, %v4221_v29  ;;  %v2789_v39 = vsel %vm6794_vm8, %v2756_v34, %v4222_v17  ;;  %v6800_v35 = vsel %vm6798_vm11, %v6799_v45, 0.0  ;;  %v2594_v44 = vsel %vm6801_vm10, %v4496_v49, %v4142_v3  ;;  %vm6803_vm0 = vmmov %vm6802_vm12 }
 0x1ef   : > { %v4225_v23 = vpop.permute.xlu0 %4224  ;;  %v2820_v26 = vpack.c.bf16 %v2789_v39, %v2788_v50  ;;  %v2593_v51 = vsel %vm6788_vm13, %v6800_v35, %v4141_v62  ;;  %v2627_v56 = vsel %vm6802_vm12, %v2594_v44, %v4197_v15  ;;  %vm6804_vm9 = vcmask 392192   ;;  %v4497_v15 = vld [vmem:[#allocation2 + $0x9f] sm:$0xff] }
 0x1f0   : > { %v4227_v41 = vunpack.i.h.bf16 %v4225_v23  ;;  %v4226_v59 = vunpack.i.l.bf16 %v4225_v23  ;;  %v2626_v48 = vsel %vm6803_vm0, %v2593_v51, %v4196_v32  ;;  %vm6805_vm3 = vmmov %vm6804_vm9  ;;  %vm6806_vm8 = vcmask 523264   ;;  %v4491_v35 = vld [vmem:[%s6482_s3] sm:$0xff]  }
 0x1f1   : > { %v4202_v16 = vunpack.i.h.bf16 %v5896_v24  ;;  %v4201_v1 = vunpack.i.l.bf16 %v5896_v24  ;;  %vm6808_vm11 = vcmask 654336   ;;  %vm6810_vm10 = vcmask 785408   ;;  %3849 = vmatprep.subr.bf16.mxu0 %v4491_v35 }
 0x1f2   : > { %v4255_v7 = vpop.permute.xlu1 %4254  ;;  %3047 = vmatmul.mubr.bf16.gmra.mrb[24].mxu1 %v2820_v26  ;;  %v2660_v38 = vsel %vm6804_vm9, %v2627_v56, %v4227_v41  ;;  %v2659_v47 = vsel %vm6805_vm3, %v2626_v48, %v4226_v59  ;;  %vm6809_vm13 = vmmov %vm6808_vm11  ;;  %vm6812_vm0 = vcmask 916480   ;;  %v4237_v23 = vunpack.i.h.bf16 %v4235_v43  ;;  %v6818_v41 = vld [vmem:[#allocation14_spill] sm:$0xff]  ;;  %3850 = vmatpush3.bf16.msra.mxu0 %v4491_v35 }
 0x1f3   : > { %v4230_v22 = vpop.permute.xlu0 %4229  ;;  %3739 = vmatprep.mubr.msk.bf16.mxu1 %vm6796_vm14, %v6795_v63  ;;  %vm6807_vm14 = vmmov %vm6806_vm8  ;;  %v4236_v24 = vunpack.i.l.bf16 %v4235_v43  ;;  %vm6815_vm3 = vcmask 130048   ;;  %v4257_v54 = vunpack.i.h.bf16 %v4255_v7  ;;  %v4256_v45 = vunpack.i.l.bf16 %v4255_v7 }
 0x1f4   : > { %v4232_v18 = vunpack.i.h.bf16 %v4230_v22  ;;  %v4231_v2 = vunpack.i.l.bf16 %v4230_v22  ;;  %vm6811_vm12 = vmmov %vm6810_vm10  ;;  %v6814_v22 = vld [vmem:[#allocation26_spill] sm:$0xff] }
 0x1f5   : > { %vm6813_vm9 = vmmov %vm6812_vm0 }
 0x1f6   : > { %v5958_v52 = vpop.permute.xlu1 %4259  ;;  %v2691_v61 = vsel %vm6806_vm8, %v2659_v47, %v4231_v2  ;;  %v2692_v8 = vsel %vm6807_vm14, %v2660_v38, %v4232_v18  ;;  %vm6816_vm8 = vmmov %vm6815_vm3  ;;  %vm6817_vm14 = vnez %v6588_v28  ;;  %v4212_v38 = vunpack.i.h.bf16 %v5926_v21 }
 0x1f7   : > { %v4240_v53 = vpop.permute.xlu0 %4239  ;;  %v2596_v32 = vsel %vm6816_vm8, %v4497_v15, %v4237_v23  ;;  %v6819_v59 = vsel %vm6817_vm14, %v6818_v41, 0.0  ;;  %v4211_v47 = vunpack.i.l.bf16 %v5926_v21  ;;  %vm6827_vm8 = vcmask 654336   ;;  %v4498_v23 = vld [vmem:[#allocation2 + $0xaf] sm:$0xff] }
 0x1f8   : > { %v4242_v55 = vunpack.i.h.bf16 %v4240_v53  ;;  %v4241_v20 = vunpack.i.l.bf16 %v4240_v53  ;;  %vm6828_vm14 = vmmov %vm6827_vm8 }
 0x1fa   : > { %v5968_v4 = vpop.permute.xlu1 %4264  ;;  %v2724_v42 = vsel %vm6808_vm11, %v2691_v61, %v4241_v20  ;;  %v2725_v19 = vsel %vm6809_vm13, %v2692_v8, %v4242_v55  ;;  %vm6820_vm11 = vmmov %vm6815_vm3  ;;  %vm6821_vm13 = vcmask 261120   ;;  %v4207_v55 = vunpack.i.h.bf16 %v5909_v58 }
 0x1fb   : > { %v4245_v31 = vpop.permute.xlu0 %4244  ;;  %v2595_v53 = vsel %vm6820_vm11, %v6819_v59, %v4236_v24  ;;  %v4206_v20 = vunpack.i.l.bf16 %v5909_v58  ;;  %v4261_v61 = vunpack.i.l.bf16 %v5958_v52  ;;  %v4266_v58 = vunpack.i.l.bf16 %v5968_v4 }
 0x1fc   : > { %v4247_v13 = vunpack.i.h.bf16 %v4245_v31  ;;  %v4246_v14 = vunpack.i.l.bf16 %v4245_v31  ;;  %v4262_v31 = vunpack.i.h.bf16 %v5958_v52  ;;  %vm6829_vm11 = vcmask 785408   ;;  %v6831_v52 = vld [vmem:[#allocation15_spill] sm:$0xff] }
 0x1fe   : > { %v2757_v46 = vsel %vm6810_vm10, %v2724_v42, %v4246_v14  ;;  %v2758_v12 = vsel %vm6811_vm12, %v2725_v19, %v4247_v13  ;;  %v4290_v17 = vpop.permute.xlu1 %4289  ;;  %vm6822_vm10 = vmmov %vm6821_vm13  ;;  %vm6823_vm12 = vcmask 392192   ;;  %v4267_v13 = vunpack.i.h.bf16 %v5968_v4 }
 0x1ff   : > { %v4250_v29 = vpop.permute.xlu0 %4249  ;;  %v2790_v34 = vsel %vm6812_vm0, %v2757_v46, %v4201_v1  ;;  %v2791_v25 = vsel %vm6813_vm9, %v2758_v12, %v4202_v16  ;;  %vm6824_vm0 = vmmov %vm6823_vm12  ;;  %vm6825_vm9 = vcmask 523264   ;;  %v4292_v1 = vunpack.i.h.bf16 %v4290_v17 }
 0x200   : > { %v2822_v50 = vpack.c.bf16 %v2791_v25, %v2790_v34  ;;  %v4252_v63 = vunpack.i.h.bf16 %v4250_v29  ;;  %v4251_v3 = vunpack.i.l.bf16 %v4250_v29  ;;  %v4291_v42 = vunpack.i.l.bf16 %v4290_v17 }
 0x201   : > { %v6832_v34 = vsel %vm6644_vm15, %v6831_v52, 0.0 }
 0x202   : > { %3055 = vmatmul.mubr.bf16.gmra.mrb[28].mxu1 %v2822_v50  ;;  %v5982_v39 = vpop.permute.xlu1 %4299  ;;  %v2628_v43 = vsel %vm6821_vm13, %v2595_v53, %v4251_v3  ;;  %v2629_v2 = vsel %vm6822_vm10, %v2596_v32, %v4252_v63  ;;  %vm6830_vm13 = vmmov %vm6829_vm11  ;;  %vm6833_vm10 = vcmask 130048  }
 0x203   : > { %v5984_v26 = vpop.permute.xlu0 %4269  ;;  %3740 = vmatprep.mubr.msk.bf16.mxu1 %vm6815_vm3, %v6814_v22  ;;  %v2661_v49 = vsel %vm6823_vm12, %v2628_v43, %v4256_v45  ;;  %v2662_v28 = vsel %vm6824_vm0, %v2629_v2, %v4257_v54  ;;  %vm6826_vm3 = vmmov %vm6825_vm9  ;;  %v2597_v4 = vsel %vm6833_vm10, %v6832_v34, %v4211_v47  ;;  %vm6834_vm12 = vcmask 916480   ;;  %v6841_v54 = vld [vmem:[#allocation27_spill] sm:$0xff] }
 0x204   : > { %v2693_v7 = vsel %vm6825_vm9, %v2661_v49, %v4206_v20  ;;  %v2694_v48 = vsel %vm6826_vm3, %v2662_v28, %v4207_v55  ;;  %vm6835_vm0 = vmmov %vm6834_vm12  ;;  %vm6837_vm3 = vcmask 261120   ;;  %v4302_v53 = vunpack.i.h.bf16 %v5982_v39 }
 0x205   : > { %v2726_v19 = vsel %vm6827_vm8, %v2693_v7, %v4261_v61  ;;  %v2727_v46 = vsel %vm6828_vm14, %v2694_v48, %v4262_v31  ;;  %vm6836_vm9 = vmmov %vm6833_vm10  ;;  %vm6839_vm14 = vcmask 392192   ;;  %v4301_v43 = vunpack.i.l.bf16 %v5982_v39 }
 0x206   : > { %v5988_v62 = vpop.permute.xlu1 %4304  ;;  %v2598_v24 = vsel %vm6836_vm9, %v4498_v23, %v4212_v38  ;;  %vm6838_vm8 = vmmov %vm6837_vm3  ;;  %v4272_v7 = vunpack.i.h.bf16 %v5984_v26  ;;  %v4271_v48 = vunpack.i.l.bf16 %v5984_v26 }
 0x207   : > { %v5996_v18 = vpop.permute.xlu0 %4274  ;;  %v2631_v15 = vsel %vm6837_vm3, %v2598_v24, %v4267_v13  ;;  %v2630_v32 = vsel %vm6838_vm8, %v2597_v4, %v4266_v58  ;;  %vm6840_vm15 = vmmov %vm6839_vm14  ;;  %vm6849_vm8 = vcmask 916480   ;;  %v4306_v26 = vunpack.i.l.bf16 %v5988_v62 }
 0x20a   : > { %v4315_v51 = vpop.permute.xlu1 %4314 }
 0x20b   : > { %v6005_v44 = vpop.permute.xlu0 %4279  ;;  %v4317_v49 = vunpack.i.h.bf16 %v4315_v51  ;;  %v4316_v28 = vunpack.i.l.bf16 %v4315_v51 }
 0x20e   : > { %v6009_v56 = vpop.permute.xlu1 %4324 }
 0x20f   : > { %v4285_v8 = vpop.permute.xlu0 %4284 }
 0x210   : > { %v4287_v14 = vunpack.i.h.bf16 %v4285_v8  ;;  %v4286_v16 = vunpack.i.l.bf16 %v4285_v8 }
 0x212   : > { %v2760_v12 = vsel %vm6829_vm11, %v2727_v46, %v4287_v14  ;;  %v2759_v21 = vsel %vm6830_vm13, %v2726_v19, %v4286_v16  ;;  %v6023_v29 = vpop.permute.xlu1 %4329  ;;  %vm6842_vm11 = vmmov %vm6836_vm9  ;;  %vm6843_vm13 = vcmask 523264   ;;  %vm6847_vm9 = vcmask 785408   ;;  %v6851_v46 = vld [vmem:[#allocation30_spill] sm:$0xff] }
 0x213   : > { %v4295_v25 = vpop.permute.xlu0 %4294  ;;  %v2792_v50 = vsel %vm6834_vm12, %v2759_v21, %v4291_v42  ;;  %v2793_v17 = vsel %vm6835_vm0, %v2760_v12, %v4292_v1  ;;  %vm6844_vm10 = vmmov %vm6843_vm13  ;;  %vm6845_vm12 = vcmask 654336   ;;  %v4307_v16 = vunpack.i.h.bf16 %v5988_v62 }
 0x214   : > { %v4297_v22 = vunpack.i.h.bf16 %v4295_v25  ;;  %v4296_v63 = vunpack.i.l.bf16 %v4295_v25  ;;  %v2824_v3 = vpack.c.bf16 %v2793_v17, %v2792_v50  ;;  %vm6846_vm0 = vmmov %vm6845_vm12  ;;  %v6853_v21 = vsel %vm6647_vm4, %v5218_v10, 0.0 }
 0x215   : > { %vm6848_vm3 = vmmov %vm6847_vm9  ;;  %v2599_v52 = vsel %vm6842_vm11, %v6853_v21, %v4306_v26  ;;  %v4327_v50 = vunpack.i.h.bf16 %v6009_v56  ;;  %v4326_v17 = vunpack.i.l.bf16 %v6009_v56  ;;  %vm6859_vm4 = vcmask 523264  }
 0x216   : > { %v2664_v5 = vsel %vm6839_vm14, %v2631_v15, %v4297_v22  ;;  %v2663_v41 = vsel %vm6840_vm15, %v2630_v32, %v4296_v63  ;;  %3063 = vmatmul.mubr.bf16.gmra.mrb[32].mxu1 %v2824_v3  ;;  %v6037_v59 = vpop.permute.xlu1 %4334  ;;  %vm6850_vm14 = vmmov %vm6849_vm8  ;;  %v4277_v22 = vunpack.i.h.bf16 %v5996_v18  ;;  %v4282_v32 = vunpack.i.h.bf16 %v6005_v44 }
 0x217   : > { %v4310_v2 = vpop.permute.xlu0 %4309  ;;  %3741 = vmatprep.mubr.msk.bf16.mxu1 %vm6842_vm11, %v6841_v54  ;;  %v2695_v55 = vsel %vm6843_vm13, %v2663_v41, %v4301_v43  ;;  %v2696_v20 = vsel %vm6844_vm10, %v2664_v5, %v4302_v53  ;;  %vm6852_vm15 = vmmov %vm6842_vm11  ;;  %vm6855_vm10 = vcmask 261120   ;;  %v4281_v56 = vunpack.i.l.bf16 %v6005_v44 }
 0x218   : > { %v4312_v45 = vunpack.i.h.bf16 %v4310_v2  ;;  %v4311_v35 = vunpack.i.l.bf16 %v4310_v2  ;;  %vm6854_vm13 = vmmov %vm6842_vm11  ;;  %v4332_v5 = vunpack.i.h.bf16 %v6023_v29  ;;  %v4331_v41 = vunpack.i.l.bf16 %v6023_v29  ;;  %v6865_v29 = vld [vmem:[#allocation18_spill] sm:$0xff] }
 0x219   : > { %v2600_v34 = vsel %vm6854_vm13, %v5544_v9, %v4307_v16  ;;  %v4276_v9 = vunpack.i.l.bf16 %v5996_v18  ;;  %v4337_v43 = vunpack.i.h.bf16 %v6037_v59  ;;  %v4336_v2 = vunpack.i.l.bf16 %v6037_v59 }
 0x21a   : > { %v2728_v38 = vsel %vm6845_vm12, %v2695_v55, %v4311_v35  ;;  %v2729_v39 = vsel %vm6846_vm0, %v2696_v20, %v4312_v45  ;;  %v4360_v47 = vpop.permute.xlu1 %4359  ;;  %vm6856_vm12 = vmmov %vm6855_vm10  ;;  %vm6857_vm0 = vcmask 392192  }
 0x21b   : > { %v4320_v31 = vpop.permute.xlu0 %4319  ;;  %v2761_v61 = vsel %vm6847_vm9, %v2728_v38, %v4316_v28  ;;  %v2762_v8 = vsel %vm6848_vm3, %v2729_v39, %v4317_v49  ;;  %vm6858_vm9 = vmmov %vm6857_vm0  ;;  %v4362_v45 = vunpack.i.h.bf16 %v4360_v47  ;;  %v4361_v35 = vunpack.i.l.bf16 %v4360_v47  ;;  %v4499_v47 = vld [vmem:[#allocation2 + $0xcf] sm:$0xff] }
 0x21c   : > { %v2794_v51 = vsel %vm6849_vm8, %v2761_v61, %v4271_v48  ;;  %v2795_v13 = vsel %vm6850_vm14, %v2762_v8, %v4272_v7  ;;  %v4322_v42 = vunpack.i.h.bf16 %v4320_v31  ;;  %v4321_v19 = vunpack.i.l.bf16 %v4320_v31  ;;  %vm6860_vm3 = vmmov %vm6859_vm4 }
 0x21d   : > { %v2826_v58 = vpack.c.bf16 %v2795_v13, %v2794_v51  ;;  %vm6861_vm8 = vcmask 654336   ;;  %v6866_v7 = vsel %vm6682_vm6, %v6865_v29, 0.0  ;;  %v6891_v29 = vld [vmem:[#allocation35_spill] sm:$0xff] }
 0x21e   : > { %v6053_v14 = vpop.permute.xlu1 %4369  ;;  %v2632_v4 = vsel %vm6855_vm10, %v2599_v52, %v4321_v19  ;;  %v2633_v25 = vsel %vm6856_vm12, %v2600_v34, %v4322_v42  ;;  %vm6862_vm14 = vmmov %vm6861_vm8  ;;  %v2601_v59 = vsel %vm6854_vm13, %v6866_v7, %v4281_v56  ;;  %vm6867_vm10 = vcmask 916480   ;;  %v6874_v52 = vld [vmem:[#allocation31_spill] sm:$0xff] }
 0x21f   : > { %3071 = vmatmul.mubr.bf16.gmra.mrb[36].mxu1 %v2826_v58  ;;  %v6057_v1 = vpop.permute.xlu0 %4339  ;;  %v2665_v30 = vsel %vm6857_vm0, %v2632_v4, %v4326_v17  ;;  %v2666_v10 = vsel %vm6858_vm9, %v2633_v25, %v4327_v50  ;;  %vm6868_vm12 = vmmov %vm6867_vm10  ;;  %vm6870_vm9 = vcmask 261120   ;;  %v4372_v42 = vunpack.i.h.bf16 %v6053_v14 }
 0x220   : > { %3742 = vmatprep.mubr.msk.bf16.mxu1 %vm6852_vm15, %v6851_v46  ;;  %v2697_v3 = vsel %vm6859_vm4, %v2665_v30, %v4276_v9  ;;  %v2698_v15 = vsel %vm6860_vm3, %v2666_v10, %v4277_v22  ;;  %vm6863_vm15 = vcmask 785408   ;;  %vm6869_vm0 = vmmov %vm6854_vm13  ;;  %vm6872_vm3 = vcmask 392192  }
 0x221   : > { %v2730_v49 = vsel %vm6861_vm8, %v2697_v3, %v4331_v41  ;;  %v2731_v28 = vsel %vm6862_vm14, %v2698_v15, %v4332_v5  ;;  %vm6864_vm11 = vmmov %vm6863_vm15  ;;  %v2602_v31 = vsel %vm6869_vm0, %v4499_v47, %v4282_v32  ;;  %v4371_v19 = vunpack.i.l.bf16 %v6053_v14 }
 0x222   : > { %v6061_v12 = vpop.permute.xlu1 %4374  ;;  %v2635_v13 = vsel %vm6870_vm9, %v2602_v31, %v4337_v43  ;;  %vm6871_vm4 = vmmov %vm6870_vm9  ;;  %vm6876_vm14 = vcmask 523264   ;;  %v4342_v22 = vunpack.i.h.bf16 %v6057_v1  ;;  %v4341_v14 = vunpack.i.l.bf16 %v6057_v1 }
 0x223   : > { %v6070_v62 = vpop.permute.xlu0 %4344  ;;  %v2634_v58 = vsel %vm6871_vm4, %v2601_v59, %v4336_v2  ;;  %vm6873_vm6 = vmmov %vm6872_vm3  ;;  %v4376_v46 = vunpack.i.l.bf16 %v6061_v12  ;;  %v4377_v34 = vunpack.i.h.bf16 %v6061_v12  ;;  %v6880_v12 = vsel %vm6692_vm7, %v6693_v60, 0.0 }
 0x224   : > { %vm6875_vm8 = vmmov %vm6869_vm0  ;;  %vm6884_vm9 = vcmask 916480   ;;  %vm6887_vm7 = vcmask 261120  }
 0x225   : > { %vm6885_vm4 = vmmov %vm6884_vm9 }
 0x226   : > { %v4385_v23 = vpop.permute.xlu1 %4384 }
 0x227   : > { %v6078_v24 = vpop.permute.xlu0 %4349  ;;  %v4387_v50 = vunpack.i.h.bf16 %v4385_v23  ;;  %v4386_v17 = vunpack.i.l.bf16 %v4385_v23 }
 0x22a   : > { %v6082_v63 = vpop.permute.xlu1 %4394 }
 0x22b   : > { %v4355_v53 = vpop.permute.xlu0 %4354  ;;  %v4397_v37 = vunpack.i.h.bf16 %v6082_v63  ;;  %v4396_v60 = vunpack.i.l.bf16 %v6082_v63 }
 0x22c   : > { %v4357_v18 = vunpack.i.h.bf16 %v4355_v53  ;;  %v4356_v54 = vunpack.i.l.bf16 %v4355_v53 }
 0x22e   : > { %v2764_v55 = vsel %vm6863_vm15, %v2731_v28, %v4357_v18  ;;  %v2763_v44 = vsel %vm6864_vm11, %v2730_v49, %v4356_v54  ;;  %v6096_v20 = vpop.permute.xlu1 %4399  ;;  %vm6877_vm15 = vmmov %vm6876_vm14  ;;  %vm6878_vm11 = vcmask 654336  }
 0x22f   : > { %v4365_v48 = vpop.permute.xlu0 %4364  ;;  %v2796_v38 = vsel %vm6867_vm10, %v2763_v44, %v4361_v35  ;;  %v2797_v39 = vsel %vm6868_vm12, %v2764_v55, %v4362_v45  ;;  %vm6879_vm13 = vmmov %vm6878_vm11  ;;  %vm6882_vm12 = vcmask 785408   ;;  %v4347_v44 = vunpack.i.h.bf16 %v6070_v62 }
 0x230   : > { %v4367_v61 = vunpack.i.h.bf16 %v4365_v48  ;;  %v4366_v8 = vunpack.i.l.bf16 %v4365_v48  ;;  %v2828_v51 = vpack.c.bf16 %v2797_v39, %v2796_v38  ;;  %vm6881_vm10 = vmmov %vm6869_vm0  ;;  %v4352_v48 = vunpack.i.h.bf16 %v6078_v24 }
 0x231   : > { %v2603_v32 = vsel %vm6881_vm10, %v6880_v12, %v4376_v46  ;;  %vm6883_vm0 = vmmov %vm6882_vm12  ;;  %v4351_v38 = vunpack.i.l.bf16 %v6078_v24  ;;  %v4402_v39 = vunpack.i.h.bf16 %v6096_v20  ;;  %v4401_v47 = vunpack.i.l.bf16 %v6096_v20  ;;  %v6907_v12 = vld [vmem:[#allocation36_spill] sm:$0xff] }
 0x232   : > { %v2668_v27 = vsel %vm6872_vm3, %v2635_v13, %v4367_v61  ;;  %v2667_v16 = vsel %vm6873_vm6, %v2634_v58, %v4366_v8  ;;  %3079 = vmatmul.mubr.bf16.gmra.mrb[40].mxu1 %v2828_v51  ;;  %v6110_v26 = vpop.permute.xlu1 %4404  ;;  %vm6886_vm3 = vmmov %vm6875_vm8  ;;  %vm6895_vm10 = vcmask 654336   ;;  %v6898_v20 = vsel %vm5314_vm1, %v5308_v0, 0.0 }
 0x233   : > { %v4380_v21 = vpop.permute.xlu0 %4379  ;;  %3743 = vmatprep.mubr.msk.bf16.mxu1 %vm6875_vm8, %v6874_v52  ;;  %v2699_v30 = vsel %vm6876_vm14, %v2667_v16, %v4371_v19  ;;  %v2700_v10 = vsel %vm6877_vm15, %v2668_v27, %v4372_v42  ;;  %v2604_v2 = vsel %vm6886_vm3, %v5671_v36, %v4377_v34  ;;  %vm6888_vm6 = vmmov %vm6887_vm7  ;;  %vm6889_vm8 = vcmask 392192   ;;  %v4500_v34 = vld [vmem:[#allocation2 + $0xef] sm:$0xff] }
 0x234   : > { %v4382_v4 = vunpack.i.h.bf16 %v4380_v21  ;;  %v4381_v25 = vunpack.i.l.bf16 %v4380_v21  ;;  %vm6890_vm14 = vmmov %vm6889_vm8  ;;  %v4346_v36 = vunpack.i.l.bf16 %v6070_v62  ;;  %v4407_v62 = vunpack.i.h.bf16 %v6110_v26 }
 0x235   : > { %vm6892_vm15 = vmmov %vm6886_vm3  ;;  %v4406_v61 = vunpack.i.l.bf16 %v6110_v26 }
 0x236   : > { %v2732_v9 = vsel %vm6878_vm11, %v2699_v30, %v4381_v25  ;;  %v2733_v3 = vsel %vm6879_vm13, %v2700_v10, %v4382_v4  ;;  %v4420_v15 = vpop.permute.xlu1 %4419  ;;  %vm6893_vm11 = vcmask 523264  }
 0x237   : > { %v4390_v23 = vpop.permute.xlu0 %4389  ;;  %v2765_v56 = vsel %vm6882_vm12, %v2732_v9, %v4386_v17  ;;  %v2766_v5 = vsel %vm6883_vm0, %v2733_v3, %v4387_v50  ;;  %vm6894_vm13 = vmmov %vm6893_vm11  ;;  %v4422_v13 = vunpack.i.h.bf16 %v4420_v15  ;;  %v4421_v58 = vunpack.i.l.bf16 %v4420_v15 }
 0x238   : > { %v4392_v41 = vunpack.i.h.bf16 %v4390_v23  ;;  %v4391_v53 = vunpack.i.l.bf16 %v4390_v23  ;;  %v2798_v1 = vsel %vm6884_vm9, %v2765_v56, %v4341_v14  ;;  %v2799_v43 = vsel %vm6885_vm4, %v2766_v5, %v4342_v22  ;;  %vm6896_vm12 = vmmov %vm6895_vm10  ;;  %v1707_v56 = vld [vmem:[#allocation2 + $0x119] sm:$0xff] }
 0x239   : > { %v2830_v18 = vpack.c.bf16 %v2799_v43, %v2798_v1  ;;  %vm6897_vm9 = vmmov %vm6883_vm0  ;;  %v1740_v5 = vsel %vm5786_vm5, %v1708_v6, 0.0 }
 0x23a   : > { %v2636_v54 = vsel %vm6887_vm7, %v2603_v32, %v4391_v53  ;;  %v2637_v45 = vsel %vm6888_vm6, %v2604_v2, %v4392_v41  ;;  %v4430_v35 = vpop.permute.xlu1 %4429  ;;  %vm6899_vm4 = vmmov %vm6886_vm3  ;;  %vm6900_vm3 = vcmask 916480  }
 0x23b   : > { %v2669_v49 = vsel %vm6889_vm8, %v2636_v54, %v4396_v60  ;;  %v2670_v28 = vsel %vm6890_vm14, %v2637_v45, %v4397_v37  ;;  %3087 = vmatmul.mubr.bf16.gmra.mrb[44].mxu1 %v2830_v18  ;;  %v6141_v55 = vpop.permute.xlu0 %4409  ;;  %v2605_v46 = vsel %vm6899_vm4, %v6898_v20, %v4351_v38  ;;  %vm6901_vm7 = vmmov %vm6900_vm3  ;;  %vm6903_vm8 = vcmask 261120  }
 0x23c   : > { %3744 = vmatprep.mubr.msk.bf16.mxu1 %vm6892_vm15, %v6891_v29  ;;  %v2701_v7 = vsel %vm6893_vm11, %v2669_v49, %v4346_v36  ;;  %v2702_v59 = vsel %vm6894_vm13, %v2670_v28, %v4347_v44  ;;  %vm6902_vm6 = vmmov %vm6899_vm4  ;;  %vm6905_vm15 = vcmask 392192   ;;  %v4432_v9 = vunpack.i.h.bf16 %v4430_v35 }
 0x23d   : > { %v2734_v27 = vsel %vm6895_vm10, %v2701_v7, %v4401_v47  ;;  %v2735_v16 = vsel %vm6896_vm12, %v2702_v59, %v4402_v39  ;;  %v2606_v4 = vsel %vm6902_vm6, %v4500_v34, %v4352_v48  ;;  %vm6904_vm14 = vmmov %vm6903_vm8  ;;  %v4431_v3 = vunpack.i.l.bf16 %v4430_v35 }
 0x23e   : > { %v6147_v63 = vpop.permute.xlu1 %4434  ;;  %v2639_v30 = vsel %vm6903_vm8, %v2606_v4, %v4407_v62  ;;  %v2638_v10 = vsel %vm6904_vm14, %v2605_v46, %v4406_v61  ;;  %vm6906_vm1 = vmmov %vm6905_vm15  ;;  %v4412_v2 = vunpack.i.h.bf16 %v6141_v55  ;;  %v4411_v37 = vunpack.i.l.bf16 %v6141_v55 }
 0x23f   : > { %v4415_v31 = vpop.permute.xlu0 %4414  ;;  %vm6908_vm11 = vmmov %vm6899_vm4  ;;  %v2837_v35 = vpack.c.bf16 %v1740_v5, %v1707_v56  ;;  %v4437_v49 = vunpack.i.h.bf16 %v6147_v63  ;;  %v4436_v28 = vunpack.i.l.bf16 %v6147_v63  ;;  %v6913_v59 = vsel %vm6744_vm2, %v5312_v57, 0.0 }
 0x240   : > { %v4417_v8 = vunpack.i.h.bf16 %v4415_v31  ;;  %v4416_v51 = vunpack.i.l.bf16 %v4415_v31  ;;  %vm6909_vm10 = vmmov %vm6894_vm13 }
 0x241   : > { %vm6911_vm4 = vmmov %vm6897_vm9  ;;  %v2608_v38 = vsel %vm6902_vm6, %v5772_v40, %v4437_v49 }
 0x242   : > { %v2768_v42 = vsel %vm6883_vm0, %v2735_v16, %v4417_v8  ;;  %v2767_v24 = vsel %vm6897_vm9, %v2734_v27, %v4416_v51  ;;  %v4450_v19 = vpop.permute.xlu1 %4449  ;;  %vm6910_vm0 = vmmov %vm6896_vm12 }
 0x243   : > { %v4425_v26 = vpop.permute.xlu0 %4424  ;;  %v2800_v21 = vsel %vm6900_vm3, %v2767_v24, %v4421_v58  ;;  %v2801_v52 = vsel %vm6901_vm7, %v2768_v42, %v4422_v13  ;;  %v4452_v41 = vunpack.i.h.bf16 %v4450_v19  ;;  %v4451_v53 = vunpack.i.l.bf16 %v4450_v19  ;;  %vm6912_vm5 = vmmov %vm6900_vm3 }
 0x244   : > { %v4427_v25 = vunpack.i.h.bf16 %v4425_v26  ;;  %v4426_v50 = vunpack.i.l.bf16 %v4425_v26  ;;  %v2832_v17 = vpack.c.bf16 %v2801_v52, %v2800_v21  ;;  %vm6914_vm7 = vmmov %vm6902_vm6 }
 0x245   : > { %v2607_v48 = vsel %vm6914_vm7, %v6913_v59, %v4436_v28  ;;  %vm6915_vm8 = vmmov %vm6902_vm6 }
 0x246   : > { %v2672_v0 = vsel %vm6905_vm15, %v2639_v30, %v4427_v25  ;;  %v2671_v22 = vsel %vm6906_vm1, %v2638_v10, %v4426_v50  ;;  %v4455_v14 = vpop.permute.xlu1 %4454  ;;  %3095 = vmatmul.mubr.bf16.gmra.mrb[48].mxu1 %v2832_v17  ;;  %vm6916_vm15 = vmmov %vm6904_vm14  ;;  %v6212_v17 = vld [vmem:[%s6485_s6] ss:$0 sm:$0xff] }
 0x247   : > { %v4440_v15 = vpop.permute.xlu0 %4439  ;;  %3745 = vmatprep.mubr.msk.bf16.mxu1 %vm6908_vm11, %v6907_v12  ;;  %v2703_v1 = vsel %vm6894_vm13, %v2671_v22, %v4431_v3  ;;  %v2704_v43 = vsel %vm6909_vm10, %v2672_v0, %v4432_v9  ;;  %v4457_v31 = vunpack.i.h.bf16 %v4455_v14  ;;  %v4456_v62 = vunpack.i.l.bf16 %v4455_v14  ;;  %vm6917_vm2 = vmmov %vm6906_vm1  ;;  %v6217_v10 = vld [vmem:[%s6486_s7] ss:$0 sm:$0xff] }
 0x248   : > { %v4442_v32 = vunpack.i.h.bf16 %v4440_v15  ;;  %v4441_v23 = vunpack.i.l.bf16 %v4440_v15  ;;  %vm6918_vm11 = vmmov %vm6909_vm10 }
 0x249   : > { %vm6919_vm13 = vmmov %vm6909_vm10 }
 0x24a   : > { %v2736_v60 = vsel %vm6896_vm12, %v2703_v1, %v4441_v23  ;;  %v2737_v18 = vsel %vm6910_vm0, %v2704_v43, %v4442_v32  ;;  %v4465_v44 = vpop.permute.xlu1 %4464  ;;  %vm6920_vm10 = vmmov %vm6910_vm0 }
 0x24b   : > { %v4445_v54 = vpop.permute.xlu0 %4444  ;;  %v2769_v45 = vsel %vm6897_vm9, %v2736_v60, %v4451_v53  ;;  %v2770_v33 = vsel %vm6911_vm4, %v2737_v18, %v4452_v41  ;;  %v4467_v61 = vunpack.i.h.bf16 %v4465_v44  ;;  %v4466_v8 = vunpack.i.l.bf16 %v4465_v44  ;;  %vm6921_vm12 = vmmov %vm6910_vm0 }
 0x24c   : > { %v2802_v36 = vsel %vm6912_vm5, %v2769_v45, %v4411_v37  ;;  %v2803_v29 = vsel %vm6900_vm3, %v2770_v33, %v4412_v2  ;;  %v4447_v51 = vunpack.i.h.bf16 %v4445_v54  ;;  %v4446_v13 = vunpack.i.l.bf16 %v4445_v54  ;;  %vm6922_vm0 = vmmov %vm6911_vm4 }
 0x24d   : > { %v2834_v55 = vpack.c.bf16 %v2803_v29, %v2802_v36  ;;  %vm6923_vm9 = vmmov %vm6922_vm0 }
 0x24e   : > { %v4475_v63 = vpop.permute.xlu1 %4474  ;;  %vm6924_vm4 = vmmov %vm6900_vm3 }
 0x24f   : > { %v4460_v7 = vpop.permute.xlu0 %4459  ;;  %3103 = vmatmul.mubr.bf16.gmra.mrb[52].mxu1 %v2834_v55  ;;  %v4477_v16 = vunpack.i.h.bf16 %v4475_v63  ;;  %v4476_v42 = vunpack.i.l.bf16 %v4475_v63  ;;  %vm6925_vm5 = vmmov %vm6900_vm3 }
 0x250   : > { %v4462_v39 = vunpack.i.h.bf16 %v4460_v7  ;;  %v4461_v47 = vunpack.i.l.bf16 %v4460_v7  ;;  %3746 = vmatprep.mubr.msk.bf16.mxu1 %vm6915_vm8, %v2837_v35  ;;  %vm6926_vm3 = vmmov %vm6902_vm6 }
 0x251   : > { %vm6927_vm7 = vmmov %vm6926_vm3 }
 0x252   : > { %v2640_v11 = vsel %vm6904_vm14, %v2607_v48, %v4461_v47  ;;  %v2641_v57 = vsel %vm6916_vm15, %v2608_v38, %v4462_v39  ;;  %vm6928_vm6 = vmmov %vm6926_vm3 }
 0x253   : > { %v2673_v58 = vsel %vm6917_vm2, %v2640_v11, %v4466_v8  ;;  %v2674_v27 = vsel %vm6906_vm1, %v2641_v57, %v4467_v61  ;;  %v4470_v40 = vpop.permute.xlu0 %4469  ;;  %vm6929_vm8 = vmmov %vm6926_vm3 }
 0x254   : > { %v4472_v24 = vunpack.i.h.bf16 %v4470_v40  ;;  %v4471_v19 = vunpack.i.l.bf16 %v4470_v40  ;;  %v2705_v20 = vsel %vm6918_vm11, %v2673_v58, %v4446_v13  ;;  %v2706_v46 = vsel %vm6919_vm13, %v2674_v27, %v4447_v51  ;;  %vm6930_vm14 = vmmov %vm6926_vm3 }
 0x255   : > { %v2738_v26 = vsel %vm6920_vm10, %v2705_v20, %v4456_v62  ;;  %v2739_v21 = vsel %vm6921_vm12, %v2706_v46, %v4457_v31  ;;  %vm6931_vm15 = vmmov %vm6926_vm3 }
 0x256   : > { %v2771_v52 = vsel %vm6922_vm0, %v2738_v26, %v4471_v19  ;;  %v2772_v34 = vsel %vm6923_vm9, %v2739_v21, %v4472_v24  ;;  %vm6932_vm2 = vmmov %vm6926_vm3 }
 0x257   : > { %v2804_v4 = vsel %vm6924_vm4, %v2771_v52, %v4476_v42  ;;  %v2805_v25 = vsel %vm6925_vm5, %v2772_v34, %v4477_v16  ;;  %vm6933_vm1 = vmmov %vm6932_vm2 }
 0x258   : > { %v2836_v50 = vpack.c.bf16 %v2805_v25, %v2804_v4  ;;  %vm6934_vm11 = vmmov %vm6933_vm1 }
 0x259   : > { %vm6935_vm13 = vmmov %vm6933_vm1 }
 0x25a   : > { %3111 = vmatmul.mubr.bf16.gmra.mrb[56].mxu1 %v2836_v50  ;;  %vm6936_vm10 = vmmov %vm6933_vm1 }
 0x25b   : > { %vm6937_vm12 = vmmov %vm6933_vm1 }
 0x25c   : > { %vm6938_vm0 = vmmov %vm6933_vm1 }
 0x25d   : > { %vm6939_vm9 = vmmov %vm6938_vm0 }
 0x25e   : > { %vm6940_vm4 = vmmov %vm6938_vm0 }
 0x25f   : > { %vm6941_vm5 = vmmov %vm6938_vm0 }
 0x270   : > { %v2992_v30 = vpop.f32.mrb[32].mxu0 }
 0x271   : > { %v3126_v6 = vmul.f32 %v6212_v17, %v2992_v30  ;;  %v2994_v0 = vpop.f32.mrb[33].mxu0 }
 0x272   : > { %v2995_v22 = vpop.f32.mrb[34].mxu0 }
 0x273   : > { %v3165_v14 = vadd.f32 %v6217_v10, %v3126_v6  ;;  %v3127_v9 = vmul.f32 %v6212_v17, %v2995_v22  ;;  %v2997_v3 = vpop.f32.mrb[35].mxu0 }
 0x275   : > { %v3166_v15 = vadd.f32 %v6217_v10, %v3127_v9  ;;  %v3197_v12 = vmax.f32 %v3165_v14, 0.0 }
 0x277   : > { %v3198_v32 = vmax.f32 %v3166_v15, 0.0 }
 0x279   : > { %v3229_v23 = vpack.c.bf16 %v3198_v32, %v3197_v12 }
 0x27b   : > { %3851 = vmatprep.mubr.msk.bf16.mxu0 %vm6926_vm3, %v3229_v23  ;;  %vm6942_vm3 = vcmask 523264  }
 0x280   : > { %v3000_v56 = vpop.f32.mrb[0].mxu1 }
 0x281   : > { %v3128_v5 = vmul.f32 %v6212_v17, %v3000_v56  ;;  %v3002_v41 = vpop.f32.mrb[1].mxu1 }
 0x282   : > { %v3003_v53 = vpop.f32.mrb[2].mxu1 }
 0x283   : > { %v3167_v1 = vadd.f32 %v6217_v10, %v3128_v5  ;;  %v3129_v43 = vmul.f32 %v6212_v17, %v3003_v53  ;;  %v3005_v2 = vpop.f32.mrb[3].mxu1 }
 0x285   : > { %v3168_v37 = vadd.f32 %v6217_v10, %v3129_v43  ;;  %v3199_v60 = vmax.f32 %v3167_v1, 0.0 }
 0x287   : > { %v3200_v18 = vmax.f32 %v3168_v37, 0.0 }
 0x289   : > { %v3230_v54 = vpack.c.bf16 %v3200_v18, %v3199_v60  ;;  %v3008_v45 = vpop.f32.mrb[4].mxu1 }
 0x28a   : > { %v3130_v33 = vmul.f32 %v6212_v17, %v3008_v45  ;;  %v3010_v35 = vpop.f32.mrb[5].mxu1 }
 0x28b   : > { %v3011_v49 = vpop.f32.mrb[6].mxu1  ;;  %3852 = vmatmul.mubr.msk.bf16.vlgmr.msra.gmra.mrb[36].mxu0 %vm6927_vm7, %v3230_v54  ;;  %vm6943_vm7 = vmmov %vm6942_vm3 }
 0x28c   : > { %v3169_v28 = vadd.f32 %v6217_v10, %v3130_v33  ;;  %v3131_v44 = vmul.f32 %v6212_v17, %v3011_v49  ;;  %v3013_v36 = vpop.f32.mrb[7].mxu1 }
 0x28e   : > { %v3170_v29 = vadd.f32 %v6217_v10, %v3131_v44  ;;  %v3201_v55 = vmax.f32 %v3169_v28, 0.0 }
 0x290   : > { %v3202_v7 = vmax.f32 %v3170_v29, 0.0 }
 0x292   : > { %v3231_v59 = vpack.c.bf16 %v3202_v7, %v3201_v55 }
 0x294   : > { %3855 = vmatprep.mubr.msk.bf16.mxu0 %vm6928_vm6, %v3231_v59  ;;  %vm6944_vm6 = vmmov %vm6942_vm3 }
 0x29c   : > { %v3016_v48 = vpop.f32.mrb[8].mxu1 }
 0x29d   : > { %v3132_v38 = vmul.f32 %v6212_v17, %v3016_v48  ;;  %v3018_v39 = vpop.f32.mrb[9].mxu1 }
 0x29e   : > { %v3019_v47 = vpop.f32.mrb[10].mxu1 }
 0x29f   : > { %v3171_v63 = vadd.f32 %v6217_v10, %v3132_v38  ;;  %v3133_v31 = vmul.f32 %v6212_v17, %v3019_v47  ;;  %v3021_v62 = vpop.f32.mrb[11].mxu1 }
 0x2a1   : > { %v3172_v61 = vadd.f32 %v6217_v10, %v3133_v31  ;;  %v3203_v8 = vmax.f32 %v3171_v63, 0.0 }
 0x2a3   : > { %v3204_v51 = vmax.f32 %v3172_v61, 0.0 }
 0x2a5   : > { %v3232_v13 = vpack.c.bf16 %v3204_v51, %v3203_v8  ;;  %v3024_v11 = vpop.f32.mrb[12].mxu1 }
 0x2a6   : > { %v3134_v57 = vmul.f32 %v6212_v17, %v3024_v11  ;;  %v3026_v58 = vpop.f32.mrb[13].mxu1 }
 0x2a7   : > { %v3027_v27 = vpop.f32.mrb[14].mxu1  ;;  %3856 = vmatmul.mubr.msk.bf16.gmra.mrb[40].mxu0 %vm6929_vm8, %v3232_v13  ;;  %vm6945_vm8 = vmmov %vm6942_vm3 }
 0x2a8   : > { %v3173_v40 = vadd.f32 %v6217_v10, %v3134_v57  ;;  %v3135_v16 = vmul.f32 %v6212_v17, %v3027_v27  ;;  %v3029_v42 = vpop.f32.mrb[15].mxu1 }
 0x2aa   : > { %v3174_v24 = vadd.f32 %v6217_v10, %v3135_v16  ;;  %v3205_v19 = vmax.f32 %v3173_v40, 0.0 }
 0x2ac   : > { %v3206_v20 = vmax.f32 %v3174_v24, 0.0 }
 0x2ae   : > { %v3233_v46 = vpack.c.bf16 %v3206_v20, %v3205_v19 }
 0x2b0   : > { %3859 = vmatprep.mubr.msk.bf16.mxu0 %vm6930_vm14, %v3233_v46  ;;  %vm6946_vm14 = vmmov %vm6942_vm3 }
 0x2b4   : > { %v3032_v26 = vpop.f32.mrb[16].mxu1 }
 0x2b5   : > { %v3136_v21 = vmul.f32 %v6212_v17, %v3032_v26  ;;  %v3034_v52 = vpop.f32.mrb[17].mxu1 }
 0x2b6   : > { %v3035_v34 = vpop.f32.mrb[18].mxu1 }
 0x2b7   : > { %v3175_v4 = vadd.f32 %v6217_v10, %v3136_v21  ;;  %v3137_v25 = vmul.f32 %v6212_v17, %v3035_v34  ;;  %v3037_v50 = vpop.f32.mrb[19].mxu1 }
 0x2b9   : > { %v3176_v30 = vadd.f32 %v6217_v10, %v3137_v25  ;;  %v3207_v6 = vmax.f32 %v3175_v4, 0.0 }
 0x2bb   : > { %v3208_v0 = vmax.f32 %v3176_v30, 0.0 }
 0x2bd   : > { %v3234_v22 = vpack.c.bf16 %v3208_v0, %v3207_v6  ;;  %v3040_v14 = vpop.f32.mrb[20].mxu1 }
 0x2be   : > { %v3138_v9 = vmul.f32 %v6212_v17, %v3040_v14  ;;  %v3042_v3 = vpop.f32.mrb[21].mxu1 }
 0x2bf   : > { %v3043_v15 = vpop.f32.mrb[22].mxu1  ;;  %3860 = vmatmul.mubr.msk.bf16.gmra.mrb[44].mxu0 %vm6931_vm15, %v3234_v22  ;;  %vm6947_vm15 = vmmov %vm6942_vm3 }
 0x2c0   : > { %v3177_v12 = vadd.f32 %v6217_v10, %v3138_v9  ;;  %v3139_v32 = vmul.f32 %v6212_v17, %v3043_v15  ;;  %v3045_v23 = vpop.f32.mrb[23].mxu1 }
 0x2c2   : > { %v3178_v56 = vadd.f32 %v6217_v10, %v3139_v32  ;;  %v3209_v5 = vmax.f32 %v3177_v12, 0.0 }
 0x2c4   : > { %v3210_v41 = vmax.f32 %v3178_v56, 0.0 }
 0x2c5   : > { %v3048_v53 = vpop.f32.mrb[24].mxu1 }
 0x2c6   : > { %v3235_v1 = vpack.c.bf16 %v3210_v41, %v3209_v5  ;;  %v3140_v43 = vmul.f32 %v6212_v17, %v3048_v53  ;;  %v3050_v2 = vpop.f32.mrb[25].mxu1 }
 0x2c7   : > { %v3051_v37 = vpop.f32.mrb[26].mxu1 }
 0x2c8   : > { %v3179_v60 = vadd.f32 %v6217_v10, %v3140_v43  ;;  %v3141_v18 = vmul.f32 %v6212_v17, %v3051_v37  ;;  %v3053_v54 = vpop.f32.mrb[27].mxu1  ;;  %3863 = vmatprep.mubr.msk.bf16.mxu0 %vm6932_vm2, %v3235_v1  ;;  %vm6948_vm2 = vmmov %vm6942_vm3 }
 0x2ca   : > { %v3180_v45 = vadd.f32 %v6217_v10, %v3141_v18  ;;  %v3211_v33 = vmax.f32 %v3179_v60, 0.0 }
 0x2cc   : > { %v3212_v35 = vmax.f32 %v3180_v45, 0.0 }
 0x2ce   : > { %v3236_v49 = vpack.c.bf16 %v3212_v35, %v3211_v33 }
 0x2d0   : > { %3864 = vmatmul.mubr.msk.bf16.gmra.mrb[48].mxu0 %vm6933_vm1, %v3236_v49  ;;  %vm6949_vm1 = vmmov %vm6948_vm2 }
 0x2d5   : > { %v3056_v28 = vpop.f32.mrb[28].mxu1 }
 0x2d6   : > { %v3142_v44 = vmul.f32 %v6212_v17, %v3056_v28  ;;  %v3058_v36 = vpop.f32.mrb[29].mxu1 }
 0x2d7   : > { %v3059_v29 = vpop.f32.mrb[30].mxu1 }
 0x2d8   : > { %v3181_v55 = vadd.f32 %v6217_v10, %v3142_v44  ;;  %v3143_v7 = vmul.f32 %v6212_v17, %v3059_v29  ;;  %v3061_v59 = vpop.f32.mrb[31].mxu1 }
 0x2da   : > { %v3182_v48 = vadd.f32 %v6217_v10, %v3143_v7  ;;  %v3213_v38 = vmax.f32 %v3181_v55, 0.0 }
 0x2dc   : > { %v3214_v39 = vmax.f32 %v3182_v48, 0.0 }
 0x2de   : > { %v3237_v47 = vpack.c.bf16 %v3214_v39, %v3213_v38 }
 0x2e0   : > { %3867 = vmatprep.mubr.msk.bf16.mxu0 %vm6934_vm11, %v3237_v47  ;;  %vm6950_vm11 = vmmov %vm6949_vm1 }
 0x2e9   : > { %v3064_v63 = vpop.f32.mrb[32].mxu1 }
 0x2ea   : > { %v3144_v31 = vmul.f32 %v6212_v17, %v3064_v63  ;;  %v3066_v62 = vpop.f32.mrb[33].mxu1 }
 0x2eb   : > { %v3067_v61 = vpop.f32.mrb[34].mxu1 }
 0x2ec   : > { %v3183_v8 = vadd.f32 %v6217_v10, %v3144_v31  ;;  %v3145_v51 = vmul.f32 %v6212_v17, %v3067_v61  ;;  %v3069_v13 = vpop.f32.mrb[35].mxu1 }
 0x2ee   : > { %v3184_v11 = vadd.f32 %v6217_v10, %v3145_v51  ;;  %v3215_v57 = vmax.f32 %v3183_v8, 0.0 }
 0x2f0   : > { %v3216_v58 = vmax.f32 %v3184_v11, 0.0 }
 0x2f2   : > { %v3238_v27 = vpack.c.bf16 %v3216_v58, %v3215_v57  ;;  %v3072_v40 = vpop.f32.mrb[36].mxu1 }
 0x2f3   : > { %v3146_v16 = vmul.f32 %v6212_v17, %v3072_v40  ;;  %v3074_v42 = vpop.f32.mrb[37].mxu1 }
 0x2f4   : > { %v3075_v24 = vpop.f32.mrb[38].mxu1  ;;  %3868 = vmatmul.mubr.msk.bf16.gmra.mrb[52].mxu0 %vm6935_vm13, %v3238_v27  ;;  %vm6951_vm13 = vmmov %vm6949_vm1 }
 0x2f5   : > { %v3185_v19 = vadd.f32 %v6217_v10, %v3146_v16  ;;  %v3147_v20 = vmul.f32 %v6212_v17, %v3075_v24  ;;  %v3077_v46 = vpop.f32.mrb[39].mxu1 }
 0x2f7   : > { %v3186_v26 = vadd.f32 %v6217_v10, %v3147_v20  ;;  %v3217_v21 = vmax.f32 %v3185_v19, 0.0  ;;  %v6302_v19 = vld [vmem:[%s6487_s8] ss:$0 sm:$0xff] }
 0x2f9   : > { %v3218_v52 = vmax.f32 %v3186_v26, 0.0 }
 0x2fb   : > { %v3239_v34 = vpack.c.bf16 %v3218_v52, %v3217_v21 }
 0x2fd   : > { %3871 = vmatprep.mubr.msk.bf16.mxu0 %vm6936_vm10, %v3239_v34  ;;  %vm6952_vm10 = vmmov %vm6949_vm1 }
 0x305   : > { %v3080_v4 = vpop.f32.mrb[40].mxu1 }
 0x306   : > { %v3148_v25 = vmul.f32 %v6212_v17, %v3080_v4  ;;  %v3082_v50 = vpop.f32.mrb[41].mxu1 }
 0x307   : > { %v3083_v30 = vpop.f32.mrb[42].mxu1 }
 0x308   : > { %v3187_v6 = vadd.f32 %v6217_v10, %v3148_v25  ;;  %v3149_v0 = vmul.f32 %v6212_v17, %v3083_v30  ;;  %v3085_v22 = vpop.f32.mrb[43].mxu1  ;;  %v4501_v30 = vld [vmem:[%s4630_s24 + $0x10] sm:$0xff] }
 0x309   : > { %v4502_v22 = vld [vmem:[%s4630_s24] sm:$0xff] }
 0x30a   : > { %v3188_v14 = vadd.f32 %v6217_v10, %v3149_v0  ;;  %v3219_v9 = vmax.f32 %v3187_v6, 0.0 }
 0x30c   : > { %v3220_v3 = vmax.f32 %v3188_v14, 0.0 }
 0x30e   : > { %v3240_v15 = vpack.c.bf16 %v3220_v3, %v3219_v9  ;;  %v3088_v12 = vpop.f32.mrb[44].mxu1 }
 0x30f   : > { %v3150_v32 = vmul.f32 %v6212_v17, %v3088_v12  ;;  %v3090_v23 = vpop.f32.mrb[45].mxu1 }
 0x310   : > { %v3091_v56 = vpop.f32.mrb[46].mxu1  ;;  %3872 = vmatmul.mubr.msk.bf16.gmra.mrb[56].mxu0 %vm6937_vm12, %v3240_v15  ;;  %v4503_v15 = vld [vmem:[%s4630_s24 + $0x18] sm:$0xff]  ;;  %v4504_v23 = vld [vmem:[%s4630_s24 + $0x8] sm:$0xff]  ;;  %vm6953_vm12 = vmmov %vm6949_vm1 }
 0x311   : > { %v3189_v5 = vadd.f32 %v6217_v10, %v3150_v32  ;;  %v3151_v41 = vmul.f32 %v6212_v17, %v3091_v56  ;;  %v3093_v53 = vpop.f32.mrb[47].mxu1 }
 0x313   : > { %v3190_v1 = vadd.f32 %v6217_v10, %v3151_v41  ;;  %v3221_v43 = vmax.f32 %v3189_v5, 0.0 }
 0x315   : > { %v3222_v2 = vmax.f32 %v3190_v1, 0.0 }
 0x317   : > { %v3241_v37 = vpack.c.bf16 %v3222_v2, %v3221_v43 }
 0x319   : > { %v3096_v60 = vpop.f32.mrb[48].mxu1  ;;  %3875 = vmatprep.mubr.msk.bf16.mxu0 %vm6938_vm0, %v3241_v37  ;;  %vm6954_vm0 = vmmov %vm6949_vm1 }
 0x31a   : > { %v3152_v18 = vmul.f32 %v6212_v17, %v3096_v60  ;;  %v3098_v54 = vpop.f32.mrb[49].mxu1 }
 0x31b   : > { %v3099_v45 = vpop.f32.mrb[50].mxu1 }
 0x31c   : > { %v3191_v33 = vadd.f32 %v6217_v10, %v3152_v18  ;;  %v3153_v35 = vmul.f32 %v6212_v17, %v3099_v45  ;;  %v3101_v49 = vpop.f32.mrb[51].mxu1 }
 0x31e   : > { %v3192_v28 = vadd.f32 %v6217_v10, %v3153_v35  ;;  %v3223_v44 = vmax.f32 %v3191_v33, 0.0  ;;  %v4505_v35 = vld [vmem:[%s4630_s24 + $0x30] sm:$0xff] }
 0x320   : > { %v3224_v36 = vmax.f32 %v3192_v28, 0.0 }
 0x322   : > { %v3242_v29 = vpack.c.bf16 %v3224_v36, %v3223_v44  ;;  %v3104_v55 = vpop.f32.mrb[52].mxu1  ;;  %v4506_v44 = vld [vmem:[%s4630_s24 + $0x20] sm:$0xff] }
 0x323   : > { %v3154_v7 = vmul.f32 %v6212_v17, %v3104_v55  ;;  %v3106_v59 = vpop.f32.mrb[53].mxu1 }
 0x324   : > { %v3107_v48 = vpop.f32.mrb[54].mxu1  ;;  %3876 = vmatmul.mubr.msk.bf16.gmra.mrb[60].mxu0 %vm6939_vm9, %v3242_v29  ;;  %vm6955_vm9 = vmmov %vm6954_vm0 }
 0x325   : > { %v3193_v38 = vadd.f32 %v6217_v10, %v3154_v7  ;;  %v3155_v39 = vmul.f32 %v6212_v17, %v3107_v48  ;;  %v3109_v47 = vpop.f32.mrb[55].mxu1  ;;  %v4507_v7 = vld [vmem:[%s4630_s24 + $0x38] sm:$0xff] }
 0x327   : > { %v3194_v63 = vadd.f32 %v6217_v10, %v3155_v39  ;;  %v3225_v31 = vmax.f32 %v3193_v38, 0.0  ;;  %v4508_v38 = vld [vmem:[%s4630_s24 + $0x28] sm:$0xff] }
 0x329   : > { %v3226_v62 = vmax.f32 %v3194_v63, 0.0 }
 0x32b   : > { %v3243_v61 = vpack.c.bf16 %v3226_v62, %v3225_v31 }
 0x32d   : > { %v3112_v8 = vpop.f32.mrb[56].mxu1  ;;  %3879 = vmatprep.mubr.msk.bf16.mxu0 %vm6940_vm4, %v3243_v61  ;;  %vm6956_vm4 = vmmov %vm6954_vm0 }
 0x32e   : > { %v3156_v51 = vmul.f32 %v6212_v17, %v3112_v8  ;;  %v3114_v13 = vpop.f32.mrb[57].mxu1 }
 0x32f   : > { %v3115_v11 = vpop.f32.mrb[58].mxu1 }
 0x330   : > { %v3195_v57 = vadd.f32 %v6217_v10, %v3156_v51  ;;  %v3157_v58 = vmul.f32 %v6212_v17, %v3115_v11  ;;  %v3117_v27 = vpop.f32.mrb[59].mxu1  ;;  %v6307_v17 = vld [vmem:[%s6488_s9] ss:$0 sm:$0xff] }
 0x332   : > { %v3196_v40 = vadd.f32 %v6217_v10, %v3157_v58  ;;  %v3227_v16 = vmax.f32 %v3195_v57, 0.0 }
 0x334   : > { %v3228_v42 = vmax.f32 %v3196_v40, 0.0  ;;  %v4509_v40 = vld [vmem:[%s4630_s24 + $0x50] sm:$0xff] }
 0x336   : > { %v3244_v24 = vpack.c.bf16 %v3228_v42, %v3227_v16 }
 0x338   : > { %3880 = vmatmul.mubr.msk.bf16.gmra.mrb[64].mxu0 %vm6941_vm5, %v3244_v24  ;;  %v4510_v24 = vld [vmem:[%s4630_s24 + $0x40] sm:$0xff]  ;;  %vm6957_vm5 = vmmov %vm6954_vm0 }
 0x35e   : > { %v3853_v20 = vpop.f32.mrb[36].mxu0 }
 0x35f   : > { %v3471_v10 = vmul.f32 %v3853_v20, %v6302_v19  ;;  %v3335_v46 = vpop.f32.mrb[37].mxu0 }
 0x360   : > { %v3469_v26 = vmul.f32 %v6302_v19, %v3335_v46  ;;  %v3854_v21 = vpop.f32.mrb[38].mxu0 }
 0x361   : > { %v3510_v52 = vadd.f32 %v6307_v17, %v3471_v10  ;;  %v3472_v34 = vmul.f32 %v3854_v21, %v6302_v19  ;;  %v3338_v4 = vpop.f32.mrb[39].mxu0 }
 0x362   : > { %v3508_v25 = vadd.f32 %v6307_v17, %v3469_v26  ;;  %v3470_v50 = vmul.f32 %v6302_v19, %v3338_v4  ;;  %v4511_v26 = vld [vmem:[%s4630_s24 + $0x58] sm:$0xff] }
 0x363   : > { %v3542_v6 = vadd.f32 %v4501_v30, %v3510_v52  ;;  %v3511_v0 = vadd.f32 %v6307_v17, %v3472_v34  ;;  %v4512_v34 = vld [vmem:[%s4630_s24 + $0x48] sm:$0xff] }
 0x364   : > { %v3540_v14 = vadd.f32 %v4502_v22, %v3508_v25  ;;  %v3509_v9 = vadd.f32 %v6307_v17, %v3470_v50 }
 0x365   : > { %v3574_v3 = vmax.f32 %v3542_v6, 0.0  ;;  %v3543_v12 = vadd.f32 %v4503_v15, %v3511_v0 }
 0x366   : > { %v3572_v32 = vmax.f32 %v3540_v14, 0.0  ;;  %v3541_v56 = vadd.f32 %v4504_v23, %v3509_v9  ;;  %v4513_v23 = vld [vmem:[%s4630_s24 + $0x70] sm:$0xff] }
 0x367   : > { %3606 = vst.msk [vmem:[%s6322_s20 + $0x10] sm:$0xff] %vm6942_vm3, %v3574_v3  ;;  %v3575_v5 = vmax.f32 %v3543_v12, 0.0  ;;  %vm6958_vm3 = vmmov %vm6954_vm0 }
 0x368   : > { %3604 = vst.msk [vmem:[%s6322_s20] sm:$0xff] %vm6943_vm7, %v3572_v32  ;;  %v3573_v41 = vmax.f32 %v3541_v56, 0.0  ;;  %vm6959_vm7 = vmmov %vm6954_vm0 }
 0x369   : > { %3607 = vst.msk [vmem:[%s6322_s20 + $0x18] sm:$0xff] %vm6944_vm6, %v3575_v5  ;;  %vm6960_vm6 = vmmov %vm6954_vm0 }
 0x36a   : > { %3605 = vst.msk [vmem:[%s6322_s20 + $0x8] sm:$0xff] %vm6945_vm8, %v3573_v41  ;;  %v4514_v41 = vld [vmem:[%s4630_s24 + $0x60] sm:$0xff]  ;;  %vm6961_vm8 = vmmov %vm6954_vm0 }
 0x37a   : > { %v3857_v53 = vpop.f32.mrb[40].mxu0 }
 0x37b   : > { %v3475_v1 = vmul.f32 %v3857_v53, %v6302_v19  ;;  %v3351_v43 = vpop.f32.mrb[41].mxu0 }
 0x37c   : > { %v3473_v2 = vmul.f32 %v6302_v19, %v3351_v43  ;;  %v3858_v37 = vpop.f32.mrb[42].mxu0 }
 0x37d   : > { %v3514_v60 = vadd.f32 %v6307_v17, %v3475_v1  ;;  %v3476_v18 = vmul.f32 %v3858_v37, %v6302_v19  ;;  %v3354_v54 = vpop.f32.mrb[43].mxu0 }
 0x37e   : > { %v3512_v45 = vadd.f32 %v6307_v17, %v3473_v2  ;;  %v3474_v33 = vmul.f32 %v6302_v19, %v3354_v54  ;;  %v4515_v2 = vld [vmem:[%s4630_s24 + $0x78] sm:$0xff] }
 0x37f   : > { %v3546_v49 = vadd.f32 %v4505_v35, %v3514_v60  ;;  %v3515_v28 = vadd.f32 %v6307_v17, %v3476_v18  ;;  %v4516_v18 = vld [vmem:[%s4630_s24 + $0x68] sm:$0xff] }
 0x380   : > { %v3544_v36 = vadd.f32 %v4506_v44, %v3512_v45  ;;  %v3513_v29 = vadd.f32 %v6307_v17, %v3474_v33 }
 0x381   : > { %v3578_v55 = vmax.f32 %v3546_v49, 0.0  ;;  %v3547_v59 = vadd.f32 %v4507_v7, %v3515_v28 }
 0x382   : > { %v3576_v48 = vmax.f32 %v3544_v36, 0.0  ;;  %v3545_v39 = vadd.f32 %v4508_v38, %v3513_v29  ;;  %v4517_v38 = vld [vmem:[%s4630_s24 + $0x90] sm:$0xff] }
 0x383   : > { %3610 = vst.msk [vmem:[%s6322_s20 + $0x30] sm:$0xff] %vm6946_vm14, %v3578_v55  ;;  %v3579_v47 = vmax.f32 %v3547_v59, 0.0  ;;  %vm6962_vm14 = vmmov %vm6954_vm0 }
 0x384   : > { %3608 = vst.msk [vmem:[%s6322_s20 + $0x20] sm:$0xff] %vm6947_vm15, %v3576_v48  ;;  %v3577_v63 = vmax.f32 %v3545_v39, 0.0  ;;  %vm6963_vm15 = vmmov %vm6954_vm0 }
 0x385   : > { %3611 = vst.msk [vmem:[%s6322_s20 + $0x38] sm:$0xff] %vm6948_vm2, %v3579_v47  ;;  %vm6964_vm2 = vmmov %vm6954_vm0 }
 0x386   : > { %3609 = vst.msk [vmem:[%s6322_s20 + $0x28] sm:$0xff] %vm6949_vm1, %v3577_v63  ;;  %v4518_v63 = vld [vmem:[%s4630_s24 + $0x80] sm:$0xff]  ;;  %vm6965_vm1 = vmmov %vm6954_vm0 }
 0x392   : > { %v3861_v31 = vpop.f32.mrb[44].mxu0 }
 0x393   : > { %v3479_v62 = vmul.f32 %v3861_v31, %v6302_v19  ;;  %v3367_v61 = vpop.f32.mrb[45].mxu0 }
 0x394   : > { %v3477_v8 = vmul.f32 %v6302_v19, %v3367_v61  ;;  %v3862_v51 = vpop.f32.mrb[46].mxu0 }
 0x395   : > { %v3518_v13 = vadd.f32 %v6307_v17, %v3479_v62  ;;  %v3480_v11 = vmul.f32 %v3862_v51, %v6302_v19  ;;  %v3370_v57 = vpop.f32.mrb[47].mxu0 }
 0x396   : > { %v3516_v58 = vadd.f32 %v6307_v17, %v3477_v8  ;;  %v3478_v27 = vmul.f32 %v6302_v19, %v3370_v57  ;;  %v4519_v8 = vld [vmem:[%s4630_s24 + $0x98] sm:$0xff] }
 0x397   : > { %v3550_v16 = vadd.f32 %v4509_v40, %v3518_v13  ;;  %v3519_v42 = vadd.f32 %v6307_v17, %v3480_v11  ;;  %v4520_v11 = vld [vmem:[%s4630_s24 + $0x88] sm:$0xff] }
 0x398   : > { %v3548_v20 = vadd.f32 %v4510_v24, %v3516_v58  ;;  %v3517_v10 = vadd.f32 %v6307_v17, %v3478_v27 }
 0x399   : > { %v3582_v46 = vmax.f32 %v3550_v16, 0.0  ;;  %v3551_v21 = vadd.f32 %v4511_v26, %v3519_v42 }
 0x39a   : > { %v3580_v52 = vmax.f32 %v3548_v20, 0.0  ;;  %v3549_v4 = vadd.f32 %v4512_v34, %v3517_v10  ;;  %v4521_v34 = vld [vmem:[%s4630_s24 + $0xb0] sm:$0xff] }
 0x39b   : > { %3614 = vst.msk [vmem:[%s6322_s20 + $0x50] sm:$0xff] %vm6950_vm11, %v3582_v46  ;;  %v3583_v25 = vmax.f32 %v3551_v21, 0.0  ;;  %vm6966_vm11 = vmmov %vm6954_vm0 }
 0x39c   : > { %3612 = vst.msk [vmem:[%s6322_s20 + $0x40] sm:$0xff] %vm6951_vm13, %v3580_v52  ;;  %v3581_v50 = vmax.f32 %v3549_v4, 0.0  ;;  %vm6967_vm13 = vmmov %vm6954_vm0 }
 0x39d   : > { %3615 = vst.msk [vmem:[%s6322_s20 + $0x58] sm:$0xff] %vm6952_vm10, %v3583_v25  ;;  %vm6968_vm10 = vmmov %vm6954_vm0 }
 0x39e   : > { %3613 = vst.msk [vmem:[%s6322_s20 + $0x48] sm:$0xff] %vm6953_vm12, %v3581_v50  ;;  %v4522_v50 = vld [vmem:[%s4630_s24 + $0xa0] sm:$0xff]  ;;  %vm6969_vm12 = vmmov %vm6954_vm0 }
 0x3a3   : > { %v3865_v30 = vpop.f32.mrb[48].mxu0 }
 0x3a4   : > { %v3483_v6 = vmul.f32 %v3865_v30, %v6302_v19  ;;  %v3383_v0 = vpop.f32.mrb[49].mxu0 }
 0x3a5   : > { %v3481_v22 = vmul.f32 %v6302_v19, %v3383_v0  ;;  %v3866_v14 = vpop.f32.mrb[50].mxu0 }
 0x3a6   : > { %v3522_v9 = vadd.f32 %v6307_v17, %v3483_v6  ;;  %v3484_v3 = vmul.f32 %v3866_v14, %v6302_v19  ;;  %v3386_v15 = vpop.f32.mrb[51].mxu0 }
 0x3a7   : > { %v3520_v12 = vadd.f32 %v6307_v17, %v3481_v22  ;;  %v3482_v32 = vmul.f32 %v6302_v19, %v3386_v15  ;;  %v4523_v22 = vld [vmem:[%s4630_s24 + $0xb8] sm:$0xff] }
 0x3a8   : > { %v3554_v56 = vadd.f32 %v4513_v23, %v3522_v9  ;;  %v3523_v5 = vadd.f32 %v6307_v17, %v3484_v3  ;;  %v4524_v3 = vld [vmem:[%s4630_s24 + $0xa8] sm:$0xff] }
 0x3a9   : > { %v3552_v53 = vadd.f32 %v4514_v41, %v3520_v12  ;;  %v3521_v1 = vadd.f32 %v6307_v17, %v3482_v32 }
 0x3aa   : > { %v3586_v43 = vmax.f32 %v3554_v56, 0.0  ;;  %v3555_v37 = vadd.f32 %v4515_v2, %v3523_v5 }
 0x3ab   : > { %v3584_v60 = vmax.f32 %v3552_v53, 0.0  ;;  %v3553_v54 = vadd.f32 %v4516_v18, %v3521_v1  ;;  %v4525_v18 = vld [vmem:[%s4630_s24 + $0xd0] sm:$0xff] }
 0x3ac   : > { %3618 = vst.msk [vmem:[%s6322_s20 + $0x70] sm:$0xff] %vm6954_vm0, %v3586_v43  ;;  %v3587_v45 = vmax.f32 %v3555_v37, 0.0 }
 0x3ad   : > { %3616 = vst.msk [vmem:[%s6322_s20 + $0x60] sm:$0xff] %vm6955_vm9, %v3584_v60  ;;  %v3585_v33 = vmax.f32 %v3553_v54, 0.0  ;;  %vm6970_vm9 = vmmov %vm6954_vm0 }
 0x3ae   : > { %3619 = vst.msk [vmem:[%s6322_s20 + $0x78] sm:$0xff] %vm6956_vm4, %v3587_v45  ;;  %vm6971_vm4 = vmmov %vm6954_vm0 }
 0x3af   : > { %3617 = vst.msk [vmem:[%s6322_s20 + $0x68] sm:$0xff] %vm6957_vm5, %v3585_v33  ;;  %v4526_v33 = vld [vmem:[%s4630_s24 + $0xc0] sm:$0xff]  ;;  %vm6972_vm5 = vmmov %vm6954_vm0 }
 0x3c7   : > { %v3869_v35 = vpop.f32.mrb[52].mxu0 }
 0x3c8   : > { %v3487_v49 = vmul.f32 %v3869_v35, %v6302_v19  ;;  %v3399_v28 = vpop.f32.mrb[53].mxu0 }
 0x3c9   : > { %v3485_v44 = vmul.f32 %v6302_v19, %v3399_v28  ;;  %v3870_v36 = vpop.f32.mrb[54].mxu0 }
 0x3ca   : > { %v3526_v29 = vadd.f32 %v6307_v17, %v3487_v49  ;;  %v3488_v55 = vmul.f32 %v3870_v36, %v6302_v19  ;;  %v3402_v7 = vpop.f32.mrb[55].mxu0 }
 0x3cb   : > { %v3524_v59 = vadd.f32 %v6307_v17, %v3485_v44  ;;  %v3486_v48 = vmul.f32 %v6302_v19, %v3402_v7  ;;  %v4527_v44 = vld [vmem:[%s4630_s24 + $0xd8] sm:$0xff] }
 0x3cc   : > { %v3558_v39 = vadd.f32 %v4517_v38, %v3526_v29  ;;  %v3527_v47 = vadd.f32 %v6307_v17, %v3488_v55  ;;  %v4528_v55 = vld [vmem:[%s4630_s24 + $0xc8] sm:$0xff] }
 0x3cd   : > { %v3556_v31 = vadd.f32 %v4518_v63, %v3524_v59  ;;  %v3525_v62 = vadd.f32 %v6307_v17, %v3486_v48 }
 0x3ce   : > { %v3590_v61 = vmax.f32 %v3558_v39, 0.0  ;;  %v3559_v51 = vadd.f32 %v4519_v8, %v3527_v47 }
 0x3cf   : > { %v3588_v13 = vmax.f32 %v3556_v31, 0.0  ;;  %v3557_v57 = vadd.f32 %v4520_v11, %v3525_v62  ;;  %v4529_v11 = vld [vmem:[%s4630_s24 + $0xf0] sm:$0xff] }
 0x3d0   : > { %3622 = vst.msk [vmem:[%s6322_s20 + $0x90] sm:$0xff] %vm6958_vm3, %v3590_v61  ;;  %v3591_v58 = vmax.f32 %v3559_v51, 0.0 }
 0x3d1   : > { %3620 = vst.msk [vmem:[%s6322_s20 + $0x80] sm:$0xff] %vm6959_vm7, %v3588_v13  ;;  %v3589_v27 = vmax.f32 %v3557_v57, 0.0 }
 0x3d2   : > { %3623 = vst.msk [vmem:[%s6322_s20 + $0x98] sm:$0xff] %vm6960_vm6, %v3591_v58 }
 0x3d3   : > { %3621 = vst.msk [vmem:[%s6322_s20 + $0x88] sm:$0xff] %vm6961_vm8, %v3589_v27  ;;  %v4530_v27 = vld [vmem:[%s4630_s24 + $0xe0] sm:$0xff] }
 0x3e3   : > { %v3873_v40 = vpop.f32.mrb[56].mxu0 }
 0x3e4   : > { %v3491_v16 = vmul.f32 %v3873_v40, %v6302_v19  ;;  %v3415_v42 = vpop.f32.mrb[57].mxu0 }
 0x3e5   : > { %v3489_v24 = vmul.f32 %v6302_v19, %v3415_v42  ;;  %v3874_v20 = vpop.f32.mrb[58].mxu0 }
 0x3e6   : > { %v3530_v10 = vadd.f32 %v6307_v17, %v3491_v16  ;;  %v3492_v46 = vmul.f32 %v3874_v20, %v6302_v19  ;;  %v3418_v26 = vpop.f32.mrb[59].mxu0 }
 0x3e7   : > { %v3528_v21 = vadd.f32 %v6307_v17, %v3489_v24  ;;  %v3490_v52 = vmul.f32 %v6302_v19, %v3418_v26  ;;  %v4531_v24 = vld [vmem:[%s4630_s24 + $0xf8] sm:$0xff] }
 0x3e8   : > { %v3562_v4 = vadd.f32 %v4521_v34, %v3530_v10  ;;  %v3531_v25 = vadd.f32 %v6307_v17, %v3492_v46  ;;  %v4532_v46 = vld [vmem:[%s4630_s24 + $0xe8] sm:$0xff] }
 0x3e9   : > { %v3560_v30 = vadd.f32 %v4522_v50, %v3528_v21  ;;  %v3529_v6 = vadd.f32 %v6307_v17, %v3490_v52 }
 0x3ea   : > { %v3594_v0 = vmax.f32 %v3562_v4, 0.0  ;;  %v3563_v14 = vadd.f32 %v4523_v22, %v3531_v25 }
 0x3eb   : > { %v3592_v9 = vmax.f32 %v3560_v30, 0.0  ;;  %v3561_v15 = vadd.f32 %v4524_v3, %v3529_v6 }
 0x3ec   : > { %3626 = vst.msk [vmem:[%s6322_s20 + $0xb0] sm:$0xff] %vm6962_vm14, %v3594_v0  ;;  %v3595_v12 = vmax.f32 %v3563_v14, 0.0 }
 0x3ed   : > { %3624 = vst.msk [vmem:[%s6322_s20 + $0xa0] sm:$0xff] %vm6963_vm15, %v3592_v9  ;;  %v3593_v32 = vmax.f32 %v3561_v15, 0.0 }
 0x3ee   : > { %3627 = vst.msk [vmem:[%s6322_s20 + $0xb8] sm:$0xff] %vm6964_vm2, %v3595_v12 }
 0x3ef   : > { %3625 = vst.msk [vmem:[%s6322_s20 + $0xa8] sm:$0xff] %vm6965_vm1, %v3593_v32 }
 0x3f7   : > { %v3877_v23 = vpop.f32.mrb[60].mxu0 }
 0x3f8   : > { %v3495_v56 = vmul.f32 %v3877_v23, %v6302_v19  ;;  %v3431_v5 = vpop.f32.mrb[61].mxu0 }
 0x3f9   : > { %v3493_v41 = vmul.f32 %v6302_v19, %v3431_v5  ;;  %v3878_v53 = vpop.f32.mrb[62].mxu0 }
 0x3fa   : > { %v3534_v1 = vadd.f32 %v6307_v17, %v3495_v56  ;;  %v3496_v43 = vmul.f32 %v3878_v53, %v6302_v19  ;;  %v3434_v2 = vpop.f32.mrb[63].mxu0 }
 0x3fb   : > { %v3532_v37 = vadd.f32 %v6307_v17, %v3493_v41  ;;  %v3494_v60 = vmul.f32 %v6302_v19, %v3434_v2 }
 0x3fc   : > { %v3566_v54 = vadd.f32 %v4525_v18, %v3534_v1  ;;  %v3535_v45 = vadd.f32 %v6307_v17, %v3496_v43 }
 0x3fd   : > { %v3564_v35 = vadd.f32 %v4526_v33, %v3532_v37  ;;  %v3533_v49 = vadd.f32 %v6307_v17, %v3494_v60 }
 0x3fe   : > { %v3598_v28 = vmax.f32 %v3566_v54, 0.0  ;;  %v3567_v36 = vadd.f32 %v4527_v44, %v3535_v45 }
 0x3ff   : > { %v3596_v29 = vmax.f32 %v3564_v35, 0.0  ;;  %v3565_v7 = vadd.f32 %v4528_v55, %v3533_v49 }
 0x400   : > { %3630 = vst.msk [vmem:[%s6322_s20 + $0xd0] sm:$0xff] %vm6966_vm11, %v3598_v28  ;;  %v3599_v59 = vmax.f32 %v3567_v36, 0.0 }
 0x401   : > { %3628 = vst.msk [vmem:[%s6322_s20 + $0xc0] sm:$0xff] %vm6967_vm13, %v3596_v29  ;;  %v3597_v48 = vmax.f32 %v3565_v7, 0.0 }
 0x402   : > { %3631 = vst.msk [vmem:[%s6322_s20 + $0xd8] sm:$0xff] %vm6968_vm10, %v3599_v59 }
 0x403   : > { %3629 = vst.msk [vmem:[%s6322_s20 + $0xc8] sm:$0xff] %vm6969_vm12, %v3597_v48 }
 0x40b   : > { %v3881_v38 = vpop.f32.mrb[64].mxu0 }
 0x40c   : > { %v3499_v39 = vmul.f32 %v3881_v38, %v6302_v19  ;;  %v3447_v47 = vpop.f32.mrb[65].mxu0 }
 0x40d   : > { %v3497_v63 = vmul.f32 %v6302_v19, %v3447_v47  ;;  %v3882_v31 = vpop.f32.mrb[66].mxu0 }
 0x40e   : > { %v3538_v62 = vadd.f32 %v6307_v17, %v3499_v39  ;;  %v3500_v61 = vmul.f32 %v3882_v31, %v6302_v19  ;;  %v3450_v8 = vpop.f32.mrb[67].mxu0 }
 0x40f   : > { %v3536_v51 = vadd.f32 %v6307_v17, %v3497_v63  ;;  %v3498_v13 = vmul.f32 %v6302_v19, %v3450_v8 }
 0x410   : > { %v3570_v57 = vadd.f32 %v4529_v11, %v3538_v62  ;;  %v3539_v58 = vadd.f32 %v6307_v17, %v3500_v61 }
 0x411   : > { %v3568_v40 = vadd.f32 %v4530_v27, %v3536_v51  ;;  %v3537_v16 = vadd.f32 %v6307_v17, %v3498_v13 }
 0x412   : > { %v3602_v42 = vmax.f32 %v3570_v57, 0.0  ;;  %v3571_v20 = vadd.f32 %v4531_v24, %v3539_v58 }
 0x413   : > { %v3600_v10 = vmax.f32 %v3568_v40, 0.0  ;;  %v3569_v26 = vadd.f32 %v4532_v46, %v3537_v16 }
 0x414   : > { %3634 = vst.msk [vmem:[%s6322_s20 + $0xf0] sm:$0xff] %vm6954_vm0, %v3602_v42  ;;  %v3603_v21 = vmax.f32 %v3571_v20, 0.0 }
 0x415   : > { %3632 = vst.msk [vmem:[%s6322_s20 + $0xe0] sm:$0xff] %vm6970_vm9, %v3600_v10  ;;  %v3601_v19 = vmax.f32 %v3569_v26, 0.0 }
 0x416   : > { %3635 = vst.msk [vmem:[%s6322_s20 + $0xf8] sm:$0xff] %vm6971_vm4, %v3603_v21 }
 0x417   : > { %3633 = vst.msk [vmem:[%s6322_s20 + $0xe8] sm:$0xff] %vm6972_vm5, %v3601_v19 }
 0x418 PF: > { %s20_s13 = sadd.s32 1, %s4539_s13  }
 0x419   : > { %p17_p4 = scmp.ge.s32.totalorder %s20_s13, 4  }
 0x41b   :  { %19 = sbr.rel (!%p17_p4) target bundleno = 1 (0x1), region = 90 }

</bundles_post_ra>
